<compile_context>
chip_gen: v7x
topology: tpu7x:2x2x1
jax: 0.10.0
libtpu: 0.0.40
codegen_flags: <defaults>
</compile_context>

<pallas_src>
import jax
import jax.numpy as jnp
from jax import lax
from jax.experimental import pallas as pl
from jax.experimental.pallas import tpu as pltpu

# ---------------------------------------------------------------- constants
B        = 2    # batch
C_IN     = 3    # image channels
IMG      = 16   # image H = W
N_SENT   = 3    # sentences per report
N_WORDS  = 6    # words per sentence
VOCAB    = 20   # vocabulary size
HIDDEN   = 32   # hidden_size
EMBED    = 32   # embedding_size
VISUAL   = 64   # extractor.out_features (stand-in for resnet152's 2048)
N_LABELS = 14   # MLC classes
K_TOP    = 6    # MLC top-k semantic tags

N_STEPS  = N_SENT * (N_WORDS - 1)   # recorded word-LSTM hiddens
ROWS     = N_STEPS * B              # rows of the hidden / logits slabs

VMEM = pl.BlockSpec(memory_space=pltpu.MemorySpace.VMEM)


# ------------------------------------------------------------ small helpers
def _lstm_update(gates, c):
    """PyTorch gate order (i, f, g, o); two full-width activations."""
    H = HIDDEN
    sig = jax.nn.sigmoid(gates)          # one EUP pass over the full slab
    th = jnp.tanh(gates)                 # one EUP pass over the full slab
    i = sig[:, 0 * H:1 * H]
    f = sig[:, 1 * H:2 * H]
    g = th[:, 2 * H:3 * H]
    o = sig[:, 3 * H:4 * H]
    c_new = f * c + i * g
    h_new = o * jnp.tanh(c_new)
    return h_new, c_new


def _nll(logits, tgt_col):
    """Per-row negative log-likelihood, targets as int32 [R,1] column."""
    m = jnp.max(logits, axis=-1, keepdims=True)
    z = logits - m
    logp = z - jnp.log(jnp.sum(jnp.exp(z), axis=-1, keepdims=True))
    hit = lax.broadcasted_iota(jnp.int32, logits.shape, 1) == tgt_col
    return -jnp.sum(jnp.where(hit, logp, 0.0), axis=-1, keepdims=True)  # [R,1]


# ---------------------------------------------------------------- kernel A
def _features_kernel(x_ref, ext_w, ext_b, mlc_w, mlc_b, avg_ref, tags_ref):
    # Extractor (GAP + linear) fused with the MLC classifier head.
    pooled = jnp.mean(x_ref[...], axis=-1)                         # [B, C]
    avg = (jnp.dot(pooled, ext_w[...],
                   preferred_element_type=jnp.float32) + ext_b[...])
    avg_ref[...] = avg
    logits = (jnp.dot(avg, mlc_w[...],
                      preferred_element_type=jnp.float32) + mlc_b[...])
    tags_ref[...] = jax.nn.softmax(logits, axis=-1)                # [B, L]


# ---------------------------------------------------------------- kernel B
def _report_kernel(
        # data
        avg_ref, sem_ref, rep_ref, pool_ref, wordx_ref,
        cap_ref, stop_ref, grp_ref, wts_ref,
        # co-attention weights (biases pre-summed where they are only added)
        co_wv, co_wvh, co_bv, co_wvatt, co_bvatt,
        co_wa, co_wah, co_ba, co_waatt, co_baatt,
        co_wfc_v, co_wfc_a, co_bfc,
        # sentence LSTM
        sent_wih, sent_whh, sent_b,
        # topic / stop heads (wth||ws concatenated, biases pre-summed)
        w_hn, b_topic, wtc, ws1, b_stop, wstop, bstop,
        # word LSTM + output projection
        word_wih, word_whh, word_b, word_out_w, word_out_b,
        # outputs
        logits_ref, pstop_ref, sloss_ref, wloss_ref,
        # scratch
        hid_sc):
    avg = avg_ref[...]                       # [B, V]
    sem = sem_ref[...]                       # [B*K, H]  (rows: batch-major)
    rep = rep_ref[...]                       # [B*K, B]  replicate per-batch row
    pool = pool_ref[...]                     # [B, B*K]  sum over K per batch

    # ---- hoisted weight loads: each VMEM ref read exactly once ----
    W_vh, B_v = co_wvh[...], co_bv[...]
    W_vatt, B_vatt = co_wvatt[...], co_bvatt[...]
    W_ah, B_a = co_wah[...], co_ba[...]
    W_aatt, B_aatt = co_waatt[...], co_baatt[...]
    W_fc_v, W_fc_a, B_fc = co_wfc_v[...], co_wfc_a[...], co_bfc[...]
    S_wih, S_whh, S_b = sent_wih[...], sent_whh[...], sent_b[...]
    W_hn, B_topic = w_hn[...], b_topic[...]
    W_tc = wtc[...]
    W_s1, B_stop = ws1[...], b_stop[...]
    W_stop, B_st = wstop[...], bstop[...]
    Wd_wih, Wd_whh, Wd_b = word_wih[...], word_whh[...], word_b[...]

    # Hoisted: word-LSTM input projection for every (sentence, timestep).
    xw_gates = (jnp.dot(wordx_ref[...], Wd_wih,
                        preferred_element_type=jnp.float32) + Wd_b)
    # Hoisted: sentence-invariant co-attention terms.
    w_v = jnp.dot(avg, co_wv[...], preferred_element_type=jnp.float32)
    w_a = jnp.dot(sem, co_wa[...], preferred_element_type=jnp.float32)

    hidden = jnp.zeros((B, HIDDEN), jnp.float32)     # hidden_states (prev)
    sh = jnp.zeros((B, HIDDEN), jnp.float32)         # sentence LSTM h
    scs = jnp.zeros((B, HIDDEN), jnp.float32)        # sentence LSTM c

    for s in range(N_SENT):
        # ---- co-attention v4 (softmax over feature axis) ----
        w_v_h = jnp.dot(hidden, W_vh, preferred_element_type=jnp.float32)
        jv = jnp.tanh(w_v + w_v_h + B_v)
        alpha_v = jax.nn.softmax(
            jnp.dot(jv, W_vatt, preferred_element_type=jnp.float32) + B_vatt,
            axis=-1)
        v_att = alpha_v * avg                                       # [B, V]

        w_a_h = jnp.dot(
            rep, jnp.dot(hidden, W_ah, preferred_element_type=jnp.float32),
            preferred_element_type=jnp.float32)                     # [B*K, H]
        ja = jnp.tanh(w_a + w_a_h + B_a)
        alpha_a = jax.nn.softmax(
            jnp.dot(ja, W_aatt, preferred_element_type=jnp.float32) + B_aatt,
            axis=-1)
        a_att = jnp.dot(pool, alpha_a * sem,
                        preferred_element_type=jnp.float32)         # [B, H]

        ctx = (jnp.dot(v_att, W_fc_v, preferred_element_type=jnp.float32)
               + jnp.dot(a_att, W_fc_a, preferred_element_type=jnp.float32)
               + B_fc)                                               # [B, E]

        # ---- sentence LSTM step ----
        gates = (jnp.dot(ctx, S_wih, preferred_element_type=jnp.float32)
                 + jnp.dot(sh, S_whh, preferred_element_type=jnp.float32)
                 + S_b)
        sh, scs = _lstm_update(gates, scs)

        # ---- topic & stop heads (h_new projected once into [B, 2E]) ----
        hn_proj = jnp.dot(sh, W_hn, preferred_element_type=jnp.float32)
        topic = jnp.tanh(hn_proj[:, :EMBED]
                         + jnp.dot(ctx, W_tc, preferred_element_type=jnp.float32)
                         + B_topic)
        tstop = jnp.tanh(jnp.dot(hidden, W_s1,
                                 preferred_element_type=jnp.float32)
                         + hn_proj[:, EMBED:]
                         + B_stop)
        p_stop = (jnp.dot(tstop, W_stop,
                          preferred_element_type=jnp.float32) + B_st)
        pstop_ref[s * B:(s + 1) * B, :] = p_stop

        hidden = sh                           # new hidden_states for next sent

        # ---- word LSTM over [topic, w_0 .. w_{N_WORDS-2}] ----
        wc = jnp.zeros((B, HIDDEN), jnp.float32)
        g0 = jnp.dot(topic, Wd_wih, preferred_element_type=jnp.float32) + Wd_b
        wh, wc = _lstm_update(g0, wc)         # initial state is zero -> no Whh term
        for t in range(N_WORDS - 1):
            row = (s * (N_WORDS - 1) + t) * B
            g = xw_gates[row:row + B, :] + jnp.dot(
                wh, Wd_whh, preferred_element_type=jnp.float32)
            wh, wc = _lstm_update(g, wc)
            hid_sc[row:row + B, :] = wh       # record hidden for this prefix

    # ---- stop cross-entropy: one pass over all sentences ----
    # (reduction='mean' over B per sentence, then /N_SENT  ==  sum/(N_SENT*B))
    p_all = pstop_ref[...]                               # [N_SENT*B, 2]
    nll_stop = _nll(p_all, stop_ref[...])                # [N_SENT*B, 1]
    sloss_ref[...] = jnp.sum(nll_stop, keepdims=True) / (N_SENT * B)

    # ---- single output projection over all recorded hiddens ----
    logits_all = (jnp.dot(hid_sc[...], word_out_w[...],
                          preferred_element_type=jnp.float32) + word_out_b[...])
    logits_ref[...] = logits_all                         # [ROWS, VOCAB]

    # ---- word cross-entropy, fully vectorised ----
    # per (sentence, word_index) group: 0.9**wi * sum(nll*mask)/max(sum(mask),1)
    tgt = cap_ref[...]                                   # [ROWS, 1] int32
    nll = _nll(logits_all, tgt)                          # [ROWS, 1]
    valid = (tgt != 0).astype(jnp.float32)               # ignore_index = 0
    grp = grp_ref[...]                                   # [N_STEPS, ROWS]
    grp_nll = jnp.dot(grp, nll * valid, preferred_element_type=jnp.float32)
    grp_cnt = jnp.dot(grp, valid, preferred_element_type=jnp.float32)
    per_grp = grp_nll / jnp.maximum(grp_cnt, 1.0)        # [N_STEPS, 1]
    wloss = jnp.sum(wts_ref[...] * per_grp, keepdims=True)
    wloss_ref[...] = wloss / (N_SENT * N_WORDS)


# ---------------------------------------------------------------- forward
def coatt_forward(p, images, captions, stops):
    # ---------------- kernel A: extractor + MLC ----------------
    x = images.reshape(B, C_IN, IMG * IMG)
    avg_features, tags = pl.pallas_call(
        _features_kernel,
        out_shape=(jax.ShapeDtypeStruct((B, VISUAL), jnp.float32),
                   jax.ShapeDtypeStruct((B, N_LABELS), jnp.float32)),
        in_specs=[VMEM] * 5,
        out_specs=(VMEM, VMEM),
    )(x, p['ext_w'], p['ext_b'].reshape(1, -1),
      p['mlc_w'], p['mlc_b'].reshape(1, -1))

    # ---------------- glue: top-k tags + embedding gathers ----------------
    _, top_idx = jax.lax.top_k(tags, K_TOP)
    semantic = p['mlc_embed'][top_idx].reshape(B * K_TOP, HIDDEN)   # [B*K, H]

    emb = p['word_embed'][captions[:, :, :N_WORDS - 1]]     # [B,S,W-1,E]
    word_x = jnp.transpose(emb, (1, 2, 0, 3)).reshape(ROWS, EMBED)
    # targets laid out row-aligned with word_x / hid_sc: (s, t, b)-major
    cap_tgt = jnp.transpose(captions[:, :, 1:], (1, 2, 0)).reshape(
        ROWS, 1).astype(jnp.int32)
    stop_tgt = jnp.transpose(stops, (1, 0)).reshape(
        N_SENT * B, 1).astype(jnp.int32)

    rep = jnp.repeat(jnp.eye(B, dtype=jnp.float32), K_TOP, axis=0)  # [B*K, B]
    pool = rep.T                                                    # [B, B*K]

    # group-reduction matrix and 0.9**wi weights for the word loss
    grpmat = jnp.repeat(jnp.eye(N_STEPS, dtype=jnp.float32), B, axis=1)
    wts = jnp.tile(0.9 ** jnp.arange(1, N_WORDS, dtype=jnp.float32),
                   N_SENT).reshape(N_STEPS, 1)

    # wrapper-side layout plumbing: pre-sum biases that are only ever added,
    # concatenate the two heads that consume h_new into one wider matmul.
    inputs = [
        avg_features, semantic, rep, pool, word_x,
        cap_tgt, stop_tgt, grpmat, wts,
        p['co_wv'], p['co_wvh'], (p['co_bv'] + p['co_bvh']).reshape(1, -1),
        p['co_wvatt'], p['co_bvatt'].reshape(1, -1),
        p['co_wa'], p['co_wah'], (p['co_ba'] + p['co_bah']).reshape(1, -1),
        p['co_waatt'], p['co_baatt'].reshape(1, -1),
        p['co_wfc_v'], p['co_wfc_a'], p['co_bfc'].reshape(1, -1),
        p['sent_wih'], p['sent_whh'], p['sent_b'].reshape(1, -1),
        jnp.concatenate([p['wth'], p['ws']], axis=1),               # [H, 2E]
        (p['bth'] + p['btc']).reshape(1, -1),
        p['wtc'], p['ws1'], (p['bs1'] + p['bs']).reshape(1, -1),
        p['wstop'], p['bstop'].reshape(1, -1),
        p['word_wih'], p['word_whh'], p['word_b'].reshape(1, -1),
        p['word_out_w'], p['word_out_b'].reshape(1, -1),
    ]

    out_shapes = (jax.ShapeDtypeStruct((ROWS, VOCAB), jnp.float32),
                  jax.ShapeDtypeStruct((N_SENT * B, 2), jnp.float32),
                  jax.ShapeDtypeStruct((1, 1), jnp.float32),
                  jax.ShapeDtypeStruct((1, 1), jnp.float32))

    # ---------------- kernel B: fused sentence/word recurrence ----------------
    logits_flat, pstop_flat, stop_loss, word_loss = pl.pallas_call(
        _report_kernel,
        out_shape=out_shapes,
        in_specs=[VMEM] * len(inputs),
        out_specs=tuple(VMEM for _ in out_shapes),
        scratch_shapes=[pltpu.VMEM((ROWS, HIDDEN), jnp.float32)],
    )(*inputs)

    # ---------------- glue: reshape outputs to the reference layout ----------
    output_words = jnp.transpose(
        logits_flat.reshape(N_SENT, N_WORDS - 1, B, VOCAB), (2, 0, 1, 3))
    p_stop = pstop_flat.reshape(N_SENT, B, 2)
    output_stops = jnp.transpose(
        jnp.argmax(p_stop, axis=-1), (1, 0)).astype(jnp.int32)
    return (output_words, output_stops, tags,
            stop_loss[0, 0], word_loss[0, 0])


# ---------------------------------------------------------------- params
def init_params(key):
    keys = iter(jax.random.split(key, 64))

    def w(shape, scale=0.08):
        return (scale * jax.random.normal(next(keys), shape)).astype(jnp.float32)

    p = {}
    p['ext_w'] = w((C_IN, VISUAL));          p['ext_b'] = w((VISUAL,))
    p['mlc_w'] = w((VISUAL, N_LABELS));      p['mlc_b'] = w((N_LABELS,))
    p['mlc_embed'] = w((N_LABELS, HIDDEN))
    p['co_wv'] = w((VISUAL, VISUAL));        p['co_bv'] = w((VISUAL,))
    p['co_wvh'] = w((HIDDEN, VISUAL));       p['co_bvh'] = w((VISUAL,))
    p['co_wvatt'] = w((VISUAL, VISUAL));     p['co_bvatt'] = w((VISUAL,))
    p['co_wa'] = w((HIDDEN, HIDDEN));        p['co_ba'] = w((HIDDEN,))
    p['co_wah'] = w((HIDDEN, HIDDEN));       p['co_bah'] = w((HIDDEN,))
    p['co_waatt'] = w((HIDDEN, HIDDEN));     p['co_baatt'] = w((HIDDEN,))
    p['co_wfc_v'] = w((VISUAL, EMBED))
    p['co_wfc_a'] = w((HIDDEN, EMBED));      p['co_bfc'] = w((EMBED,))
    p['sent_wih'] = w((EMBED, 4 * HIDDEN))
    p['sent_whh'] = w((HIDDEN, 4 * HIDDEN)); p['sent_b'] = w((4 * HIDDEN,))
    p['wth'] = w((HIDDEN, EMBED));           p['bth'] = w((EMBED,))
    p['wtc'] = w((EMBED, EMBED));            p['btc'] = w((EMBED,))
    p['ws1'] = w((HIDDEN, EMBED));           p['bs1'] = w((EMBED,))
    p['ws'] = w((HIDDEN, EMBED));            p['bs'] = w((EMBED,))
    p['wstop'] = w((EMBED, 2));              p['bstop'] = w((2,))
    p['word_embed'] = w((VOCAB, EMBED))
    p['word_wih'] = w((EMBED, 4 * HIDDEN))
    p['word_whh'] = w((HIDDEN, 4 * HIDDEN)); p['word_b'] = w((4 * HIDDEN,))
    p['word_out_w'] = w((HIDDEN, VOCAB));    p['word_out_b'] = w((VOCAB,))
    return p


# ---------------------------------------------------------------- main
if __name__ == "__main__":
    root = jax.random.PRNGKey(0)
    k_param, k_img, k_cap, k_stop = jax.random.split(root, 4)

    params = init_params(k_param)
    images = jax.random.normal(k_img, (B, C_IN, IMG, IMG), dtype=jnp.float32)
    captions = jax.random.randint(k_cap, (B, N_SENT, N_WORDS), 1, VOCAB,
                                  dtype=jnp.int32)
    stops = jax.random.randint(k_stop, (B, N_SENT), 0, 2, dtype=jnp.int32)

    fwd = jax.jit(coatt_forward)
    output_words, output_stops, tags, stop_loss, word_loss = fwd(
        params, images, captions, stops)
    jax.block_until_ready((output_words, output_stops, tags,
                           stop_loss, word_loss))

    assert output_words.shape == (B, N_SENT, N_WORDS - 1, VOCAB)
    assert output_stops.shape == (B, N_SENT)
    assert tags.shape == (B, N_LABELS)
    assert stop_loss.shape == () and word_loss.shape == ()
    assert bool(jnp.isfinite(stop_loss)) and bool(jnp.isfinite(word_loss))
    print("KERNEL_OK")
</pallas_src>

<mosaic_0001>
module attributes {stable_mosaic.version = 11 : i64} {
  func.func @_features_kernel(%arg0: memref<2x3x256xf32, #tpu.memory_space<vmem>>, %arg1: memref<3x64xf32, #tpu.memory_space<vmem>>, %arg2: memref<1x64xf32, #tpu.memory_space<vmem>>, %arg3: memref<64x14xf32, #tpu.memory_space<vmem>>, %arg4: memref<1x14xf32, #tpu.memory_space<vmem>>, %arg5: memref<2x64xf32, #tpu.memory_space<vmem>>, %arg6: memref<2x14xf32, #tpu.memory_space<vmem>>) attributes {dimension_semantics = [], scalar_prefetch = 0 : i64, scratch_operands = 0 : i64, tpu.core_type = #tpu.core_type<tc>} {
    %c0 = arith.constant 0 : index
    %c0_0 = arith.constant 0 : index
    %c0_1 = arith.constant 0 : index
    %0 = vector.load %arg0[%c0, %c0_0, %c0_1] : memref<2x3x256xf32, #tpu.memory_space<vmem>>, vector<2x3x256xf32>
    %cst = arith.constant dense<0.000000e+00> : vector<2x3xf32>
    %1 = vector.multi_reduction <add>, %0, %cst [2] : vector<2x3x256xf32> to vector<2x3xf32>
    %cst_2 = arith.constant 2.560000e+02 : f32
    %2 = vector.broadcast %cst_2 : f32 to vector<2x3xf32>
    %3 = arith.divf %1, %2 : vector<2x3xf32>
    %c0_3 = arith.constant 0 : index
    %c0_4 = arith.constant 0 : index
    %4 = vector.load %arg1[%c0_3, %c0_4] : memref<3x64xf32, #tpu.memory_space<vmem>>, vector<3x64xf32>
    %cst_5 = arith.constant dense<0.000000e+00> : vector<2x64xf32>
    %5 = tpu.matmul %3, %4, %cst_5 {dimension_numbers = #tpu.dot_dimension_numbers<[1], [0], [0], [1], [0, 0, 1, 1], [], []>} : vector<2x3xf32>, vector<3x64xf32>, vector<2x64xf32> -> vector<2x64xf32>
    %c0_6 = arith.constant 0 : index
    %c0_7 = arith.constant 0 : index
    %6 = vector.load %arg2[%c0_6, %c0_7] : memref<1x64xf32, #tpu.memory_space<vmem>>, vector<1x64xf32>
    %7 = vector.broadcast %6 : vector<1x64xf32> to vector<2x64xf32>
    %8 = arith.addf %5, %7 : vector<2x64xf32>
    %c0_8 = arith.constant 0 : index
    %c0_9 = arith.constant 0 : index
    %9 = vector.load %arg5[%c0_8, %c0_9] : memref<2x64xf32, #tpu.memory_space<vmem>>, vector<2x64xf32>
    tpu.vector_store %arg5[%c0_8, %c0_9], %8 {strides = array<i32>} : memref<2x64xf32, #tpu.memory_space<vmem>>, vector<2x64xf32>,
    %c0_10 = arith.constant 0 : index
    %c0_11 = arith.constant 0 : index
    %10 = vector.load %arg3[%c0_10, %c0_11] : memref<64x14xf32, #tpu.memory_space<vmem>>, vector<64x14xf32>
    %cst_12 = arith.constant dense<0.000000e+00> : vector<2x14xf32>
    %11 = tpu.matmul %8, %10, %cst_12 {dimension_numbers = #tpu.dot_dimension_numbers<[1], [0], [0], [1], [0, 0, 1, 1], [], []>} : vector<2x64xf32>, vector<64x14xf32>, vector<2x14xf32> -> vector<2x14xf32>
    %c0_13 = arith.constant 0 : index
    %c0_14 = arith.constant 0 : index
    %12 = vector.load %arg4[%c0_13, %c0_14] : memref<1x14xf32, #tpu.memory_space<vmem>>, vector<1x14xf32>
    %13 = vector.broadcast %12 : vector<1x14xf32> to vector<2x14xf32>
    %14 = arith.addf %11, %13 : vector<2x14xf32>
    %cst_15 = arith.constant dense<0xFF800000> : vector<2xf32>
    %15 = vector.multi_reduction <maximumf>, %14, %cst_15 [1] : vector<2x14xf32> to vector<2xf32>
    %cst_16 = arith.constant 0xFF800000 : f32
    %16 = vector.broadcast %cst_16 : f32 to vector<2xf32>
    %17 = arith.maximumf %16, %15 : vector<2xf32>
    %18 = vector.shape_cast %17 : vector<2xf32> to vector<2x1xf32>
    %19 = vector.broadcast %18 : vector<2x1xf32> to vector<2x14xf32>
    %20 = arith.subf %14, %19 : vector<2x14xf32>
    %21 = math.exp %20 : vector<2x14xf32>
    %cst_17 = arith.constant dense<0.000000e+00> : vector<2xf32>
    %22 = vector.multi_reduction <add>, %21, %cst_17 [1] : vector<2x14xf32> to vector<2xf32>
    %23 = vector.shape_cast %22 : vector<2xf32> to vector<2x1xf32>
    %24 = vector.broadcast %23 : vector<2x1xf32> to vector<2x14xf32>
    %25 = arith.divf %21, %24 : vector<2x14xf32>
    %c0_18 = arith.constant 0 : index
    %c0_19 = arith.constant 0 : index
    %26 = vector.load %arg6[%c0_18, %c0_19] : memref<2x14xf32, #tpu.memory_space<vmem>>, vector<2x14xf32>
    tpu.vector_store %arg6[%c0_18, %c0_19], %25 {strides = array<i32>} : memref<2x14xf32, #tpu.memory_space<vmem>>, vector<2x14xf32>,
    return
  }
}

module attributes {stable_mosaic.version = 11 : i64} {
  func.func @_report_kernel(%arg0: memref<2x64xf32, #tpu.memory_space<vmem>>, %arg1: memref<12x32xf32, #tpu.memory_space<vmem>>, %arg2: memref<12x2xf32, #tpu.memory_space<vmem>>, %arg3: memref<2x12xf32, #tpu.memory_space<vmem>>, %arg4: memref<30x32xf32, #tpu.memory_space<vmem>>, %arg5: memref<30x1xi32, #tpu.memory_space<vmem>>, %arg6: memref<6x1xi32, #tpu.memory_space<vmem>>, %arg7: memref<15x30xf32, #tpu.memory_space<vmem>>, %arg8: memref<15x1xf32, #tpu.memory_space<vmem>>, %arg9: memref<64x64xf32, #tpu.memory_space<vmem>>, %arg10: memref<32x64xf32, #tpu.memory_space<vmem>>, %arg11: memref<1x64xf32, #tpu.memory_space<vmem>>, %arg12: memref<64x64xf32, #tpu.memory_space<vmem>>, %arg13: memref<1x64xf32, #tpu.memory_space<vmem>>, %arg14: memref<32x32xf32, #tpu.memory_space<vmem>>, %arg15: memref<32x32xf32, #tpu.memory_space<vmem>>, %arg16: memref<1x32xf32, #tpu.memory_space<vmem>>, %arg17: memref<32x32xf32, #tpu.memory_space<vmem>>, %arg18: memref<1x32xf32, #tpu.memory_space<vmem>>, %arg19: memref<64x32xf32, #tpu.memory_space<vmem>>, %arg20: memref<32x32xf32, #tpu.memory_space<vmem>>, %arg21: memref<1x32xf32, #tpu.memory_space<vmem>>, %arg22: memref<32x128xf32, #tpu.memory_space<vmem>>, %arg23: memref<32x128xf32, #tpu.memory_space<vmem>>, %arg24: memref<1x128xf32, #tpu.memory_space<vmem>>, %arg25: memref<32x64xf32, #tpu.memory_space<vmem>>, %arg26: memref<1x32xf32, #tpu.memory_space<vmem>>, %arg27: memref<32x32xf32, #tpu.memory_space<vmem>>, %arg28: memref<32x32xf32, #tpu.memory_space<vmem>>, %arg29: memref<1x32xf32, #tpu.memory_space<vmem>>, %arg30: memref<32x2xf32, #tpu.memory_space<vmem>>, %arg31: memref<1x2xf32, #tpu.memory_space<vmem>>, %arg32: memref<32x128xf32, #tpu.memory_space<vmem>>, %arg33: memref<32x128xf32, #tpu.memory_space<vmem>>, %arg34: memref<1x128xf32, #tpu.memory_space<vmem>>, %arg35: memref<32x20xf32, #tpu.memory_space<vmem>>, %arg36: memref<1x20xf32, #tpu.memory_space<vmem>>, %arg37: memref<30x20xf32, #tpu.memory_space<vmem>>, %arg38: memref<6x2xf32, #tpu.memory_space<vmem>>, %arg39: memref<1x1xf32, #tpu.memory_space<vmem>>, %arg40: memref<1x1xf32, #tpu.memory_space<vmem>>, %arg41: memref<30x32xf32, #tpu.memory_space<vmem>>) attributes {dimension_semantics = [], scalar_prefetch = 0 : i64, scratch_operands = 1 : i64, tpu.core_type = #tpu.core_type<tc>} {
    %c0 = arith.constant 0 : index
    %c0_0 = arith.constant 0 : index
    %0 = vector.load %arg0[%c0, %c0_0] : memref<2x64xf32, #tpu.memory_space<vmem>>, vector<2x64xf32>
    %c0_1 = arith.constant 0 : index
    %c0_2 = arith.constant 0 : index
    %1 = vector.load %arg1[%c0_1, %c0_2] : memref<12x32xf32, #tpu.memory_space<vmem>>, vector<12x32xf32>
    %c0_3 = arith.constant 0 : index
    %c0_4 = arith.constant 0 : index
    %2 = vector.load %arg2[%c0_3, %c0_4] : memref<12x2xf32, #tpu.memory_space<vmem>>, vector<12x2xf32>
    %c0_5 = arith.constant 0 : index
    %c0_6 = arith.constant 0 : index
    %3 = vector.load %arg3[%c0_5, %c0_6] : memref<2x12xf32, #tpu.memory_space<vmem>>, vector<2x12xf32>
    %c0_7 = arith.constant 0 : index
    %c0_8 = arith.constant 0 : index
    %4 = vector.load %arg10[%c0_7, %c0_8] : memref<32x64xf32, #tpu.memory_space<vmem>>, vector<32x64xf32>
    %c0_9 = arith.constant 0 : index
    %c0_10 = arith.constant 0 : index
    %5 = vector.load %arg11[%c0_9, %c0_10] : memref<1x64xf32, #tpu.memory_space<vmem>>, vector<1x64xf32>
    %c0_11 = arith.constant 0 : index
    %c0_12 = arith.constant 0 : index
    %6 = vector.load %arg12[%c0_11, %c0_12] : memref<64x64xf32, #tpu.memory_space<vmem>>, vector<64x64xf32>
    %c0_13 = arith.constant 0 : index
    %c0_14 = arith.constant 0 : index
    %7 = vector.load %arg13[%c0_13, %c0_14] : memref<1x64xf32, #tpu.memory_space<vmem>>, vector<1x64xf32>
    %c0_15 = arith.constant 0 : index
    %c0_16 = arith.constant 0 : index
    %8 = vector.load %arg15[%c0_15, %c0_16] : memref<32x32xf32, #tpu.memory_space<vmem>>, vector<32x32xf32>
    %c0_17 = arith.constant 0 : index
    %c0_18 = arith.constant 0 : index
    %9 = vector.load %arg16[%c0_17, %c0_18] : memref<1x32xf32, #tpu.memory_space<vmem>>, vector<1x32xf32>
    %c0_19 = arith.constant 0 : index
    %c0_20 = arith.constant 0 : index
    %10 = vector.load %arg17[%c0_19, %c0_20] : memref<32x32xf32, #tpu.memory_space<vmem>>, vector<32x32xf32>
    %c0_21 = arith.constant 0 : index
    %c0_22 = arith.constant 0 : index
    %11 = vector.load %arg18[%c0_21, %c0_22] : memref<1x32xf32, #tpu.memory_space<vmem>>, vector<1x32xf32>
    %c0_23 = arith.constant 0 : index
    %c0_24 = arith.constant 0 : index
    %12 = vector.load %arg19[%c0_23, %c0_24] : memref<64x32xf32, #tpu.memory_space<vmem>>, vector<64x32xf32>
    %c0_25 = arith.constant 0 : index
    %c0_26 = arith.constant 0 : index
    %13 = vector.load %arg20[%c0_25, %c0_26] : memref<32x32xf32, #tpu.memory_space<vmem>>, vector<32x32xf32>
    %c0_27 = arith.constant 0 : index
    %c0_28 = arith.constant 0 : index
    %14 = vector.load %arg21[%c0_27, %c0_28] : memref<1x32xf32, #tpu.memory_space<vmem>>, vector<1x32xf32>
    %c0_29 = arith.constant 0 : index
    %c0_30 = arith.constant 0 : index
    %15 = vector.load %arg22[%c0_29, %c0_30] : memref<32x128xf32, #tpu.memory_space<vmem>>, vector<32x128xf32>
    %c0_31 = arith.constant 0 : index
    %c0_32 = arith.constant 0 : index
    %16 = vector.load %arg23[%c0_31, %c0_32] : memref<32x128xf32, #tpu.memory_space<vmem>>, vector<32x128xf32>
    %c0_33 = arith.constant 0 : index
    %c0_34 = arith.constant 0 : index
    %17 = vector.load %arg24[%c0_33, %c0_34] : memref<1x128xf32, #tpu.memory_space<vmem>>, vector<1x128xf32>
    %c0_35 = arith.constant 0 : index
    %c0_36 = arith.constant 0 : index
    %18 = vector.load %arg25[%c0_35, %c0_36] : memref<32x64xf32, #tpu.memory_space<vmem>>, vector<32x64xf32>
    %c0_37 = arith.constant 0 : index
    %c0_38 = arith.constant 0 : index
    %19 = vector.load %arg26[%c0_37, %c0_38] : memref<1x32xf32, #tpu.memory_space<vmem>>, vector<1x32xf32>
    %c0_39 = arith.constant 0 : index
    %c0_40 = arith.constant 0 : index
    %20 = vector.load %arg27[%c0_39, %c0_40] : memref<32x32xf32, #tpu.memory_space<vmem>>, vector<32x32xf32>
    %c0_41 = arith.constant 0 : index
    %c0_42 = arith.constant 0 : index
    %21 = vector.load %arg28[%c0_41, %c0_42] : memref<32x32xf32, #tpu.memory_space<vmem>>, vector<32x32xf32>
    %c0_43 = arith.constant 0 : index
    %c0_44 = arith.constant 0 : index
    %22 = vector.load %arg29[%c0_43, %c0_44] : memref<1x32xf32, #tpu.memory_space<vmem>>, vector<1x32xf32>
    %c0_45 = arith.constant 0 : index
    %c0_46 = arith.constant 0 : index
    %23 = vector.load %arg30[%c0_45, %c0_46] : memref<32x2xf32, #tpu.memory_space<vmem>>, vector<32x2xf32>
    %c0_47 = arith.constant 0 : index
    %c0_48 = arith.constant 0 : index
    %24 = vector.load %arg31[%c0_47, %c0_48] : memref<1x2xf32, #tpu.memory_space<vmem>>, vector<1x2xf32>
    %c0_49 = arith.constant 0 : index
    %c0_50 = arith.constant 0 : index
    %25 = vector.load %arg32[%c0_49, %c0_50] : memref<32x128xf32, #tpu.memory_space<vmem>>, vector<32x128xf32>
    %c0_51 = arith.constant 0 : index
    %c0_52 = arith.constant 0 : index
    %26 = vector.load %arg33[%c0_51, %c0_52] : memref<32x128xf32, #tpu.memory_space<vmem>>, vector<32x128xf32>
    %c0_53 = arith.constant 0 : index
    %c0_54 = arith.constant 0 : index
    %27 = vector.load %arg34[%c0_53, %c0_54] : memref<1x128xf32, #tpu.memory_space<vmem>>, vector<1x128xf32>
    %c0_55 = arith.constant 0 : index
    %c0_56 = arith.constant 0 : index
    %28 = vector.load %arg4[%c0_55, %c0_56] : memref<30x32xf32, #tpu.memory_space<vmem>>, vector<30x32xf32>
    %cst = arith.constant dense<0.000000e+00> : vector<30x128xf32>
    %29 = tpu.matmul %28, %25, %cst {dimension_numbers = #tpu.dot_dimension_numbers<[1], [0], [0], [1], [0, 0, 1, 1], [], []>} : vector<30x32xf32>, vector<32x128xf32>, vector<30x128xf32> -> vector<30x128xf32>
    %30 = vector.broadcast %27 : vector<1x128xf32> to vector<30x128xf32>
    %31 = arith.addf %29, %30 : vector<30x128xf32>
    %c0_57 = arith.constant 0 : index
    %c0_58 = arith.constant 0 : index
    %32 = vector.load %arg9[%c0_57, %c0_58] : memref<64x64xf32, #tpu.memory_space<vmem>>, vector<64x64xf32>
    %cst_59 = arith.constant dense<0.000000e+00> : vector<2x64xf32>
    %33 = tpu.matmul %0, %32, %cst_59 {dimension_numbers = #tpu.dot_dimension_numbers<[1], [0], [0], [1], [0, 0, 1, 1], [], []>} : vector<2x64xf32>, vector<64x64xf32>, vector<2x64xf32> -> vector<2x64xf32>
    %c0_60 = arith.constant 0 : index
    %c0_61 = arith.constant 0 : index
    %34 = vector.load %arg14[%c0_60, %c0_61] : memref<32x32xf32, #tpu.memory_space<vmem>>, vector<32x32xf32>
    %cst_62 = arith.constant dense<0.000000e+00> : vector<12x32xf32>
    %35 = tpu.matmul %1, %34, %cst_62 {dimension_numbers = #tpu.dot_dimension_numbers<[1], [0], [0], [1], [0, 0, 1, 1], [], []>} : vector<12x32xf32>, vector<32x32xf32>, vector<12x32xf32> -> vector<12x32xf32>
    %cst_63 = arith.constant 0.000000e+00 : f32
    %36 = vector.broadcast %cst_63 : f32 to vector<2x32xf32>
    %cst_64 = arith.constant 0.000000e+00 : f32
    %37 = vector.broadcast %cst_64 : f32 to vector<2x32xf32>
    %cst_65 = arith.constant 0.000000e+00 : f32
    %38 = vector.broadcast %cst_65 : f32 to vector<2x32xf32>
    %cst_66 = arith.constant dense<0.000000e+00> : vector<2x64xf32>
    %39 = tpu.matmul %36, %4, %cst_66 {dimension_numbers = #tpu.dot_dimension_numbers<[1], [0], [0], [1], [0, 0, 1, 1], [], []>} : vector<2x32xf32>, vector<32x64xf32>, vector<2x64xf32> -> vector<2x64xf32>
    %40 = arith.addf %33, %39 : vector<2x64xf32>
    %41 = vector.broadcast %5 : vector<1x64xf32> to vector<2x64xf32>
    %42 = arith.addf %40, %41 : vector<2x64xf32>
    %43 = math.tanh %42 : vector<2x64xf32>
    %cst_67 = arith.constant dense<0.000000e+00> : vector<2x64xf32>
    %44 = tpu.matmul %43, %6, %cst_67 {dimension_numbers = #tpu.dot_dimension_numbers<[1], [0], [0], [1], [0, 0, 1, 1], [], []>} : vector<2x64xf32>, vector<64x64xf32>, vector<2x64xf32> -> vector<2x64xf32>
    %45 = vector.broadcast %7 : vector<1x64xf32> to vector<2x64xf32>
    %46 = arith.addf %44, %45 : vector<2x64xf32>
    %cst_68 = arith.constant dense<0xFF800000> : vector<2xf32>
    %47 = vector.multi_reduction <maximumf>, %46, %cst_68 [1] : vector<2x64xf32> to vector<2xf32>
    %cst_69 = arith.constant 0xFF800000 : f32
    %48 = vector.broadcast %cst_69 : f32 to vector<2xf32>
    %49 = arith.maximumf %48, %47 : vector<2xf32>
    %50 = vector.shape_cast %49 : vector<2xf32> to vector<2x1xf32>
    %51 = vector.broadcast %50 : vector<2x1xf32> to vector<2x64xf32>
    %52 = arith.subf %46, %51 : vector<2x64xf32>
    %53 = math.exp %52 : vector<2x64xf32>
    %cst_70 = arith.constant dense<0.000000e+00> : vector<2xf32>
    %54 = vector.multi_reduction <add>, %53, %cst_70 [1] : vector<2x64xf32> to vector<2xf32>
    %55 = vector.shape_cast %54 : vector<2xf32> to vector<2x1xf32>
    %56 = vector.broadcast %55 : vector<2x1xf32> to vector<2x64xf32>
    %57 = arith.divf %53, %56 : vector<2x64xf32>
    %58 = arith.mulf %57, %0 : vector<2x64xf32>
    %cst_71 = arith.constant dense<0.000000e+00> : vector<2x32xf32>
    %59 = tpu.matmul %36, %8, %cst_71 {dimension_numbers = #tpu.dot_dimension_numbers<[1], [0], [0], [1], [0, 0, 1, 1], [], []>} : vector<2x32xf32>, vector<32x32xf32>, vector<2x32xf32> -> vector<2x32xf32>
    %cst_72 = arith.constant dense<0.000000e+00> : vector<12x32xf32>
    %60 = tpu.matmul %2, %59, %cst_72 {dimension_numbers = #tpu.dot_dimension_numbers<[1], [0], [0], [1], [0, 0, 1, 1], [], []>} : vector<12x2xf32>, vector<2x32xf32>, vector<12x32xf32> -> vector<12x32xf32>
    %61 = arith.addf %35, %60 : vector<12x32xf32>
    %62 = vector.broadcast %9 : vector<1x32xf32> to vector<12x32xf32>
    %63 = arith.addf %61, %62 : vector<12x32xf32>
    %64 = math.tanh %63 : vector<12x32xf32>
    %cst_73 = arith.constant dense<0.000000e+00> : vector<12x32xf32>
    %65 = tpu.matmul %64, %10, %cst_73 {dimension_numbers = #tpu.dot_dimension_numbers<[1], [0], [0], [1], [0, 0, 1, 1], [], []>} : vector<12x32xf32>, vector<32x32xf32>, vector<12x32xf32> -> vector<12x32xf32>
    %66 = vector.broadcast %11 : vector<1x32xf32> to vector<12x32xf32>
    %67 = arith.addf %65, %66 : vector<12x32xf32>
    %cst_74 = arith.constant dense<0xFF800000> : vector<12xf32>
    %68 = vector.multi_reduction <maximumf>, %67, %cst_74 [1] : vector<12x32xf32> to vector<12xf32>
    %cst_75 = arith.constant 0xFF800000 : f32
    %69 = vector.broadcast %cst_75 : f32 to vector<12xf32>
    %70 = arith.maximumf %69, %68 : vector<12xf32>
    %71 = vector.shape_cast %70 : vector<12xf32> to vector<12x1xf32>
    %72 = vector.broadcast %71 : vector<12x1xf32> to vector<12x32xf32>
    %73 = arith.subf %67, %72 : vector<12x32xf32>
    %74 = math.exp %73 : vector<12x32xf32>
    %cst_76 = arith.constant dense<0.000000e+00> : vector<12xf32>
    %75 = vector.multi_reduction <add>, %74, %cst_76 [1] : vector<12x32xf32> to vector<12xf32>
    %76 = vector.shape_cast %75 : vector<12xf32> to vector<12x1xf32>
    %77 = vector.broadcast %76 : vector<12x1xf32> to vector<12x32xf32>
    %78 = arith.divf %74, %77 : vector<12x32xf32>
    %79 = arith.mulf %78, %1 : vector<12x32xf32>
    %cst_77 = arith.constant dense<0.000000e+00> : vector<2x32xf32>
    %80 = tpu.matmul %3, %79, %cst_77 {dimension_numbers = #tpu.dot_dimension_numbers<[1], [0], [0], [1], [0, 0, 1, 1], [], []>} : vector<2x12xf32>, vector<12x32xf32>, vector<2x32xf32> -> vector<2x32xf32>
    %cst_78 = arith.constant dense<0.000000e+00> : vector<2x32xf32>
    %81 = tpu.matmul %58, %12, %cst_78 {dimension_numbers = #tpu.dot_dimension_numbers<[1], [0], [0], [1], [0, 0, 1, 1], [], []>} : vector<2x64xf32>, vector<64x32xf32>, vector<2x32xf32> -> vector<2x32xf32>
    %cst_79 = arith.constant dense<0.000000e+00> : vector<2x32xf32>
    %82 = tpu.matmul %80, %13, %cst_79 {dimension_numbers = #tpu.dot_dimension_numbers<[1], [0], [0], [1], [0, 0, 1, 1], [], []>} : vector<2x32xf32>, vector<32x32xf32>, vector<2x32xf32> -> vector<2x32xf32>
    %83 = arith.addf %81, %82 : vector<2x32xf32>
    %84 = vector.broadcast %14 : vector<1x32xf32> to vector<2x32xf32>
    %85 = arith.addf %83, %84 : vector<2x32xf32>
    %cst_80 = arith.constant dense<0.000000e+00> : vector<2x128xf32>
    %86 = tpu.matmul %85, %15, %cst_80 {dimension_numbers = #tpu.dot_dimension_numbers<[1], [0], [0], [1], [0, 0, 1, 1], [], []>} : vector<2x32xf32>, vector<32x128xf32>, vector<2x128xf32> -> vector<2x128xf32>
    %cst_81 = arith.constant dense<0.000000e+00> : vector<2x128xf32>
    %87 = tpu.matmul %37, %16, %cst_81 {dimension_numbers = #tpu.dot_dimension_numbers<[1], [0], [0], [1], [0, 0, 1, 1], [], []>} : vector<2x32xf32>, vector<32x128xf32>, vector<2x128xf32> -> vector<2x128xf32>
    %88 = arith.addf %86, %87 : vector<2x128xf32>
    %89 = vector.broadcast %17 : vector<1x128xf32> to vector<2x128xf32>
    %90 = arith.addf %88, %89 : vector<2x128xf32>
    %91 = arith.negf %90 : vector<2x128xf32>
    %92 = math.exp %91 : vector<2x128xf32>
    %cst_82 = arith.constant 1.000000e+00 : f32
    %93 = vector.broadcast %cst_82 : f32 to vector<2x128xf32>
    %94 = arith.addf %93, %92 : vector<2x128xf32>
    %95 = arith.divf %93, %94 : vector<2x128xf32>
    %96 = math.tanh %90 : vector<2x128xf32>
    %97 = vector.extract_strided_slice %95 {offsets = [0, 0], sizes = [2, 32], strides = [1, 1]} : vector<2x128xf32> to vector<2x32xf32>
    %98 = vector.extract_strided_slice %95 {offsets = [0, 32], sizes = [2, 32], strides = [1, 1]} : vector<2x128xf32> to vector<2x32xf32>
    %99 = vector.extract_strided_slice %96 {offsets = [0, 64], sizes = [2, 32], strides = [1, 1]} : vector<2x128xf32> to vector<2x32xf32>
    %100 = vector.extract_strided_slice %95 {offsets = [0, 96], sizes = [2, 32], strides = [1, 1]} : vector<2x128xf32> to vector<2x32xf32>
    %101 = arith.mulf %98, %38 : vector<2x32xf32>
    %102 = arith.mulf %97, %99 : vector<2x32xf32>
    %103 = arith.addf %101, %102 : vector<2x32xf32>
    %104 = math.tanh %103 : vector<2x32xf32>
    %105 = arith.mulf %100, %104 : vector<2x32xf32>
    %cst_83 = arith.constant dense<0.000000e+00> : vector<2x64xf32>
    %106 = tpu.matmul %105, %18, %cst_83 {dimension_numbers = #tpu.dot_dimension_numbers<[1], [0], [0], [1], [0, 0, 1, 1], [], []>} : vector<2x32xf32>, vector<32x64xf32>, vector<2x64xf32> -> vector<2x64xf32>
    %107 = vector.extract_strided_slice %106 {offsets = [0, 0], sizes = [2, 32], strides = [1, 1]} : vector<2x64xf32> to vector<2x32xf32>
    %cst_84 = arith.constant dense<0.000000e+00> : vector<2x32xf32>
    %108 = tpu.matmul %85, %20, %cst_84 {dimension_numbers = #tpu.dot_dimension_numbers<[1], [0], [0], [1], [0, 0, 1, 1], [], []>} : vector<2x32xf32>, vector<32x32xf32>, vector<2x32xf32> -> vector<2x32xf32>
    %109 = arith.addf %107, %108 : vector<2x32xf32>
    %110 = vector.broadcast %19 : vector<1x32xf32> to vector<2x32xf32>
    %111 = arith.addf %109, %110 : vector<2x32xf32>
    %112 = math.tanh %111 : vector<2x32xf32>
    %cst_85 = arith.constant dense<0.000000e+00> : vector<2x32xf32>
    %113 = tpu.matmul %36, %21, %cst_85 {dimension_numbers = #tpu.dot_dimension_numbers<[1], [0], [0], [1], [0, 0, 1, 1], [], []>} : vector<2x32xf32>, vector<32x32xf32>, vector<2x32xf32> -> vector<2x32xf32>
    %114 = vector.extract_strided_slice %106 {offsets = [0, 32], sizes = [2, 32], strides = [1, 1]} : vector<2x64xf32> to vector<2x32xf32>
    %115 = arith.addf %113, %114 : vector<2x32xf32>
    %116 = vector.broadcast %22 : vector<1x32xf32> to vector<2x32xf32>
    %117 = arith.addf %115, %116 : vector<2x32xf32>
    %118 = math.tanh %117 : vector<2x32xf32>
    %cst_86 = arith.constant dense<0.000000e+00> : vector<2x2xf32>
    %119 = tpu.matmul %118, %23, %cst_86 {dimension_numbers = #tpu.dot_dimension_numbers<[1], [0], [0], [1], [0, 0, 1, 1], [], []>} : vector<2x32xf32>, vector<32x2xf32>, vector<2x2xf32> -> vector<2x2xf32>
    %120 = vector.broadcast %24 : vector<1x2xf32> to vector<2x2xf32>
    %121 = arith.addf %119, %120 : vector<2x2xf32>
    %c0_87 = arith.constant 0 : index
    %c0_88 = arith.constant 0 : index
    %122 = vector.load %arg38[%c0_87, %c0_88] : memref<6x2xf32, #tpu.memory_space<vmem>>, vector<2x2xf32>
    tpu.vector_store %arg38[%c0_87, %c0_88], %121 {strides = array<i32>} : memref<6x2xf32, #tpu.memory_space<vmem>>, vector<2x2xf32>,
    %cst_89 = arith.constant 0.000000e+00 : f32
    %123 = vector.broadcast %cst_89 : f32 to vector<2x32xf32>
    %cst_90 = arith.constant dense<0.000000e+00> : vector<2x128xf32>
    %124 = tpu.matmul %112, %25, %cst_90 {dimension_numbers = #tpu.dot_dimension_numbers<[1], [0], [0], [1], [0, 0, 1, 1], [], []>} : vector<2x32xf32>, vector<32x128xf32>, vector<2x128xf32> -> vector<2x128xf32>
    %125 = vector.broadcast %27 : vector<1x128xf32> to vector<2x128xf32>
    %126 = arith.addf %124, %125 : vector<2x128xf32>
    %127 = arith.negf %126 : vector<2x128xf32>
    %128 = math.exp %127 : vector<2x128xf32>
    %cst_91 = arith.constant 1.000000e+00 : f32
    %129 = vector.broadcast %cst_91 : f32 to vector<2x128xf32>
    %130 = arith.addf %129, %128 : vector<2x128xf32>
    %131 = arith.divf %129, %130 : vector<2x128xf32>
    %132 = math.tanh %126 : vector<2x128xf32>
    %133 = vector.extract_strided_slice %131 {offsets = [0, 0], sizes = [2, 32], strides = [1, 1]} : vector<2x128xf32> to vector<2x32xf32>
    %134 = vector.extract_strided_slice %131 {offsets = [0, 32], sizes = [2, 32], strides = [1, 1]} : vector<2x128xf32> to vector<2x32xf32>
    %135 = vector.extract_strided_slice %132 {offsets = [0, 64], sizes = [2, 32], strides = [1, 1]} : vector<2x128xf32> to vector<2x32xf32>
    %136 = vector.extract_strided_slice %131 {offsets = [0, 96], sizes = [2, 32], strides = [1, 1]} : vector<2x128xf32> to vector<2x32xf32>
    %137 = arith.mulf %134, %123 : vector<2x32xf32>
    %138 = arith.mulf %133, %135 : vector<2x32xf32>
    %139 = arith.addf %137, %138 : vector<2x32xf32>
    %140 = math.tanh %139 : vector<2x32xf32>
    %141 = arith.mulf %136, %140 : vector<2x32xf32>
    %142 = vector.extract_strided_slice %31 {offsets = [0, 0], sizes = [2, 128], strides = [1, 1]} : vector<30x128xf32> to vector<2x128xf32>
    %cst_92 = arith.constant dense<0.000000e+00> : vector<2x128xf32>
    %143 = tpu.matmul %141, %26, %cst_92 {dimension_numbers = #tpu.dot_dimension_numbers<[1], [0], [0], [1], [0, 0, 1, 1], [], []>} : vector<2x32xf32>, vector<32x128xf32>, vector<2x128xf32> -> vector<2x128xf32>
    %144 = arith.addf %142, %143 : vector<2x128xf32>
    %145 = arith.negf %144 : vector<2x128xf32>
    %146 = math.exp %145 : vector<2x128xf32>
    %cst_93 = arith.constant 1.000000e+00 : f32
    %147 = vector.broadcast %cst_93 : f32 to vector<2x128xf32>
    %148 = arith.addf %147, %146 : vector<2x128xf32>
    %149 = arith.divf %147, %148 : vector<2x128xf32>
    %150 = math.tanh %144 : vector<2x128xf32>
    %151 = vector.extract_strided_slice %149 {offsets = [0, 0], sizes = [2, 32], strides = [1, 1]} : vector<2x128xf32> to vector<2x32xf32>
    %152 = vector.extract_strided_slice %149 {offsets = [0, 32], sizes = [2, 32], strides = [1, 1]} : vector<2x128xf32> to vector<2x32xf32>
    %153 = vector.extract_strided_slice %150 {offsets = [0, 64], sizes = [2, 32], strides = [1, 1]} : vector<2x128xf32> to vector<2x32xf32>
    %154 = vector.extract_strided_slice %149 {offsets = [0, 96], sizes = [2, 32], strides = [1, 1]} : vector<2x128xf32> to vector<2x32xf32>
    %155 = arith.mulf %152, %139 : vector<2x32xf32>
    %156 = arith.mulf %151, %153 : vector<2x32xf32>
    %157 = arith.addf %155, %156 : vector<2x32xf32>
    %158 = math.tanh %157 : vector<2x32xf32>
    %159 = arith.mulf %154, %158 : vector<2x32xf32>
    %c0_94 = arith.constant 0 : index
    %c0_95 = arith.constant 0 : index
    %160 = vector.load %arg41[%c0_94, %c0_95] : memref<30x32xf32, #tpu.memory_space<vmem>>, vector<2x32xf32>
    tpu.vector_store %arg41[%c0_94, %c0_95], %159 {strides = array<i32>} : memref<30x32xf32, #tpu.memory_space<vmem>>, vector<2x32xf32>,
    %161 = vector.extract_strided_slice %31 {offsets = [2, 0], sizes = [2, 128], strides = [1, 1]} : vector<30x128xf32> to vector<2x128xf32>
    %cst_96 = arith.constant dense<0.000000e+00> : vector<2x128xf32>
    %162 = tpu.matmul %159, %26, %cst_96 {dimension_numbers = #tpu.dot_dimension_numbers<[1], [0], [0], [1], [0, 0, 1, 1], [], []>} : vector<2x32xf32>, vector<32x128xf32>, vector<2x128xf32> -> vector<2x128xf32>
    %163 = arith.addf %161, %162 : vector<2x128xf32>
    %164 = arith.negf %163 : vector<2x128xf32>
    %165 = math.exp %164 : vector<2x128xf32>
    %cst_97 = arith.constant 1.000000e+00 : f32
    %166 = vector.broadcast %cst_97 : f32 to vector<2x128xf32>
    %167 = arith.addf %166, %165 : vector<2x128xf32>
    %168 = arith.divf %166, %167 : vector<2x128xf32>
    %169 = math.tanh %163 : vector<2x128xf32>
    %170 = vector.extract_strided_slice %168 {offsets = [0, 0], sizes = [2, 32], strides = [1, 1]} : vector<2x128xf32> to vector<2x32xf32>
    %171 = vector.extract_strided_slice %168 {offsets = [0, 32], sizes = [2, 32], strides = [1, 1]} : vector<2x128xf32> to vector<2x32xf32>
    %172 = vector.extract_strided_slice %169 {offsets = [0, 64], sizes = [2, 32], strides = [1, 1]} : vector<2x128xf32> to vector<2x32xf32>
    %173 = vector.extract_strided_slice %168 {offsets = [0, 96], sizes = [2, 32], strides = [1, 1]} : vector<2x128xf32> to vector<2x32xf32>
    %174 = arith.mulf %171, %157 : vector<2x32xf32>
    %175 = arith.mulf %170, %172 : vector<2x32xf32>
    %176 = arith.addf %174, %175 : vector<2x32xf32>
    %177 = math.tanh %176 : vector<2x32xf32>
    %178 = arith.mulf %173, %177 : vector<2x32xf32>
    %c2 = arith.constant 2 : index
    %c0_98 = arith.constant 0 : index
    %179 = vector.load %arg41[%c2, %c0_98] : memref<30x32xf32, #tpu.memory_space<vmem>>, vector<2x32xf32>
    tpu.vector_store %arg41[%c2, %c0_98], %178 {strides = array<i32>} : memref<30x32xf32, #tpu.memory_space<vmem>>, vector<2x32xf32>,
    %180 = vector.extract_strided_slice %31 {offsets = [4, 0], sizes = [2, 128], strides = [1, 1]} : vector<30x128xf32> to vector<2x128xf32>
    %cst_99 = arith.constant dense<0.000000e+00> : vector<2x128xf32>
    %181 = tpu.matmul %178, %26, %cst_99 {dimension_numbers = #tpu.dot_dimension_numbers<[1], [0], [0], [1], [0, 0, 1, 1], [], []>} : vector<2x32xf32>, vector<32x128xf32>, vector<2x128xf32> -> vector<2x128xf32>
    %182 = arith.addf %180, %181 : vector<2x128xf32>
    %183 = arith.negf %182 : vector<2x128xf32>
    %184 = math.exp %183 : vector<2x128xf32>
    %cst_100 = arith.constant 1.000000e+00 : f32
    %185 = vector.broadcast %cst_100 : f32 to vector<2x128xf32>
    %186 = arith.addf %185, %184 : vector<2x128xf32>
    %187 = arith.divf %185, %186 : vector<2x128xf32>
    %188 = math.tanh %182 : vector<2x128xf32>
    %189 = vector.extract_strided_slice %187 {offsets = [0, 0], sizes = [2, 32], strides = [1, 1]} : vector<2x128xf32> to vector<2x32xf32>
    %190 = vector.extract_strided_slice %187 {offsets = [0, 32], sizes = [2, 32], strides = [1, 1]} : vector<2x128xf32> to vector<2x32xf32>
    %191 = vector.extract_strided_slice %188 {offsets = [0, 64], sizes = [2, 32], strides = [1, 1]} : vector<2x128xf32> to vector<2x32xf32>
    %192 = vector.extract_strided_slice %187 {offsets = [0, 96], sizes = [2, 32], strides = [1, 1]} : vector<2x128xf32> to vector<2x32xf32>
    %193 = arith.mulf %190, %176 : vector<2x32xf32>
    %194 = arith.mulf %189, %191 : vector<2x32xf32>
    %195 = arith.addf %193, %194 : vector<2x32xf32>
    %196 = math.tanh %195 : vector<2x32xf32>
    %197 = arith.mulf %192, %196 : vector<2x32xf32>
    %c4 = arith.constant 4 : index
    %c0_101 = arith.constant 0 : index
    %198 = vector.load %arg41[%c4, %c0_101] : memref<30x32xf32, #tpu.memory_space<vmem>>, vector<2x32xf32>
    tpu.vector_store %arg41[%c4, %c0_101], %197 {strides = array<i32>} : memref<30x32xf32, #tpu.memory_space<vmem>>, vector<2x32xf32>,
    %199 = vector.extract_strided_slice %31 {offsets = [6, 0], sizes = [2, 128], strides = [1, 1]} : vector<30x128xf32> to vector<2x128xf32>
    %cst_102 = arith.constant dense<0.000000e+00> : vector<2x128xf32>
    %200 = tpu.matmul %197, %26, %cst_102 {dimension_numbers = #tpu.dot_dimension_numbers<[1], [0], [0], [1], [0, 0, 1, 1], [], []>} : vector<2x32xf32>, vector<32x128xf32>, vector<2x128xf32> -> vector<2x128xf32>
    %201 = arith.addf %199, %200 : vector<2x128xf32>
    %202 = arith.negf %201 : vector<2x128xf32>
    %203 = math.exp %202 : vector<2x128xf32>
    %cst_103 = arith.constant 1.000000e+00 : f32
    %204 = vector.broadcast %cst_103 : f32 to vector<2x128xf32>
    %205 = arith.addf %204, %203 : vector<2x128xf32>
    %206 = arith.divf %204, %205 : vector<2x128xf32>
    %207 = math.tanh %201 : vector<2x128xf32>
    %208 = vector.extract_strided_slice %206 {offsets = [0, 0], sizes = [2, 32], strides = [1, 1]} : vector<2x128xf32> to vector<2x32xf32>
    %209 = vector.extract_strided_slice %206 {offsets = [0, 32], sizes = [2, 32], strides = [1, 1]} : vector<2x128xf32> to vector<2x32xf32>
    %210 = vector.extract_strided_slice %207 {offsets = [0, 64], sizes = [2, 32], strides = [1, 1]} : vector<2x128xf32> to vector<2x32xf32>
    %211 = vector.extract_strided_slice %206 {offsets = [0, 96], sizes = [2, 32], strides = [1, 1]} : vector<2x128xf32> to vector<2x32xf32>
    %212 = arith.mulf %209, %195 : vector<2x32xf32>
    %213 = arith.mulf %208, %210 : vector<2x32xf32>
    %214 = arith.addf %212, %213 : vector<2x32xf32>
    %215 = math.tanh %214 : vector<2x32xf32>
    %216 = arith.mulf %211, %215 : vector<2x32xf32>
    %c6 = arith.constant 6 : index
    %c0_104 = arith.constant 0 : index
    %217 = vector.load %arg41[%c6, %c0_104] : memref<30x32xf32, #tpu.memory_space<vmem>>, vector<2x32xf32>
    tpu.vector_store %arg41[%c6, %c0_104], %216 {strides = array<i32>} : memref<30x32xf32, #tpu.memory_space<vmem>>, vector<2x32xf32>,
    %218 = vector.extract_strided_slice %31 {offsets = [8, 0], sizes = [2, 128], strides = [1, 1]} : vector<30x128xf32> to vector<2x128xf32>
    %cst_105 = arith.constant dense<0.000000e+00> : vector<2x128xf32>
    %219 = tpu.matmul %216, %26, %cst_105 {dimension_numbers = #tpu.dot_dimension_numbers<[1], [0], [0], [1], [0, 0, 1, 1], [], []>} : vector<2x32xf32>, vector<32x128xf32>, vector<2x128xf32> -> vector<2x128xf32>
    %220 = arith.addf %218, %219 : vector<2x128xf32>
    %221 = arith.negf %220 : vector<2x128xf32>
    %222 = math.exp %221 : vector<2x128xf32>
    %cst_106 = arith.constant 1.000000e+00 : f32
    %223 = vector.broadcast %cst_106 : f32 to vector<2x128xf32>
    %224 = arith.addf %223, %222 : vector<2x128xf32>
    %225 = arith.divf %223, %224 : vector<2x128xf32>
    %226 = math.tanh %220 : vector<2x128xf32>
    %227 = vector.extract_strided_slice %225 {offsets = [0, 0], sizes = [2, 32], strides = [1, 1]} : vector<2x128xf32> to vector<2x32xf32>
    %228 = vector.extract_strided_slice %225 {offsets = [0, 32], sizes = [2, 32], strides = [1, 1]} : vector<2x128xf32> to vector<2x32xf32>
    %229 = vector.extract_strided_slice %226 {offsets = [0, 64], sizes = [2, 32], strides = [1, 1]} : vector<2x128xf32> to vector<2x32xf32>
    %230 = vector.extract_strided_slice %225 {offsets = [0, 96], sizes = [2, 32], strides = [1, 1]} : vector<2x128xf32> to vector<2x32xf32>
    %231 = arith.mulf %228, %214 : vector<2x32xf32>
    %232 = arith.mulf %227, %229 : vector<2x32xf32>
    %233 = arith.addf %231, %232 : vector<2x32xf32>
    %234 = math.tanh %233 : vector<2x32xf32>
    %235 = arith.mulf %230, %234 : vector<2x32xf32>
    %c8 = arith.constant 8 : index
    %c0_107 = arith.constant 0 : index
    %236 = vector.load %arg41[%c8, %c0_107] : memref<30x32xf32, #tpu.memory_space<vmem>>, vector<2x32xf32>
    tpu.vector_store %arg41[%c8, %c0_107], %235 {strides = array<i32>} : memref<30x32xf32, #tpu.memory_space<vmem>>, vector<2x32xf32>,
    %cst_108 = arith.constant dense<0.000000e+00> : vector<2x64xf32>
    %237 = tpu.matmul %105, %4, %cst_108 {dimension_numbers = #tpu.dot_dimension_numbers<[1], [0], [0], [1], [0, 0, 1, 1], [], []>} : vector<2x32xf32>, vector<32x64xf32>, vector<2x64xf32> -> vector<2x64xf32>
    %238 = arith.addf %33, %237 : vector<2x64xf32>
    %239 = vector.broadcast %5 : vector<1x64xf32> to vector<2x64xf32>
    %240 = arith.addf %238, %239 : vector<2x64xf32>
    %241 = math.tanh %240 : vector<2x64xf32>
    %cst_109 = arith.constant dense<0.000000e+00> : vector<2x64xf32>
    %242 = tpu.matmul %241, %6, %cst_109 {dimension_numbers = #tpu.dot_dimension_numbers<[1], [0], [0], [1], [0, 0, 1, 1], [], []>} : vector<2x64xf32>, vector<64x64xf32>, vector<2x64xf32> -> vector<2x64xf32>
    %243 = vector.broadcast %7 : vector<1x64xf32> to vector<2x64xf32>
    %244 = arith.addf %242, %243 : vector<2x64xf32>
    %cst_110 = arith.constant dense<0xFF800000> : vector<2xf32>
    %245 = vector.multi_reduction <maximumf>, %244, %cst_110 [1] : vector<2x64xf32> to vector<2xf32>
    %cst_111 = arith.constant 0xFF800000 : f32
    %246 = vector.broadcast %cst_111 : f32 to vector<2xf32>
    %247 = arith.maximumf %246, %245 : vector<2xf32>
    %248 = vector.shape_cast %247 : vector<2xf32> to vector<2x1xf32>
    %249 = vector.broadcast %248 : vector<2x1xf32> to vector<2x64xf32>
    %250 = arith.subf %244, %249 : vector<2x64xf32>
    %251 = math.exp %250 : vector<2x64xf32>
    %cst_112 = arith.constant dense<0.000000e+00> : vector<2xf32>
    %252 = vector.multi_reduction <add>, %251, %cst_112 [1] : vector<2x64xf32> to vector<2xf32>
    %253 = vector.shape_cast %252 : vector<2xf32> to vector<2x1xf32>
    %254 = vector.broadcast %253 : vector<2x1xf32> to vector<2x64xf32>
    %255 = arith.divf %251, %254 : vector<2x64xf32>
    %256 = arith.mulf %255, %0 : vector<2x64xf32>
    %cst_113 = arith.constant dense<0.000000e+00> : vector<2x32xf32>
    %257 = tpu.matmul %105, %8, %cst_113 {dimension_numbers = #tpu.dot_dimension_numbers<[1], [0], [0], [1], [0, 0, 1, 1], [], []>} : vector<2x32xf32>, vector<32x32xf32>, vector<2x32xf32> -> vector<2x32xf32>
    %cst_114 = arith.constant dense<0.000000e+00> : vector<12x32xf32>
    %258 = tpu.matmul %2, %257, %cst_114 {dimension_numbers = #tpu.dot_dimension_numbers<[1], [0], [0], [1], [0, 0, 1, 1], [], []>} : vector<12x2xf32>, vector<2x32xf32>, vector<12x32xf32> -> vector<12x32xf32>
    %259 = arith.addf %35, %258 : vector<12x32xf32>
    %260 = vector.broadcast %9 : vector<1x32xf32> to vector<12x32xf32>
    %261 = arith.addf %259, %260 : vector<12x32xf32>
    %262 = math.tanh %261 : vector<12x32xf32>
    %cst_115 = arith.constant dense<0.000000e+00> : vector<12x32xf32>
    %263 = tpu.matmul %262, %10, %cst_115 {dimension_numbers = #tpu.dot_dimension_numbers<[1], [0], [0], [1], [0, 0, 1, 1], [], []>} : vector<12x32xf32>, vector<32x32xf32>, vector<12x32xf32> -> vector<12x32xf32>
    %264 = vector.broadcast %11 : vector<1x32xf32> to vector<12x32xf32>
    %265 = arith.addf %263, %264 : vector<12x32xf32>
    %cst_116 = arith.constant dense<0xFF800000> : vector<12xf32>
    %266 = vector.multi_reduction <maximumf>, %265, %cst_116 [1] : vector<12x32xf32> to vector<12xf32>
    %cst_117 = arith.constant 0xFF800000 : f32
    %267 = vector.broadcast %cst_117 : f32 to vector<12xf32>
    %268 = arith.maximumf %267, %266 : vector<12xf32>
    %269 = vector.shape_cast %268 : vector<12xf32> to vector<12x1xf32>
    %270 = vector.broadcast %269 : vector<12x1xf32> to vector<12x32xf32>
    %271 = arith.subf %265, %270 : vector<12x32xf32>
    %272 = math.exp %271 : vector<12x32xf32>
    %cst_118 = arith.constant dense<0.000000e+00> : vector<12xf32>
    %273 = vector.multi_reduction <add>, %272, %cst_118 [1] : vector<12x32xf32> to vector<12xf32>
    %274 = vector.shape_cast %273 : vector<12xf32> to vector<12x1xf32>
    %275 = vector.broadcast %274 : vector<12x1xf32> to vector<12x32xf32>
    %276 = arith.divf %272, %275 : vector<12x32xf32>
    %277 = arith.mulf %276, %1 : vector<12x32xf32>
    %cst_119 = arith.constant dense<0.000000e+00> : vector<2x32xf32>
    %278 = tpu.matmul %3, %277, %cst_119 {dimension_numbers = #tpu.dot_dimension_numbers<[1], [0], [0], [1], [0, 0, 1, 1], [], []>} : vector<2x12xf32>, vector<12x32xf32>, vector<2x32xf32> -> vector<2x32xf32>
    %cst_120 = arith.constant dense<0.000000e+00> : vector<2x32xf32>
    %279 = tpu.matmul %256, %12, %cst_120 {dimension_numbers = #tpu.dot_dimension_numbers<[1], [0], [0], [1], [0, 0, 1, 1], [], []>} : vector<2x64xf32>, vector<64x32xf32>, vector<2x32xf32> -> vector<2x32xf32>
    %cst_121 = arith.constant dense<0.000000e+00> : vector<2x32xf32>
    %280 = tpu.matmul %278, %13, %cst_121 {dimension_numbers = #tpu.dot_dimension_numbers<[1], [0], [0], [1], [0, 0, 1, 1], [], []>} : vector<2x32xf32>, vector<32x32xf32>, vector<2x32xf32> -> vector<2x32xf32>
    %281 = arith.addf %279, %280 : vector<2x32xf32>
    %282 = vector.broadcast %14 : vector<1x32xf32> to vector<2x32xf32>
    %283 = arith.addf %281, %282 : vector<2x32xf32>
    %cst_122 = arith.constant dense<0.000000e+00> : vector<2x128xf32>
    %284 = tpu.matmul %283, %15, %cst_122 {dimension_numbers = #tpu.dot_dimension_numbers<[1], [0], [0], [1], [0, 0, 1, 1], [], []>} : vector<2x32xf32>, vector<32x128xf32>, vector<2x128xf32> -> vector<2x128xf32>
    %cst_123 = arith.constant dense<0.000000e+00> : vector<2x128xf32>
    %285 = tpu.matmul %105, %16, %cst_123 {dimension_numbers = #tpu.dot_dimension_numbers<[1], [0], [0], [1], [0, 0, 1, 1], [], []>} : vector<2x32xf32>, vector<32x128xf32>, vector<2x128xf32> -> vector<2x128xf32>
    %286 = arith.addf %284, %285 : vector<2x128xf32>
    %287 = vector.broadcast %17 : vector<1x128xf32> to vector<2x128xf32>
    %288 = arith.addf %286, %287 : vector<2x128xf32>
    %289 = arith.negf %288 : vector<2x128xf32>
    %290 = math.exp %289 : vector<2x128xf32>
    %cst_124 = arith.constant 1.000000e+00 : f32
    %291 = vector.broadcast %cst_124 : f32 to vector<2x128xf32>
    %292 = arith.addf %291, %290 : vector<2x128xf32>
    %293 = arith.divf %291, %292 : vector<2x128xf32>
    %294 = math.tanh %288 : vector<2x128xf32>
    %295 = vector.extract_strided_slice %293 {offsets = [0, 0], sizes = [2, 32], strides = [1, 1]} : vector<2x128xf32> to vector<2x32xf32>
    %296 = vector.extract_strided_slice %293 {offsets = [0, 32], sizes = [2, 32], strides = [1, 1]} : vector<2x128xf32> to vector<2x32xf32>
    %297 = vector.extract_strided_slice %294 {offsets = [0, 64], sizes = [2, 32], strides = [1, 1]} : vector<2x128xf32> to vector<2x32xf32>
    %298 = vector.extract_strided_slice %293 {offsets = [0, 96], sizes = [2, 32], strides = [1, 1]} : vector<2x128xf32> to vector<2x32xf32>
    %299 = arith.mulf %296, %103 : vector<2x32xf32>
    %300 = arith.mulf %295, %297 : vector<2x32xf32>
    %301 = arith.addf %299, %300 : vector<2x32xf32>
    %302 = math.tanh %301 : vector<2x32xf32>
    %303 = arith.mulf %298, %302 : vector<2x32xf32>
    %cst_125 = arith.constant dense<0.000000e+00> : vector<2x64xf32>
    %304 = tpu.matmul %303, %18, %cst_125 {dimension_numbers = #tpu.dot_dimension_numbers<[1], [0], [0], [1], [0, 0, 1, 1], [], []>} : vector<2x32xf32>, vector<32x64xf32>, vector<2x64xf32> -> vector<2x64xf32>
    %305 = vector.extract_strided_slice %304 {offsets = [0, 0], sizes = [2, 32], strides = [1, 1]} : vector<2x64xf32> to vector<2x32xf32>
    %cst_126 = arith.constant dense<0.000000e+00> : vector<2x32xf32>
    %306 = tpu.matmul %283, %20, %cst_126 {dimension_numbers = #tpu.dot_dimension_numbers<[1], [0], [0], [1], [0, 0, 1, 1], [], []>} : vector<2x32xf32>, vector<32x32xf32>, vector<2x32xf32> -> vector<2x32xf32>
    %307 = arith.addf %305, %306 : vector<2x32xf32>
    %308 = vector.broadcast %19 : vector<1x32xf32> to vector<2x32xf32>
    %309 = arith.addf %307, %308 : vector<2x32xf32>
    %310 = math.tanh %309 : vector<2x32xf32>
    %cst_127 = arith.constant dense<0.000000e+00> : vector<2x32xf32>
    %311 = tpu.matmul %105, %21, %cst_127 {dimension_numbers = #tpu.dot_dimension_numbers<[1], [0], [0], [1], [0, 0, 1, 1], [], []>} : vector<2x32xf32>, vector<32x32xf32>, vector<2x32xf32> -> vector<2x32xf32>
    %312 = vector.extract_strided_slice %304 {offsets = [0, 32], sizes = [2, 32], strides = [1, 1]} : vector<2x64xf32> to vector<2x32xf32>
    %313 = arith.addf %311, %312 : vector<2x32xf32>
    %314 = vector.broadcast %22 : vector<1x32xf32> to vector<2x32xf32>
    %315 = arith.addf %313, %314 : vector<2x32xf32>
    %316 = math.tanh %315 : vector<2x32xf32>
    %cst_128 = arith.constant dense<0.000000e+00> : vector<2x2xf32>
    %317 = tpu.matmul %316, %23, %cst_128 {dimension_numbers = #tpu.dot_dimension_numbers<[1], [0], [0], [1], [0, 0, 1, 1], [], []>} : vector<2x32xf32>, vector<32x2xf32>, vector<2x2xf32> -> vector<2x2xf32>
    %318 = vector.broadcast %24 : vector<1x2xf32> to vector<2x2xf32>
    %319 = arith.addf %317, %318 : vector<2x2xf32>
    %c2_129 = arith.constant 2 : index
    %c0_130 = arith.constant 0 : index
    %320 = vector.load %arg38[%c2_129, %c0_130] : memref<6x2xf32, #tpu.memory_space<vmem>>, vector<2x2xf32>
    tpu.vector_store %arg38[%c2_129, %c0_130], %319 {strides = array<i32>} : memref<6x2xf32, #tpu.memory_space<vmem>>, vector<2x2xf32>,
    %cst_131 = arith.constant 0.000000e+00 : f32
    %321 = vector.broadcast %cst_131 : f32 to vector<2x32xf32>
    %cst_132 = arith.constant dense<0.000000e+00> : vector<2x128xf32>
    %322 = tpu.matmul %310, %25, %cst_132 {dimension_numbers = #tpu.dot_dimension_numbers<[1], [0], [0], [1], [0, 0, 1, 1], [], []>} : vector<2x32xf32>, vector<32x128xf32>, vector<2x128xf32> -> vector<2x128xf32>
    %323 = vector.broadcast %27 : vector<1x128xf32> to vector<2x128xf32>
    %324 = arith.addf %322, %323 : vector<2x128xf32>
    %325 = arith.negf %324 : vector<2x128xf32>
    %326 = math.exp %325 : vector<2x128xf32>
    %cst_133 = arith.constant 1.000000e+00 : f32
    %327 = vector.broadcast %cst_133 : f32 to vector<2x128xf32>
    %328 = arith.addf %327, %326 : vector<2x128xf32>
    %329 = arith.divf %327, %328 : vector<2x128xf32>
    %330 = math.tanh %324 : vector<2x128xf32>
    %331 = vector.extract_strided_slice %329 {offsets = [0, 0], sizes = [2, 32], strides = [1, 1]} : vector<2x128xf32> to vector<2x32xf32>
    %332 = vector.extract_strided_slice %329 {offsets = [0, 32], sizes = [2, 32], strides = [1, 1]} : vector<2x128xf32> to vector<2x32xf32>
    %333 = vector.extract_strided_slice %330 {offsets = [0, 64], sizes = [2, 32], strides = [1, 1]} : vector<2x128xf32> to vector<2x32xf32>
    %334 = vector.extract_strided_slice %329 {offsets = [0, 96], sizes = [2, 32], strides = [1, 1]} : vector<2x128xf32> to vector<2x32xf32>
    %335 = arith.mulf %332, %321 : vector<2x32xf32>
    %336 = arith.mulf %331, %333 : vector<2x32xf32>
    %337 = arith.addf %335, %336 : vector<2x32xf32>
    %338 = math.tanh %337 : vector<2x32xf32>
    %339 = arith.mulf %334, %338 : vector<2x32xf32>
    %340 = vector.extract_strided_slice %31 {offsets = [10, 0], sizes = [2, 128], strides = [1, 1]} : vector<30x128xf32> to vector<2x128xf32>
    %cst_134 = arith.constant dense<0.000000e+00> : vector<2x128xf32>
    %341 = tpu.matmul %339, %26, %cst_134 {dimension_numbers = #tpu.dot_dimension_numbers<[1], [0], [0], [1], [0, 0, 1, 1], [], []>} : vector<2x32xf32>, vector<32x128xf32>, vector<2x128xf32> -> vector<2x128xf32>
    %342 = arith.addf %340, %341 : vector<2x128xf32>
    %343 = arith.negf %342 : vector<2x128xf32>
    %344 = math.exp %343 : vector<2x128xf32>
    %cst_135 = arith.constant 1.000000e+00 : f32
    %345 = vector.broadcast %cst_135 : f32 to vector<2x128xf32>
    %346 = arith.addf %345, %344 : vector<2x128xf32>
    %347 = arith.divf %345, %346 : vector<2x128xf32>
    %348 = math.tanh %342 : vector<2x128xf32>
    %349 = vector.extract_strided_slice %347 {offsets = [0, 0], sizes = [2, 32], strides = [1, 1]} : vector<2x128xf32> to vector<2x32xf32>
    %350 = vector.extract_strided_slice %347 {offsets = [0, 32], sizes = [2, 32], strides = [1, 1]} : vector<2x128xf32> to vector<2x32xf32>
    %351 = vector.extract_strided_slice %348 {offsets = [0, 64], sizes = [2, 32], strides = [1, 1]} : vector<2x128xf32> to vector<2x32xf32>
    %352 = vector.extract_strided_slice %347 {offsets = [0, 96], sizes = [2, 32], strides = [1, 1]} : vector<2x128xf32> to vector<2x32xf32>
    %353 = arith.mulf %350, %337 : vector<2x32xf32>
    %354 = arith.mulf %349, %351 : vector<2x32xf32>
    %355 = arith.addf %353, %354 : vector<2x32xf32>
    %356 = math.tanh %355 : vector<2x32xf32>
    %357 = arith.mulf %352, %356 : vector<2x32xf32>
    %c10 = arith.constant 10 : index
    %c0_136 = arith.constant 0 : index
    %358 = vector.load %arg41[%c10, %c0_136] : memref<30x32xf32, #tpu.memory_space<vmem>>, vector<2x32xf32>
    tpu.vector_store %arg41[%c10, %c0_136], %357 {strides = array<i32>} : memref<30x32xf32, #tpu.memory_space<vmem>>, vector<2x32xf32>,
    %359 = vector.extract_strided_slice %31 {offsets = [12, 0], sizes = [2, 128], strides = [1, 1]} : vector<30x128xf32> to vector<2x128xf32>
    %cst_137 = arith.constant dense<0.000000e+00> : vector<2x128xf32>
    %360 = tpu.matmul %357, %26, %cst_137 {dimension_numbers = #tpu.dot_dimension_numbers<[1], [0], [0], [1], [0, 0, 1, 1], [], []>} : vector<2x32xf32>, vector<32x128xf32>, vector<2x128xf32> -> vector<2x128xf32>
    %361 = arith.addf %359, %360 : vector<2x128xf32>
    %362 = arith.negf %361 : vector<2x128xf32>
    %363 = math.exp %362 : vector<2x128xf32>
    %cst_138 = arith.constant 1.000000e+00 : f32
    %364 = vector.broadcast %cst_138 : f32 to vector<2x128xf32>
    %365 = arith.addf %364, %363 : vector<2x128xf32>
    %366 = arith.divf %364, %365 : vector<2x128xf32>
    %367 = math.tanh %361 : vector<2x128xf32>
    %368 = vector.extract_strided_slice %366 {offsets = [0, 0], sizes = [2, 32], strides = [1, 1]} : vector<2x128xf32> to vector<2x32xf32>
    %369 = vector.extract_strided_slice %366 {offsets = [0, 32], sizes = [2, 32], strides = [1, 1]} : vector<2x128xf32> to vector<2x32xf32>
    %370 = vector.extract_strided_slice %367 {offsets = [0, 64], sizes = [2, 32], strides = [1, 1]} : vector<2x128xf32> to vector<2x32xf32>
    %371 = vector.extract_strided_slice %366 {offsets = [0, 96], sizes = [2, 32], strides = [1, 1]} : vector<2x128xf32> to vector<2x32xf32>
    %372 = arith.mulf %369, %355 : vector<2x32xf32>
    %373 = arith.mulf %368, %370 : vector<2x32xf32>
    %374 = arith.addf %372, %373 : vector<2x32xf32>
    %375 = math.tanh %374 : vector<2x32xf32>
    %376 = arith.mulf %371, %375 : vector<2x32xf32>
    %c12 = arith.constant 12 : index
    %c0_139 = arith.constant 0 : index
    %377 = vector.load %arg41[%c12, %c0_139] : memref<30x32xf32, #tpu.memory_space<vmem>>, vector<2x32xf32>
    tpu.vector_store %arg41[%c12, %c0_139], %376 {strides = array<i32>} : memref<30x32xf32, #tpu.memory_space<vmem>>, vector<2x32xf32>,
    %378 = vector.extract_strided_slice %31 {offsets = [14, 0], sizes = [2, 128], strides = [1, 1]} : vector<30x128xf32> to vector<2x128xf32>
    %cst_140 = arith.constant dense<0.000000e+00> : vector<2x128xf32>
    %379 = tpu.matmul %376, %26, %cst_140 {dimension_numbers = #tpu.dot_dimension_numbers<[1], [0], [0], [1], [0, 0, 1, 1], [], []>} : vector<2x32xf32>, vector<32x128xf32>, vector<2x128xf32> -> vector<2x128xf32>
    %380 = arith.addf %378, %379 : vector<2x128xf32>
    %381 = arith.negf %380 : vector<2x128xf32>
    %382 = math.exp %381 : vector<2x128xf32>
    %cst_141 = arith.constant 1.000000e+00 : f32
    %383 = vector.broadcast %cst_141 : f32 to vector<2x128xf32>
    %384 = arith.addf %383, %382 : vector<2x128xf32>
    %385 = arith.divf %383, %384 : vector<2x128xf32>
    %386 = math.tanh %380 : vector<2x128xf32>
    %387 = vector.extract_strided_slice %385 {offsets = [0, 0], sizes = [2, 32], strides = [1, 1]} : vector<2x128xf32> to vector<2x32xf32>
    %388 = vector.extract_strided_slice %385 {offsets = [0, 32], sizes = [2, 32], strides = [1, 1]} : vector<2x128xf32> to vector<2x32xf32>
    %389 = vector.extract_strided_slice %386 {offsets = [0, 64], sizes = [2, 32], strides = [1, 1]} : vector<2x128xf32> to vector<2x32xf32>
    %390 = vector.extract_strided_slice %385 {offsets = [0, 96], sizes = [2, 32], strides = [1, 1]} : vector<2x128xf32> to vector<2x32xf32>
    %391 = arith.mulf %388, %374 : vector<2x32xf32>
    %392 = arith.mulf %387, %389 : vector<2x32xf32>
    %393 = arith.addf %391, %392 : vector<2x32xf32>
    %394 = math.tanh %393 : vector<2x32xf32>
    %395 = arith.mulf %390, %394 : vector<2x32xf32>
    %c14 = arith.constant 14 : index
    %c0_142 = arith.constant 0 : index
    %396 = vector.load %arg41[%c14, %c0_142] : memref<30x32xf32, #tpu.memory_space<vmem>>, vector<2x32xf32>
    tpu.vector_store %arg41[%c14, %c0_142], %395 {strides = array<i32>} : memref<30x32xf32, #tpu.memory_space<vmem>>, vector<2x32xf32>,
    %397 = vector.extract_strided_slice %31 {offsets = [16, 0], sizes = [2, 128], strides = [1, 1]} : vector<30x128xf32> to vector<2x128xf32>
    %cst_143 = arith.constant dense<0.000000e+00> : vector<2x128xf32>
    %398 = tpu.matmul %395, %26, %cst_143 {dimension_numbers = #tpu.dot_dimension_numbers<[1], [0], [0], [1], [0, 0, 1, 1], [], []>} : vector<2x32xf32>, vector<32x128xf32>, vector<2x128xf32> -> vector<2x128xf32>
    %399 = arith.addf %397, %398 : vector<2x128xf32>
    %400 = arith.negf %399 : vector<2x128xf32>
    %401 = math.exp %400 : vector<2x128xf32>
    %cst_144 = arith.constant 1.000000e+00 : f32
    %402 = vector.broadcast %cst_144 : f32 to vector<2x128xf32>
    %403 = arith.addf %402, %401 : vector<2x128xf32>
    %404 = arith.divf %402, %403 : vector<2x128xf32>
    %405 = math.tanh %399 : vector<2x128xf32>
    %406 = vector.extract_strided_slice %404 {offsets = [0, 0], sizes = [2, 32], strides = [1, 1]} : vector<2x128xf32> to vector<2x32xf32>
    %407 = vector.extract_strided_slice %404 {offsets = [0, 32], sizes = [2, 32], strides = [1, 1]} : vector<2x128xf32> to vector<2x32xf32>
    %408 = vector.extract_strided_slice %405 {offsets = [0, 64], sizes = [2, 32], strides = [1, 1]} : vector<2x128xf32> to vector<2x32xf32>
    %409 = vector.extract_strided_slice %404 {offsets = [0, 96], sizes = [2, 32], strides = [1, 1]} : vector<2x128xf32> to vector<2x32xf32>
    %410 = arith.mulf %407, %393 : vector<2x32xf32>
    %411 = arith.mulf %406, %408 : vector<2x32xf32>
    %412 = arith.addf %410, %411 : vector<2x32xf32>
    %413 = math.tanh %412 : vector<2x32xf32>
    %414 = arith.mulf %409, %413 : vector<2x32xf32>
    %c16 = arith.constant 16 : index
    %c0_145 = arith.constant 0 : index
    %415 = vector.load %arg41[%c16, %c0_145] : memref<30x32xf32, #tpu.memory_space<vmem>>, vector<2x32xf32>
    tpu.vector_store %arg41[%c16, %c0_145], %414 {strides = array<i32>} : memref<30x32xf32, #tpu.memory_space<vmem>>, vector<2x32xf32>,
    %416 = vector.extract_strided_slice %31 {offsets = [18, 0], sizes = [2, 128], strides = [1, 1]} : vector<30x128xf32> to vector<2x128xf32>
    %cst_146 = arith.constant dense<0.000000e+00> : vector<2x128xf32>
    %417 = tpu.matmul %414, %26, %cst_146 {dimension_numbers = #tpu.dot_dimension_numbers<[1], [0], [0], [1], [0, 0, 1, 1], [], []>} : vector<2x32xf32>, vector<32x128xf32>, vector<2x128xf32> -> vector<2x128xf32>
    %418 = arith.addf %416, %417 : vector<2x128xf32>
    %419 = arith.negf %418 : vector<2x128xf32>
    %420 = math.exp %419 : vector<2x128xf32>
    %cst_147 = arith.constant 1.000000e+00 : f32
    %421 = vector.broadcast %cst_147 : f32 to vector<2x128xf32>
    %422 = arith.addf %421, %420 : vector<2x128xf32>
    %423 = arith.divf %421, %422 : vector<2x128xf32>
    %424 = math.tanh %418 : vector<2x128xf32>
    %425 = vector.extract_strided_slice %423 {offsets = [0, 0], sizes = [2, 32], strides = [1, 1]} : vector<2x128xf32> to vector<2x32xf32>
    %426 = vector.extract_strided_slice %423 {offsets = [0, 32], sizes = [2, 32], strides = [1, 1]} : vector<2x128xf32> to vector<2x32xf32>
    %427 = vector.extract_strided_slice %424 {offsets = [0, 64], sizes = [2, 32], strides = [1, 1]} : vector<2x128xf32> to vector<2x32xf32>
    %428 = vector.extract_strided_slice %423 {offsets = [0, 96], sizes = [2, 32], strides = [1, 1]} : vector<2x128xf32> to vector<2x32xf32>
    %429 = arith.mulf %426, %412 : vector<2x32xf32>
    %430 = arith.mulf %425, %427 : vector<2x32xf32>
    %431 = arith.addf %429, %430 : vector<2x32xf32>
    %432 = math.tanh %431 : vector<2x32xf32>
    %433 = arith.mulf %428, %432 : vector<2x32xf32>
    %c18 = arith.constant 18 : index
    %c0_148 = arith.constant 0 : index
    %434 = vector.load %arg41[%c18, %c0_148] : memref<30x32xf32, #tpu.memory_space<vmem>>, vector<2x32xf32>
    tpu.vector_store %arg41[%c18, %c0_148], %433 {strides = array<i32>} : memref<30x32xf32, #tpu.memory_space<vmem>>, vector<2x32xf32>,
    %cst_149 = arith.constant dense<0.000000e+00> : vector<2x64xf32>
    %435 = tpu.matmul %303, %4, %cst_149 {dimension_numbers = #tpu.dot_dimension_numbers<[1], [0], [0], [1], [0, 0, 1, 1], [], []>} : vector<2x32xf32>, vector<32x64xf32>, vector<2x64xf32> -> vector<2x64xf32>
    %436 = arith.addf %33, %435 : vector<2x64xf32>
    %437 = vector.broadcast %5 : vector<1x64xf32> to vector<2x64xf32>
    %438 = arith.addf %436, %437 : vector<2x64xf32>
    %439 = math.tanh %438 : vector<2x64xf32>
    %cst_150 = arith.constant dense<0.000000e+00> : vector<2x64xf32>
    %440 = tpu.matmul %439, %6, %cst_150 {dimension_numbers = #tpu.dot_dimension_numbers<[1], [0], [0], [1], [0, 0, 1, 1], [], []>} : vector<2x64xf32>, vector<64x64xf32>, vector<2x64xf32> -> vector<2x64xf32>
    %441 = vector.broadcast %7 : vector<1x64xf32> to vector<2x64xf32>
    %442 = arith.addf %440, %441 : vector<2x64xf32>
    %cst_151 = arith.constant dense<0xFF800000> : vector<2xf32>
    %443 = vector.multi_reduction <maximumf>, %442, %cst_151 [1] : vector<2x64xf32> to vector<2xf32>
    %cst_152 = arith.constant 0xFF800000 : f32
    %444 = vector.broadcast %cst_152 : f32 to vector<2xf32>
    %445 = arith.maximumf %444, %443 : vector<2xf32>
    %446 = vector.shape_cast %445 : vector<2xf32> to vector<2x1xf32>
    %447 = vector.broadcast %446 : vector<2x1xf32> to vector<2x64xf32>
    %448 = arith.subf %442, %447 : vector<2x64xf32>
    %449 = math.exp %448 : vector<2x64xf32>
    %cst_153 = arith.constant dense<0.000000e+00> : vector<2xf32>
    %450 = vector.multi_reduction <add>, %449, %cst_153 [1] : vector<2x64xf32> to vector<2xf32>
    %451 = vector.shape_cast %450 : vector<2xf32> to vector<2x1xf32>
    %452 = vector.broadcast %451 : vector<2x1xf32> to vector<2x64xf32>
    %453 = arith.divf %449, %452 : vector<2x64xf32>
    %454 = arith.mulf %453, %0 : vector<2x64xf32>
    %cst_154 = arith.constant dense<0.000000e+00> : vector<2x32xf32>
    %455 = tpu.matmul %303, %8, %cst_154 {dimension_numbers = #tpu.dot_dimension_numbers<[1], [0], [0], [1], [0, 0, 1, 1], [], []>} : vector<2x32xf32>, vector<32x32xf32>, vector<2x32xf32> -> vector<2x32xf32>
    %cst_155 = arith.constant dense<0.000000e+00> : vector<12x32xf32>
    %456 = tpu.matmul %2, %455, %cst_155 {dimension_numbers = #tpu.dot_dimension_numbers<[1], [0], [0], [1], [0, 0, 1, 1], [], []>} : vector<12x2xf32>, vector<2x32xf32>, vector<12x32xf32> -> vector<12x32xf32>
    %457 = arith.addf %35, %456 : vector<12x32xf32>
    %458 = vector.broadcast %9 : vector<1x32xf32> to vector<12x32xf32>
    %459 = arith.addf %457, %458 : vector<12x32xf32>
    %460 = math.tanh %459 : vector<12x32xf32>
    %cst_156 = arith.constant dense<0.000000e+00> : vector<12x32xf32>
    %461 = tpu.matmul %460, %10, %cst_156 {dimension_numbers = #tpu.dot_dimension_numbers<[1], [0], [0], [1], [0, 0, 1, 1], [], []>} : vector<12x32xf32>, vector<32x32xf32>, vector<12x32xf32> -> vector<12x32xf32>
    %462 = vector.broadcast %11 : vector<1x32xf32> to vector<12x32xf32>
    %463 = arith.addf %461, %462 : vector<12x32xf32>
    %cst_157 = arith.constant dense<0xFF800000> : vector<12xf32>
    %464 = vector.multi_reduction <maximumf>, %463, %cst_157 [1] : vector<12x32xf32> to vector<12xf32>
    %cst_158 = arith.constant 0xFF800000 : f32
    %465 = vector.broadcast %cst_158 : f32 to vector<12xf32>
    %466 = arith.maximumf %465, %464 : vector<12xf32>
    %467 = vector.shape_cast %466 : vector<12xf32> to vector<12x1xf32>
    %468 = vector.broadcast %467 : vector<12x1xf32> to vector<12x32xf32>
    %469 = arith.subf %463, %468 : vector<12x32xf32>
    %470 = math.exp %469 : vector<12x32xf32>
    %cst_159 = arith.constant dense<0.000000e+00> : vector<12xf32>
    %471 = vector.multi_reduction <add>, %470, %cst_159 [1] : vector<12x32xf32> to vector<12xf32>
    %472 = vector.shape_cast %471 : vector<12xf32> to vector<12x1xf32>
    %473 = vector.broadcast %472 : vector<12x1xf32> to vector<12x32xf32>
    %474 = arith.divf %470, %473 : vector<12x32xf32>
    %475 = arith.mulf %474, %1 : vector<12x32xf32>
    %cst_160 = arith.constant dense<0.000000e+00> : vector<2x32xf32>
    %476 = tpu.matmul %3, %475, %cst_160 {dimension_numbers = #tpu.dot_dimension_numbers<[1], [0], [0], [1], [0, 0, 1, 1], [], []>} : vector<2x12xf32>, vector<12x32xf32>, vector<2x32xf32> -> vector<2x32xf32>
    %cst_161 = arith.constant dense<0.000000e+00> : vector<2x32xf32>
    %477 = tpu.matmul %454, %12, %cst_161 {dimension_numbers = #tpu.dot_dimension_numbers<[1], [0], [0], [1], [0, 0, 1, 1], [], []>} : vector<2x64xf32>, vector<64x32xf32>, vector<2x32xf32> -> vector<2x32xf32>
    %cst_162 = arith.constant dense<0.000000e+00> : vector<2x32xf32>
    %478 = tpu.matmul %476, %13, %cst_162 {dimension_numbers = #tpu.dot_dimension_numbers<[1], [0], [0], [1], [0, 0, 1, 1], [], []>} : vector<2x32xf32>, vector<32x32xf32>, vector<2x32xf32> -> vector<2x32xf32>
    %479 = arith.addf %477, %478 : vector<2x32xf32>
    %480 = vector.broadcast %14 : vector<1x32xf32> to vector<2x32xf32>
    %481 = arith.addf %479, %480 : vector<2x32xf32>
    %cst_163 = arith.constant dense<0.000000e+00> : vector<2x128xf32>
    %482 = tpu.matmul %481, %15, %cst_163 {dimension_numbers = #tpu.dot_dimension_numbers<[1], [0], [0], [1], [0, 0, 1, 1], [], []>} : vector<2x32xf32>, vector<32x128xf32>, vector<2x128xf32> -> vector<2x128xf32>
    %cst_164 = arith.constant dense<0.000000e+00> : vector<2x128xf32>
    %483 = tpu.matmul %303, %16, %cst_164 {dimension_numbers = #tpu.dot_dimension_numbers<[1], [0], [0], [1], [0, 0, 1, 1], [], []>} : vector<2x32xf32>, vector<32x128xf32>, vector<2x128xf32> -> vector<2x128xf32>
    %484 = arith.addf %482, %483 : vector<2x128xf32>
    %485 = vector.broadcast %17 : vector<1x128xf32> to vector<2x128xf32>
    %486 = arith.addf %484, %485 : vector<2x128xf32>
    %487 = arith.negf %486 : vector<2x128xf32>
    %488 = math.exp %487 : vector<2x128xf32>
    %cst_165 = arith.constant 1.000000e+00 : f32
    %489 = vector.broadcast %cst_165 : f32 to vector<2x128xf32>
    %490 = arith.addf %489, %488 : vector<2x128xf32>
    %491 = arith.divf %489, %490 : vector<2x128xf32>
    %492 = math.tanh %486 : vector<2x128xf32>
    %493 = vector.extract_strided_slice %491 {offsets = [0, 0], sizes = [2, 32], strides = [1, 1]} : vector<2x128xf32> to vector<2x32xf32>
    %494 = vector.extract_strided_slice %491 {offsets = [0, 32], sizes = [2, 32], strides = [1, 1]} : vector<2x128xf32> to vector<2x32xf32>
    %495 = vector.extract_strided_slice %492 {offsets = [0, 64], sizes = [2, 32], strides = [1, 1]} : vector<2x128xf32> to vector<2x32xf32>
    %496 = vector.extract_strided_slice %491 {offsets = [0, 96], sizes = [2, 32], strides = [1, 1]} : vector<2x128xf32> to vector<2x32xf32>
    %497 = arith.mulf %494, %301 : vector<2x32xf32>
    %498 = arith.mulf %493, %495 : vector<2x32xf32>
    %499 = arith.addf %497, %498 : vector<2x32xf32>
    %500 = math.tanh %499 : vector<2x32xf32>
    %501 = arith.mulf %496, %500 : vector<2x32xf32>
    %cst_166 = arith.constant dense<0.000000e+00> : vector<2x64xf32>
    %502 = tpu.matmul %501, %18, %cst_166 {dimension_numbers = #tpu.dot_dimension_numbers<[1], [0], [0], [1], [0, 0, 1, 1], [], []>} : vector<2x32xf32>, vector<32x64xf32>, vector<2x64xf32> -> vector<2x64xf32>
    %503 = vector.extract_strided_slice %502 {offsets = [0, 0], sizes = [2, 32], strides = [1, 1]} : vector<2x64xf32> to vector<2x32xf32>
    %cst_167 = arith.constant dense<0.000000e+00> : vector<2x32xf32>
    %504 = tpu.matmul %481, %20, %cst_167 {dimension_numbers = #tpu.dot_dimension_numbers<[1], [0], [0], [1], [0, 0, 1, 1], [], []>} : vector<2x32xf32>, vector<32x32xf32>, vector<2x32xf32> -> vector<2x32xf32>
    %505 = arith.addf %503, %504 : vector<2x32xf32>
    %506 = vector.broadcast %19 : vector<1x32xf32> to vector<2x32xf32>
    %507 = arith.addf %505, %506 : vector<2x32xf32>
    %508 = math.tanh %507 : vector<2x32xf32>
    %cst_168 = arith.constant dense<0.000000e+00> : vector<2x32xf32>
    %509 = tpu.matmul %303, %21, %cst_168 {dimension_numbers = #tpu.dot_dimension_numbers<[1], [0], [0], [1], [0, 0, 1, 1], [], []>} : vector<2x32xf32>, vector<32x32xf32>, vector<2x32xf32> -> vector<2x32xf32>
    %510 = vector.extract_strided_slice %502 {offsets = [0, 32], sizes = [2, 32], strides = [1, 1]} : vector<2x64xf32> to vector<2x32xf32>
    %511 = arith.addf %509, %510 : vector<2x32xf32>
    %512 = vector.broadcast %22 : vector<1x32xf32> to vector<2x32xf32>
    %513 = arith.addf %511, %512 : vector<2x32xf32>
    %514 = math.tanh %513 : vector<2x32xf32>
    %cst_169 = arith.constant dense<0.000000e+00> : vector<2x2xf32>
    %515 = tpu.matmul %514, %23, %cst_169 {dimension_numbers = #tpu.dot_dimension_numbers<[1], [0], [0], [1], [0, 0, 1, 1], [], []>} : vector<2x32xf32>, vector<32x2xf32>, vector<2x2xf32> -> vector<2x2xf32>
    %516 = vector.broadcast %24 : vector<1x2xf32> to vector<2x2xf32>
    %517 = arith.addf %515, %516 : vector<2x2xf32>
    %c4_170 = arith.constant 4 : index
    %c0_171 = arith.constant 0 : index
    %518 = vector.load %arg38[%c4_170, %c0_171] : memref<6x2xf32, #tpu.memory_space<vmem>>, vector<2x2xf32>
    tpu.vector_store %arg38[%c4_170, %c0_171], %517 {strides = array<i32>} : memref<6x2xf32, #tpu.memory_space<vmem>>, vector<2x2xf32>,
    %cst_172 = arith.constant 0.000000e+00 : f32
    %519 = vector.broadcast %cst_172 : f32 to vector<2x32xf32>
    %cst_173 = arith.constant dense<0.000000e+00> : vector<2x128xf32>
    %520 = tpu.matmul %508, %25, %cst_173 {dimension_numbers = #tpu.dot_dimension_numbers<[1], [0], [0], [1], [0, 0, 1, 1], [], []>} : vector<2x32xf32>, vector<32x128xf32>, vector<2x128xf32> -> vector<2x128xf32>
    %521 = vector.broadcast %27 : vector<1x128xf32> to vector<2x128xf32>
    %522 = arith.addf %520, %521 : vector<2x128xf32>
    %523 = arith.negf %522 : vector<2x128xf32>
    %524 = math.exp %523 : vector<2x128xf32>
    %cst_174 = arith.constant 1.000000e+00 : f32
    %525 = vector.broadcast %cst_174 : f32 to vector<2x128xf32>
    %526 = arith.addf %525, %524 : vector<2x128xf32>
    %527 = arith.divf %525, %526 : vector<2x128xf32>
    %528 = math.tanh %522 : vector<2x128xf32>
    %529 = vector.extract_strided_slice %527 {offsets = [0, 0], sizes = [2, 32], strides = [1, 1]} : vector<2x128xf32> to vector<2x32xf32>
    %530 = vector.extract_strided_slice %527 {offsets = [0, 32], sizes = [2, 32], strides = [1, 1]} : vector<2x128xf32> to vector<2x32xf32>
    %531 = vector.extract_strided_slice %528 {offsets = [0, 64], sizes = [2, 32], strides = [1, 1]} : vector<2x128xf32> to vector<2x32xf32>
    %532 = vector.extract_strided_slice %527 {offsets = [0, 96], sizes = [2, 32], strides = [1, 1]} : vector<2x128xf32> to vector<2x32xf32>
    %533 = arith.mulf %530, %519 : vector<2x32xf32>
    %534 = arith.mulf %529, %531 : vector<2x32xf32>
    %535 = arith.addf %533, %534 : vector<2x32xf32>
    %536 = math.tanh %535 : vector<2x32xf32>
    %537 = arith.mulf %532, %536 : vector<2x32xf32>
    %538 = vector.extract_strided_slice %31 {offsets = [20, 0], sizes = [2, 128], strides = [1, 1]} : vector<30x128xf32> to vector<2x128xf32>
    %cst_175 = arith.constant dense<0.000000e+00> : vector<2x128xf32>
    %539 = tpu.matmul %537, %26, %cst_175 {dimension_numbers = #tpu.dot_dimension_numbers<[1], [0], [0], [1], [0, 0, 1, 1], [], []>} : vector<2x32xf32>, vector<32x128xf32>, vector<2x128xf32> -> vector<2x128xf32>
    %540 = arith.addf %538, %539 : vector<2x128xf32>
    %541 = arith.negf %540 : vector<2x128xf32>
    %542 = math.exp %541 : vector<2x128xf32>
    %cst_176 = arith.constant 1.000000e+00 : f32
    %543 = vector.broadcast %cst_176 : f32 to vector<2x128xf32>
    %544 = arith.addf %543, %542 : vector<2x128xf32>
    %545 = arith.divf %543, %544 : vector<2x128xf32>
    %546 = math.tanh %540 : vector<2x128xf32>
    %547 = vector.extract_strided_slice %545 {offsets = [0, 0], sizes = [2, 32], strides = [1, 1]} : vector<2x128xf32> to vector<2x32xf32>
    %548 = vector.extract_strided_slice %545 {offsets = [0, 32], sizes = [2, 32], strides = [1, 1]} : vector<2x128xf32> to vector<2x32xf32>
    %549 = vector.extract_strided_slice %546 {offsets = [0, 64], sizes = [2, 32], strides = [1, 1]} : vector<2x128xf32> to vector<2x32xf32>
    %550 = vector.extract_strided_slice %545 {offsets = [0, 96], sizes = [2, 32], strides = [1, 1]} : vector<2x128xf32> to vector<2x32xf32>
    %551 = arith.mulf %548, %535 : vector<2x32xf32>
    %552 = arith.mulf %547, %549 : vector<2x32xf32>
    %553 = arith.addf %551, %552 : vector<2x32xf32>
    %554 = math.tanh %553 : vector<2x32xf32>
    %555 = arith.mulf %550, %554 : vector<2x32xf32>
    %c20 = arith.constant 20 : index
    %c0_177 = arith.constant 0 : index
    %556 = vector.load %arg41[%c20, %c0_177] : memref<30x32xf32, #tpu.memory_space<vmem>>, vector<2x32xf32>
    tpu.vector_store %arg41[%c20, %c0_177], %555 {strides = array<i32>} : memref<30x32xf32, #tpu.memory_space<vmem>>, vector<2x32xf32>,
    %557 = vector.extract_strided_slice %31 {offsets = [22, 0], sizes = [2, 128], strides = [1, 1]} : vector<30x128xf32> to vector<2x128xf32>
    %cst_178 = arith.constant dense<0.000000e+00> : vector<2x128xf32>
    %558 = tpu.matmul %555, %26, %cst_178 {dimension_numbers = #tpu.dot_dimension_numbers<[1], [0], [0], [1], [0, 0, 1, 1], [], []>} : vector<2x32xf32>, vector<32x128xf32>, vector<2x128xf32> -> vector<2x128xf32>
    %559 = arith.addf %557, %558 : vector<2x128xf32>
    %560 = arith.negf %559 : vector<2x128xf32>
    %561 = math.exp %560 : vector<2x128xf32>
    %cst_179 = arith.constant 1.000000e+00 : f32
    %562 = vector.broadcast %cst_179 : f32 to vector<2x128xf32>
    %563 = arith.addf %562, %561 : vector<2x128xf32>
    %564 = arith.divf %562, %563 : vector<2x128xf32>
    %565 = math.tanh %559 : vector<2x128xf32>
    %566 = vector.extract_strided_slice %564 {offsets = [0, 0], sizes = [2, 32], strides = [1, 1]} : vector<2x128xf32> to vector<2x32xf32>
    %567 = vector.extract_strided_slice %564 {offsets = [0, 32], sizes = [2, 32], strides = [1, 1]} : vector<2x128xf32> to vector<2x32xf32>
    %568 = vector.extract_strided_slice %565 {offsets = [0, 64], sizes = [2, 32], strides = [1, 1]} : vector<2x128xf32> to vector<2x32xf32>
    %569 = vector.extract_strided_slice %564 {offsets = [0, 96], sizes = [2, 32], strides = [1, 1]} : vector<2x128xf32> to vector<2x32xf32>
    %570 = arith.mulf %567, %553 : vector<2x32xf32>
    %571 = arith.mulf %566, %568 : vector<2x32xf32>
    %572 = arith.addf %570, %571 : vector<2x32xf32>
    %573 = math.tanh %572 : vector<2x32xf32>
    %574 = arith.mulf %569, %573 : vector<2x32xf32>
    %c22 = arith.constant 22 : index
    %c0_180 = arith.constant 0 : index
    %575 = vector.load %arg41[%c22, %c0_180] : memref<30x32xf32, #tpu.memory_space<vmem>>, vector<2x32xf32>
    tpu.vector_store %arg41[%c22, %c0_180], %574 {strides = array<i32>} : memref<30x32xf32, #tpu.memory_space<vmem>>, vector<2x32xf32>,
    %576 = vector.extract_strided_slice %31 {offsets = [24, 0], sizes = [2, 128], strides = [1, 1]} : vector<30x128xf32> to vector<2x128xf32>
    %cst_181 = arith.constant dense<0.000000e+00> : vector<2x128xf32>
    %577 = tpu.matmul %574, %26, %cst_181 {dimension_numbers = #tpu.dot_dimension_numbers<[1], [0], [0], [1], [0, 0, 1, 1], [], []>} : vector<2x32xf32>, vector<32x128xf32>, vector<2x128xf32> -> vector<2x128xf32>
    %578 = arith.addf %576, %577 : vector<2x128xf32>
    %579 = arith.negf %578 : vector<2x128xf32>
    %580 = math.exp %579 : vector<2x128xf32>
    %cst_182 = arith.constant 1.000000e+00 : f32
    %581 = vector.broadcast %cst_182 : f32 to vector<2x128xf32>
    %582 = arith.addf %581, %580 : vector<2x128xf32>
    %583 = arith.divf %581, %582 : vector<2x128xf32>
    %584 = math.tanh %578 : vector<2x128xf32>
    %585 = vector.extract_strided_slice %583 {offsets = [0, 0], sizes = [2, 32], strides = [1, 1]} : vector<2x128xf32> to vector<2x32xf32>
    %586 = vector.extract_strided_slice %583 {offsets = [0, 32], sizes = [2, 32], strides = [1, 1]} : vector<2x128xf32> to vector<2x32xf32>
    %587 = vector.extract_strided_slice %584 {offsets = [0, 64], sizes = [2, 32], strides = [1, 1]} : vector<2x128xf32> to vector<2x32xf32>
    %588 = vector.extract_strided_slice %583 {offsets = [0, 96], sizes = [2, 32], strides = [1, 1]} : vector<2x128xf32> to vector<2x32xf32>
    %589 = arith.mulf %586, %572 : vector<2x32xf32>
    %590 = arith.mulf %585, %587 : vector<2x32xf32>
    %591 = arith.addf %589, %590 : vector<2x32xf32>
    %592 = math.tanh %591 : vector<2x32xf32>
    %593 = arith.mulf %588, %592 : vector<2x32xf32>
    %c24 = arith.constant 24 : index
    %c0_183 = arith.constant 0 : index
    %594 = vector.load %arg41[%c24, %c0_183] : memref<30x32xf32, #tpu.memory_space<vmem>>, vector<2x32xf32>
    tpu.vector_store %arg41[%c24, %c0_183], %593 {strides = array<i32>} : memref<30x32xf32, #tpu.memory_space<vmem>>, vector<2x32xf32>,
    %595 = vector.extract_strided_slice %31 {offsets = [26, 0], sizes = [2, 128], strides = [1, 1]} : vector<30x128xf32> to vector<2x128xf32>
    %cst_184 = arith.constant dense<0.000000e+00> : vector<2x128xf32>
    %596 = tpu.matmul %593, %26, %cst_184 {dimension_numbers = #tpu.dot_dimension_numbers<[1], [0], [0], [1], [0, 0, 1, 1], [], []>} : vector<2x32xf32>, vector<32x128xf32>, vector<2x128xf32> -> vector<2x128xf32>
    %597 = arith.addf %595, %596 : vector<2x128xf32>
    %598 = arith.negf %597 : vector<2x128xf32>
    %599 = math.exp %598 : vector<2x128xf32>
    %cst_185 = arith.constant 1.000000e+00 : f32
    %600 = vector.broadcast %cst_185 : f32 to vector<2x128xf32>
    %601 = arith.addf %600, %599 : vector<2x128xf32>
    %602 = arith.divf %600, %601 : vector<2x128xf32>
    %603 = math.tanh %597 : vector<2x128xf32>
    %604 = vector.extract_strided_slice %602 {offsets = [0, 0], sizes = [2, 32], strides = [1, 1]} : vector<2x128xf32> to vector<2x32xf32>
    %605 = vector.extract_strided_slice %602 {offsets = [0, 32], sizes = [2, 32], strides = [1, 1]} : vector<2x128xf32> to vector<2x32xf32>
    %606 = vector.extract_strided_slice %603 {offsets = [0, 64], sizes = [2, 32], strides = [1, 1]} : vector<2x128xf32> to vector<2x32xf32>
    %607 = vector.extract_strided_slice %602 {offsets = [0, 96], sizes = [2, 32], strides = [1, 1]} : vector<2x128xf32> to vector<2x32xf32>
    %608 = arith.mulf %605, %591 : vector<2x32xf32>
    %609 = arith.mulf %604, %606 : vector<2x32xf32>
    %610 = arith.addf %608, %609 : vector<2x32xf32>
    %611 = math.tanh %610 : vector<2x32xf32>
    %612 = arith.mulf %607, %611 : vector<2x32xf32>
    %c26 = arith.constant 26 : index
    %c0_186 = arith.constant 0 : index
    %613 = vector.load %arg41[%c26, %c0_186] : memref<30x32xf32, #tpu.memory_space<vmem>>, vector<2x32xf32>
    tpu.vector_store %arg41[%c26, %c0_186], %612 {strides = array<i32>} : memref<30x32xf32, #tpu.memory_space<vmem>>, vector<2x32xf32>,
    %614 = vector.extract_strided_slice %31 {offsets = [28, 0], sizes = [2, 128], strides = [1, 1]} : vector<30x128xf32> to vector<2x128xf32>
    %cst_187 = arith.constant dense<0.000000e+00> : vector<2x128xf32>
    %615 = tpu.matmul %612, %26, %cst_187 {dimension_numbers = #tpu.dot_dimension_numbers<[1], [0], [0], [1], [0, 0, 1, 1], [], []>} : vector<2x32xf32>, vector<32x128xf32>, vector<2x128xf32> -> vector<2x128xf32>
    %616 = arith.addf %614, %615 : vector<2x128xf32>
    %617 = arith.negf %616 : vector<2x128xf32>
    %618 = math.exp %617 : vector<2x128xf32>
    %cst_188 = arith.constant 1.000000e+00 : f32
    %619 = vector.broadcast %cst_188 : f32 to vector<2x128xf32>
    %620 = arith.addf %619, %618 : vector<2x128xf32>
    %621 = arith.divf %619, %620 : vector<2x128xf32>
    %622 = math.tanh %616 : vector<2x128xf32>
    %623 = vector.extract_strided_slice %621 {offsets = [0, 0], sizes = [2, 32], strides = [1, 1]} : vector<2x128xf32> to vector<2x32xf32>
    %624 = vector.extract_strided_slice %621 {offsets = [0, 32], sizes = [2, 32], strides = [1, 1]} : vector<2x128xf32> to vector<2x32xf32>
    %625 = vector.extract_strided_slice %622 {offsets = [0, 64], sizes = [2, 32], strides = [1, 1]} : vector<2x128xf32> to vector<2x32xf32>
    %626 = vector.extract_strided_slice %621 {offsets = [0, 96], sizes = [2, 32], strides = [1, 1]} : vector<2x128xf32> to vector<2x32xf32>
    %627 = arith.mulf %624, %610 : vector<2x32xf32>
    %628 = arith.mulf %623, %625 : vector<2x32xf32>
    %629 = arith.addf %627, %628 : vector<2x32xf32>
    %630 = math.tanh %629 : vector<2x32xf32>
    %631 = arith.mulf %626, %630 : vector<2x32xf32>
    %c28 = arith.constant 28 : index
    %c0_189 = arith.constant 0 : index
    %632 = vector.load %arg41[%c28, %c0_189] : memref<30x32xf32, #tpu.memory_space<vmem>>, vector<2x32xf32>
    tpu.vector_store %arg41[%c28, %c0_189], %631 {strides = array<i32>} : memref<30x32xf32, #tpu.memory_space<vmem>>, vector<2x32xf32>,
    %c0_190 = arith.constant 0 : index
    %c0_191 = arith.constant 0 : index
    %633 = vector.load %arg38[%c0_190, %c0_191] : memref<6x2xf32, #tpu.memory_space<vmem>>, vector<6x2xf32>
    %c0_192 = arith.constant 0 : index
    %c0_193 = arith.constant 0 : index
    %634 = vector.load %arg6[%c0_192, %c0_193] : memref<6x1xi32, #tpu.memory_space<vmem>>, vector<6x1xi32>
    %cst_194 = arith.constant dense<0xFF800000> : vector<6xf32>
    %635 = vector.multi_reduction <maximumf>, %633, %cst_194 [1] : vector<6x2xf32> to vector<6xf32>
    %636 = vector.shape_cast %635 : vector<6xf32> to vector<6x1xf32>
    %637 = vector.broadcast %636 : vector<6x1xf32> to vector<6x2xf32>
    %638 = arith.subf %633, %637 : vector<6x2xf32>
    %639 = math.exp %638 : vector<6x2xf32>
    %cst_195 = arith.constant dense<0.000000e+00> : vector<6xf32>
    %640 = vector.multi_reduction <add>, %639, %cst_195 [1] : vector<6x2xf32> to vector<6xf32>
    %641 = vector.shape_cast %640 : vector<6xf32> to vector<6x1xf32>
    %642 = math.log %641 : vector<6x1xf32>
    %643 = vector.broadcast %642 : vector<6x1xf32> to vector<6x2xf32>
    %644 = arith.subf %638, %643 : vector<6x2xf32>
    %645 = tpu.iota {dimensions = array<i32: 1>} : vector<6x2xi32>
    %646 = vector.broadcast %634 : vector<6x1xi32> to vector<6x2xi32>
    %647 = arith.cmpi eq, %645, %646 : vector<6x2xi32>
    %cst_196 = arith.constant 0.000000e+00 : f32
    %648 = vector.broadcast %cst_196 : f32 to vector<6x2xf32>
    %649 = arith.select %647, %644, %648 : vector<6x2xi1>, vector<6x2xf32>
    %cst_197 = arith.constant dense<0.000000e+00> : vector<6xf32>
    %650 = vector.multi_reduction <add>, %649, %cst_197 [1] : vector<6x2xf32> to vector<6xf32>
    %651 = vector.shape_cast %650 : vector<6xf32> to vector<6x1xf32>
    %cst_198 = arith.constant 0.000000e+00 : f32
    %652 = vector.broadcast %cst_198 : f32 to vector<6x1xf32>
    %653 = arith.subf %652, %651 : vector<6x1xf32>
    %654 = vector.shape_cast %653 : vector<6x1xf32> to vector<1x6x1xf32>
    %cst_199 = arith.constant dense<0.000000e+00> : vector<1xf32>
    %655 = vector.multi_reduction <add>, %654, %cst_199 [1, 2] : vector<1x6x1xf32> to vector<1xf32>
    %656 = vector.shape_cast %655 : vector<1xf32> to vector<1x1x1xf32>
    %657 = vector.extract %656[0, 0, 0] : f32 from vector<1x1x1xf32>
    %658 = vector.broadcast %657 : f32 to vector<1x1xf32>
    %cst_200 = arith.constant 6.000000e+00 : f32
    %659 = vector.broadcast %cst_200 : f32 to vector<1x1xf32>
    %660 = arith.divf %658, %659 : vector<1x1xf32>
    %c0_201 = arith.constant 0 : index
    %c0_202 = arith.constant 0 : index
    %661 = vector.load %arg39[%c0_201, %c0_202] : memref<1x1xf32, #tpu.memory_space<vmem>>, vector<1x1xf32>
    tpu.vector_store %arg39[%c0_201, %c0_202], %660 {strides = array<i32>} : memref<1x1xf32, #tpu.memory_space<vmem>>, vector<1x1xf32>,
    %c0_203 = arith.constant 0 : index
    %c0_204 = arith.constant 0 : index
    %662 = vector.load %arg41[%c0_203, %c0_204] : memref<30x32xf32, #tpu.memory_space<vmem>>, vector<30x32xf32>
    %c0_205 = arith.constant 0 : index
    %c0_206 = arith.constant 0 : index
    %663 = vector.load %arg35[%c0_205, %c0_206] : memref<32x20xf32, #tpu.memory_space<vmem>>, vector<32x20xf32>
    %cst_207 = arith.constant dense<0.000000e+00> : vector<30x20xf32>
    %664 = tpu.matmul %662, %663, %cst_207 {dimension_numbers = #tpu.dot_dimension_numbers<[1], [0], [0], [1], [0, 0, 1, 1], [], []>} : vector<30x32xf32>, vector<32x20xf32>, vector<30x20xf32> -> vector<30x20xf32>
    %c0_208 = arith.constant 0 : index
    %c0_209 = arith.constant 0 : index
    %665 = vector.load %arg36[%c0_208, %c0_209] : memref<1x20xf32, #tpu.memory_space<vmem>>, vector<1x20xf32>
    %666 = vector.broadcast %665 : vector<1x20xf32> to vector<30x20xf32>
    %667 = arith.addf %664, %666 : vector<30x20xf32>
    %c0_210 = arith.constant 0 : index
    %c0_211 = arith.constant 0 : index
    %668 = vector.load %arg37[%c0_210, %c0_211] : memref<30x20xf32, #tpu.memory_space<vmem>>, vector<30x20xf32>
    tpu.vector_store %arg37[%c0_210, %c0_211], %667 {strides = array<i32>} : memref<30x20xf32, #tpu.memory_space<vmem>>, vector<30x20xf32>,
    %c0_212 = arith.constant 0 : index
    %c0_213 = arith.constant 0 : index
    %669 = vector.load %arg5[%c0_212, %c0_213] : memref<30x1xi32, #tpu.memory_space<vmem>>, vector<30x1xi32>
    %cst_214 = arith.constant dense<0xFF800000> : vector<30xf32>
    %670 = vector.multi_reduction <maximumf>, %667, %cst_214 [1] : vector<30x20xf32> to vector<30xf32>
    %671 = vector.shape_cast %670 : vector<30xf32> to vector<30x1xf32>
    %672 = vector.broadcast %671 : vector<30x1xf32> to vector<30x20xf32>
    %673 = arith.subf %667, %672 : vector<30x20xf32>
    %674 = math.exp %673 : vector<30x20xf32>
    %cst_215 = arith.constant dense<0.000000e+00> : vector<30xf32>
    %675 = vector.multi_reduction <add>, %674, %cst_215 [1] : vector<30x20xf32> to vector<30xf32>
    %676 = vector.shape_cast %675 : vector<30xf32> to vector<30x1xf32>
    %677 = math.log %676 : vector<30x1xf32>
    %678 = vector.broadcast %677 : vector<30x1xf32> to vector<30x20xf32>
    %679 = arith.subf %673, %678 : vector<30x20xf32>
    %680 = tpu.iota {dimensions = array<i32: 1>} : vector<30x20xi32>
    %681 = vector.broadcast %669 : vector<30x1xi32> to vector<30x20xi32>
    %682 = arith.cmpi eq, %680, %681 : vector<30x20xi32>
    %cst_216 = arith.constant 0.000000e+00 : f32
    %683 = vector.broadcast %cst_216 : f32 to vector<30x20xf32>
    %684 = arith.select %682, %679, %683 : vector<30x20xi1>, vector<30x20xf32>
    %cst_217 = arith.constant dense<0.000000e+00> : vector<30xf32>
    %685 = vector.multi_reduction <add>, %684, %cst_217 [1] : vector<30x20xf32> to vector<30xf32>
    %686 = vector.shape_cast %685 : vector<30xf32> to vector<30x1xf32>
    %cst_218 = arith.constant 0.000000e+00 : f32
    %687 = vector.broadcast %cst_218 : f32 to vector<30x1xf32>
    %688 = arith.subf %687, %686 : vector<30x1xf32>
    %c0_i32 = arith.constant 0 : i32
    %689 = vector.broadcast %c0_i32 : i32 to vector<30x1xi32>
    %690 = arith.cmpi ne, %669, %689 : vector<30x1xi32>
    %691 = arith.extui %690 : vector<30x1xi1> to vector<30x1xi32>
    %692 = arith.sitofp %691 : vector<30x1xi32> to vector<30x1xf32>
    %c0_219 = arith.constant 0 : index
    %c0_220 = arith.constant 0 : index
    %693 = vector.load %arg7[%c0_219, %c0_220] : memref<15x30xf32, #tpu.memory_space<vmem>>, vector<15x30xf32>
    %694 = arith.mulf %688, %692 : vector<30x1xf32>
    %cst_221 = arith.constant dense<0.000000e+00> : vector<15x1xf32>
    %695 = tpu.matmul %693, %694, %cst_221 {dimension_numbers = #tpu.dot_dimension_numbers<[1], [0], [0], [1], [0, 0, 1, 1], [], []>} : vector<15x30xf32>, vector<30x1xf32>, vector<15x1xf32> -> vector<15x1xf32>
    %cst_222 = arith.constant dense<0.000000e+00> : vector<15x1xf32>
    %696 = tpu.matmul %693, %692, %cst_222 {dimension_numbers = #tpu.dot_dimension_numbers<[1], [0], [0], [1], [0, 0, 1, 1], [], []>} : vector<15x30xf32>, vector<30x1xf32>, vector<15x1xf32> -> vector<15x1xf32>
    %cst_223 = arith.constant 1.000000e+00 : f32
    %697 = vector.broadcast %cst_223 : f32 to vector<15x1xf32>
    %698 = arith.maximumf %696, %697 : vector<15x1xf32>
    %699 = arith.divf %695, %698 : vector<15x1xf32>
    %c0_224 = arith.constant 0 : index
    %c0_225 = arith.constant 0 : index
    %700 = vector.load %arg8[%c0_224, %c0_225] : memref<15x1xf32, #tpu.memory_space<vmem>>, vector<15x1xf32>
    %701 = arith.mulf %700, %699 : vector<15x1xf32>
    %702 = vector.shape_cast %701 : vector<15x1xf32> to vector<1x15x1xf32>
    %cst_226 = arith.constant dense<0.000000e+00> : vector<1xf32>
    %703 = vector.multi_reduction <add>, %702, %cst_226 [1, 2] : vector<1x15x1xf32> to vector<1xf32>
    %704 = vector.shape_cast %703 : vector<1xf32> to vector<1x1x1xf32>
    %705 = vector.extract %704[0, 0, 0] : f32 from vector<1x1x1xf32>
    %706 = vector.broadcast %705 : f32 to vector<1x1xf32>
    %cst_227 = arith.constant 1.800000e+01 : f32
    %707 = vector.broadcast %cst_227 : f32 to vector<1x1xf32>
    %708 = arith.divf %706, %707 : vector<1x1xf32>
    %c0_228 = arith.constant 0 : index
    %c0_229 = arith.constant 0 : index
    %709 = vector.load %arg40[%c0_228, %c0_229] : memref<1x1xf32, #tpu.memory_space<vmem>>, vector<1x1xf32>
    tpu.vector_store %arg40[%c0_228, %c0_229], %708 {strides = array<i32>} : memref<1x1xf32, #tpu.memory_space<vmem>>, vector<1x1xf32>,
    return
  }
}

</mosaic_0001>

<bundles_post_ra>
// kernel: tile.8
= control target key start
LH: loop header
LB: loop body
LE: loop exit
PB: predicated region body
PF: predicated region fallthrough
CT: control target
= control target key end

     0   :  { %s22_s0 = inlined_call_operand.vmem [shape: f32[5], index: 0, kind: input, shape index: {}]   ;;  %s23_s1 = inlined_call_operand.vmem [shape: f32[3,5], index: 1, kind: output, shape index: {}]  }
   0x1   :  { %v4_v0 = vld [vmem:[%s22_s0] ss:$0 sm:$0xff] }
   0x2   :  { %5 = vst [vmem:[%s23_s1] sm:$0xf] %v4_v0 }

// kernel: tile.0
= control target key start
LH: loop header
LB: loop body
LE: loop exit
PB: predicated region body
PF: predicated region fallthrough
CT: control target
= control target key end

     0   :  { %s42_s8 = smov 127   ;;  %vm7_vm0 = vcmask 7168   ;;  %s43_s11 = smov 124   ;;  %s78_s0 = inlined_call_operand.vmem [shape: f32[3,5], index: 0, kind: input, shape index: {}]   ;;  %s79_s1 = inlined_call_operand.vmem [shape: f32[15,1], index: 1, kind: output, shape index: {}]  }
   0x1   :  { %v4_v0 = vld [vmem:[%s78_s0] sm:$0xf]  ;;  %s41_s0 = smov 125   ;;  %s44_s12 = smov 126  }
   0x2   :  { %5 = vst [vmem:[#allocation0] sm:$0xf] %v4_v0 }
   0x9   :  { %v21_v1 = vld [vmem:[#allocation0] sm:$0x7]  }
   0xa   :  { %v9_v2 = vld [vmem:[#allocation0] sm:$0x7]   ;;  %22 = vrot.lane.b32.xlu1 %v21_v1, %s41_s0 }
   0xb   :  { %10 = vrot.lane.b32.xlu0 %v9_v2, %s42_s8  ;;  %v6_v3 = vld [vmem:[#allocation0] sm:$0x7]  }
   0xc   :  { %v27_v4 = vld [vmem:[#allocation0] sm:$0x7]   ;;  %8 = vst.msk [vmem:[%s79_s1] ss:$5 sm:$0x7] %vm7_vm0, %v6_v3  }
   0xd   :  { %v15_v5 = vld [vmem:[#allocation0] sm:$0x7]  }
   0xe   :  { %28 = vrot.lane.b32.xlu1 %v27_v4, %s43_s11 }
   0xf   :  { %16 = vrot.lane.b32.xlu0 %v15_v5, %s44_s12 }
  0x7c   :  { %v23_v6 = vpop.permute.xlu1 %22  }
  0x7d   :  { %v11_v7 = vpop.permute.xlu0 %10   ;;  %35 = vst.msk [vmem:[%s79_s1 + $0x3] ss:$5 sm:$0x7] %vm7_vm0, %v23_v6  }
  0x7e   :  { %33 = vst.msk [vmem:[%s79_s1 + $0x1] ss:$5 sm:$0x7] %vm7_vm0, %v11_v7  }
  0x80   :  { %v29_v8 = vpop.permute.xlu1 %28  }
  0x81   :  { %v17_v9 = vpop.permute.xlu0 %16   ;;  %36 = vst.msk [vmem:[%s79_s1 + $0x4] ss:$5 sm:$0x7] %vm7_vm0, %v29_v8  }
  0x82   :  { %34 = vst.msk [vmem:[%s79_s1 + $0x2] ss:$5 sm:$0x7] %vm7_vm0, %v17_v9  }

// kernel: coatt_forward.2
= control target key start
LH: loop header
LB: loop body
LE: loop exit
PB: predicated region body
PF: predicated region fallthrough
CT: control target
= control target key end

     0   :  { %vm30_vm0 = vcmask 1042432   ;;  %v315_v10 = vmov 0.0   ;;  %vm316_vm1 = vmmov 0   ;;  %v317_v12 = vmov 0.0|0.0   ;;  %s406_s0 = inlined_call_operand.vmem [shape: f32[2,3,256], index: 0, kind: input, shape index: {}]   ;;  %s407_s1 = inlined_call_operand.vmem [shape: f32[3,64], index: 1, kind: input, shape index: {}]   ;;  %s408_s3 = inlined_call_operand.vmem [shape: f32[64,14], index: 3, kind: input, shape index: {}]   ;;  %s409_s2 = inlined_call_operand.vmem [shape: f32[1,64], index: 2, kind: input, shape index: {}]   ;;  %s410_s5 = inlined_call_operand.vmem [shape: f32[2,64], index: 5, kind: output, shape index: {0}]   ;;  %s411_s4 = inlined_call_operand.vmem [shape: f32[1,14], index: 4, kind: input, shape index: {}]   ;;  %s412_s6 = inlined_call_operand.vmem [shape: f32[2,14], index: 6, kind: output, shape index: {1}]  }
   0x1   :  { %v22_v0 = vld [vmem:[%s406_s0] sm:$0x77]  ;;  %v23_v1 = vld [vmem:[%s406_s0 + $0x8] sm:$0x77]  ;;  %270 = vmatprep.subr.mxu0 %v315_v10  ;;  %272 = vmatprep.mubr.msk.f32.mxu0 %vm316_vm1, %v315_v10  ;;  %v146_v15 = vld [vmem:[%s408_s3 + $0x10] sm:$0xff]  ;;  %v54_v22 = vlaneseq  ;;  %vm64_vm2 = vcmask 1041409  }
   0x2   :  { %v26_v2 = vcombine.high %v22_v0, %v22_v0  ;;  %v31_v3 = vsel %vm30_vm0, %v22_v0, 0.0  ;;  %v27_v4 = vcombine.high %v23_v1, %v23_v1  ;;  %v36_v6 = vsel %vm30_vm0, %v23_v1, 0.0  ;;  %v44_v11 = vld [vmem:[%s407_s1] sm:$0x7]  ;;  %291 = vmatprep.mubr.msk.f32.mxu1 %vm316_vm1, %v315_v10  ;;  %294 = vmatprep.subr.bf16.mxu1 %v317_v12  ;;  %v145_v14 = vld [vmem:[%s408_s3 + $0x8] sm:$0xff]  ;;  %v147_v17 = vld [vmem:[%s408_s3 + $0x18] sm:$0xff] }
   0x3   :  { %271 = vmatpush3.msk.msra.mxu0 %vm30_vm0, %v44_v11  ;;  %v144_v13 = vld [vmem:[%s408_s3] sm:$0xff]  ;;  %v298_v18 = vpack.c.bf16 %v147_v17, %v146_v15  ;;  %v149_v20 = vld [vmem:[%s408_s3 + $0x28] sm:$0xff]  ;;  %v55_v23 = vand.u32 127, %v54_v22  ;;  %v57_v24 = vshrl.u32 %v54_v22, 7  ;;  %vm66_vm3 = vcmask 23552   ;;  %v150_v33 = vld [vmem:[%s408_s3 + $0x30] sm:$0xff] }
   0x4   :  { %v32_v5 = vsel %vm30_vm0, %v26_v2, 0.0  ;;  %v37_v7 = vsel %vm30_vm0, %v27_v4, 0.0  ;;  %v295_v16 = vpack.c.bf16 %v145_v14, %v144_v13  ;;  %v148_v19 = vld [vmem:[%s408_s3 + $0x20] sm:$0xff]  ;;  %v151_v34 = vld [vmem:[%s408_s3 + $0x38] sm:$0xff]  ;;  %vm142_vm4 = vcmask 517120  }
   0x5   :  { %v33_v8 = vadd.f32 %v32_v5, %v31_v3  ;;  %v38_v9 = vadd.f32 %v37_v7, %v36_v6  ;;  %v301_v21 = vpack.c.bf16 %v149_v20, %v148_v19  ;;  %v58_v26 = vsub.s32 %v55_v23, %v57_v24  ;;  %v254_v36 = vld [vmem:[%s409_s2] ss:$0 sm:$0xff] }
   0x6   :  { %296 = vmatpush3.bf16.msra.mxu1 %v295_v16  ;;  %v304_v35 = vpack.c.bf16 %v151_v34, %v150_v33  ;;  %vm159_vm5 = vcmask 523264   ;;  %v257_v40 = vld [vmem:[%s411_s4] ss:$0 sm:$0xff]  ;;  %vm233_vm6 = vcmask 107520  }
   0x7   :  { %34 = vadd.xlane.f32.xlu0 %v33_v8  ;;  %297 = vmatprep.subr.bf16.mxu1 %v317_v12 }
   0xa   :  { %299 = vmatpush3.bf16.msra.mxu1 %v298_v18 }
   0xb   :  { %39 = vadd.xlane.f32.xlu0 %v38_v9  ;;  %300 = vmatprep.subr.bf16.mxu1 %v317_v12 }
   0xe   :  { %302 = vmatpush3.bf16.msra.mxu1 %v301_v21 }
   0xf   :  { %303 = vmatprep.subr.bf16.mxu1 %v317_v12 }
  0x12   :  { %305 = vmatpush3.bf16.msra.mxu1 %v304_v35 }
  0x94   :  { %v35_v25 = vpop.xlane.xlu0 %34 }
  0x95   :  { %v42_v27 = vmul.f32 0.00390625, %v35_v25 }
  0x97   :  { %v59_v30 = vrot.slane %v42_v27, %v58_v26 }
  0x98   :  { %v40_v28 = vpop.xlane.xlu0 %39 }
  0x99   :  { %v43_v29 = vmul.f32 0.00390625, %v40_v28 }
  0x9b   :  { %v63_v31 = vrot.slane %v43_v29, %v58_v26 }
  0x9d   :  { %v65_v32 = vsel %vm64_vm2, %v63_v31, %v59_v30 }
  0x9e   :  { %273 = vmatmul.mubr.msk.f32.vlgmr.msra.gmra.mrb[0].mxu0 %vm66_vm3, %v65_v32 }
 0x171   :  { %v138_v37 = vpop.f32.mrb[0].mxu0 }
 0x172   :  { %v139_v38 = vadd.f32 %v254_v36, %v138_v37  ;;  %v274_v39 = vpop.f32.mrb[1].mxu0 }
 0x174   :  { %143 = vst.msk [vmem:[%s410_s5] sm:$0x3] %vm142_vm4, %v139_v38  ;;  %292 = vmatmul.mubr.msk.f32.vlgmr.msra.gmra.mrb[0].mxu1 %vm159_vm5, %v139_v38 }
 0x247   :  { %v229_v41 = vpop.f32.mrb[0].mxu1 }
 0x248   :  { %v230_v42 = vadd.f32 %v257_v40, %v229_v41  ;;  %v293_v43 = vpop.f32.mrb[1].mxu1 }
 0x24a   :  { %v234_v44 = vsel %vm233_vm6, %v230_v42, -inf }
 0x24b   :  { %235 = vmax.xlane.f32.xlu1 %v234_v44 }
 0x2d8   :  { %v236_v45 = vpop.xlane.xlu1 %235 }
 0x2d9   :  { %v237_v46 = vsub.f32 %v230_v42, %v236_v45 }
 0x2db   :  { %v238_v47 = vmul.f32 1.442695, %v237_v46 }
 0x2dd   :  { %311 = vpow2.f32 %v238_v47 }
 0x2e7   :  { %v312_v48 = vpop.eup %311 }
 0x2e8   :  { %v240_v49 = vsel %vm233_vm6, %v312_v48, 0.0 }
 0x2e9   :  { %241 = vadd.xlane.f32.xlu1 %v240_v49 }
 0x376   :  { %v242_v50 = vpop.xlane.xlu1 %241 }
 0x377   :  { %313 = vrcp.f32 %v242_v50 }
 0x381   :  { %v314_v51 = vpop.eup %313 }
 0x382   :  { %v244_v52 = vmul.f32 %v314_v51, %v312_v48 }
 0x384   :  { %245 = vst.msk [vmem:[%s412_s6] sm:$0x3] %vm233_vm6, %v244_v52 }

// kernel: coatt_forward.3
= control target key start
LH: loop header
LB: loop body
LE: loop exit
PB: predicated region body
PF: predicated region fallthrough
CT: control target
= control target key end

     0   :  { %s8424_s6 = smov 1   ;;  %s8425_s10 = smov 2   ;;  %s9760_s0 = inlined_call_operand.smem [shape: u32[41], index: -1, kind: input, shape index: {}] }
   0x1   :  { %s8484_s5 = sld [smem:[%s9760_s0]]   ;;  %s8426_s14 = smov 3  }
   0x2   :  { %s8489_s9 = sld [smem:[%s9760_s0 + %s8424_s6]]   ;;  %s8427_s18 = smov 4  }
   0x3   :  { %s8494_s13 = sld [smem:[%s9760_s0 + %s8425_s10]]   ;;  %s8428_s22 = smov 5  }
   0x4   :  { %s8499_s17 = sld [smem:[%s9760_s0 + %s8426_s14]]   ;;  %s8429_s26 = smov 6  }
   0x5   :  { %s8504_s21 = sld [smem:[%s9760_s0 + %s8427_s18]]   ;;  %s8430_s30 = smov 7  }
   0x6   :  { %s8509_s25 = sld [smem:[%s9760_s0 + %s8428_s22]]   ;;  %s8431_s4 = smov 8  }
   0x7   :  { %s8514_s29 = sld [smem:[%s9760_s0 + %s8429_s26]]   ;;  %s8432_s10 = smov 9  }
   0x8   :  { %s8519_s3 = sld [smem:[%s9760_s0 + %s8430_s30]]   ;;  %s8433_s15 = smov 10  }
   0x9   :  { %s8524_s8 = sld [smem:[%s9760_s0 + %s8431_s4]]   ;;  %s8434_s20 = smov 11  }
   0xa   :  { %9794 = sst [smem:[#allocation9_spill]] %s8499_s17  ;;  %s8435_s26 = smov 12  }
   0xb   :  { %s8529_s14 = sld [smem:[%s9760_s0 + %s8432_s10]]   ;;  %s8436_s1 = smov 13  }
   0xc   :  { %9795 = sst [smem:[#allocation10_spill]] %s8509_s25  ;;  %s8437_s7 = smov 14  }
   0xd   :  { %9796 = sst [smem:[#allocation11_spill]] %s8514_s29  ;;  %s8439_s22 = smov 16  }
   0xe   :  { %9797 = sst [smem:[#allocation12_spill]] %s8519_s3  ;;  %s8440_s28 = smov 17  }
   0xf   :  { %9798 = sst [smem:[#allocation13_spill]] %s8524_s8  ;;  %s8457_s10 = smov 34  }
  0x10   :  { %s8534_s19 = sld [smem:[%s9760_s0 + %s8433_s15]]   ;;  %s8438_s15 = smov 15  }
  0x11   :  { %s8539_s24 = sld [smem:[%s9760_s0 + %s8434_s20]]   ;;  %s8458_s16 = smov 35  }
  0x12   :  { %s8544_s30 = sld [smem:[%s9760_s0 + %s8435_s26]]   ;;  %s8459_s23 = smov 36  }
  0x13   :  { %s8549_s6 = sld [smem:[%s9760_s0 + %s8436_s1]]   ;;  %s8456_s1 = smov 33  }
  0x14   :  { %s8554_s12 = sld [smem:[%s9760_s0 + %s8437_s7]]   ;;  %s8441_s7 = smov 18  }
  0x15   :  { %s8559_s20 = sld [smem:[%s9760_s0 + %s8438_s15]]   ;;  %s8442_s15 = smov 19  }
  0x16   :  { %s8564_s27 = sld [smem:[%s9760_s0 + %s8439_s22]]   ;;  %s8443_s22 = smov 20  }
  0x17   :  { %s8569_s4 = sld [smem:[%s9760_s0 + %s8440_s28]]   ;;  %s8444_s28 = smov 21  }
  0x18   :  { %s8574_s8 = sld [smem:[%s9760_s0 + %s8441_s7]]   ;;  %s8445_s7 = smov 22  }
  0x19   :  { %9799 = sst [smem:[#allocation14_spill]] %s8549_s6 }
  0x1a   :  { %s8579_s3 = sld [smem:[%s9760_s0 + %s8442_s15]]   ;;  %s8446_s15 = smov 23  }
  0x1b   :  { %s8584_s29 = sld [smem:[%s9760_s0 + %s8443_s22]]   ;;  %s8447_s22 = smov 24  }
  0x1c   :  { %s8589_s25 = sld [smem:[%s9760_s0 + %s8444_s28]]   ;;  %s8448_s28 = smov 25  }
  0x1d   :  { %s8594_s17 = sld [smem:[%s9760_s0 + %s8445_s7]]   ;;  %s8449_s7 = smov 26  }
  0x1e   :  { %s8662_s6 = sld [smem:[%s9760_s0 + %s8459_s23]]   ;;  %s8463_s23 = smov 40  }
  0x20   :  { %9800 = sst [smem:[#allocation15_spill]] %s8579_s3 }
  0x21   :  { %9801 = sst [smem:[#allocation16_spill]] %s8584_s29 }
  0x22   :  { %9802 = sst [smem:[#allocation17_spill]] %s8589_s25 }
  0x23   :  { %9803 = sst [smem:[#allocation18_spill]] %s8594_s17 }
  0x24   :  { %s8599_s3 = sld [smem:[%s9760_s0 + %s8446_s15]]   ;;  %s8450_s15 = smov 27  }
  0x25   :  { %s8604_s29 = sld [smem:[%s9760_s0 + %s8447_s22]]   ;;  %s8451_s22 = smov 28  }
  0x26   :  { %s8609_s25 = sld [smem:[%s9760_s0 + %s8448_s28]]   ;;  %s8452_s28 = smov 29  }
  0x27   :  { %s8614_s17 = sld [smem:[%s9760_s0 + %s8449_s7]]   ;;  %s8453_s7 = smov 30  }
  0x28   :  { %9816 = sst [smem:[#allocation31_spill]] %s8662_s6 }
  0x29   :  { %s8682_s6 = sld [smem:[%s9760_s0 + %s8463_s23]]  }
  0x2a   :  { %9804 = sst [smem:[#allocation19_spill]] %s8599_s3 }
  0x2b   :  { %9805 = sst [smem:[#allocation20_spill]] %s8604_s29 }
  0x2c   :  { %9806 = sst [smem:[#allocation21_spill]] %s8609_s25 }
  0x2d   :  { %9807 = sst [smem:[#allocation22_spill]] %s8614_s17 }
  0x2e   :  { %s8619_s3 = sld [smem:[%s9760_s0 + %s8450_s15]]   ;;  %s8454_s15 = smov 31  }
  0x2f   :  { %s8624_s29 = sld [smem:[%s9760_s0 + %s8451_s22]]   ;;  %s8455_s22 = smov 32  }
  0x30   :  { %s8629_s25 = sld [smem:[%s9760_s0 + %s8452_s28]]  }
  0x31   :  { %s8634_s17 = sld [smem:[%s9760_s0 + %s8453_s7]]  }
  0x34   :  { %9808 = sst [smem:[#allocation23_spill]] %s8619_s3 }
  0x35   :  { %9809 = sst [smem:[#allocation24_spill]] %s8624_s29 }
  0x36   :  { %9810 = sst [smem:[#allocation25_spill]] %s8629_s25 }
  0x37   :  { %9811 = sst [smem:[#allocation26_spill]] %s8634_s17 }
  0x38   :  { %s8639_s3 = sld [smem:[%s9760_s0 + %s8454_s15]]  }
  0x39   :  { %s6361_s29 = sld [smem:[%s9760_s0 + %s8455_s22]]  }
  0x3a   :  { %s8647_s25 = sld [smem:[%s9760_s0 + %s8456_s1]]   ;;  %s8460_s1 = smov 37  }
  0x3b   :  { %s8652_s17 = sld [smem:[%s9760_s0 + %s8457_s10]]   ;;  %s8461_s10 = smov 38  }
  0x3e   :  { %9812 = sst [smem:[#allocation27_spill]] %s8639_s3 }
  0x3f   :  { %s8657_s3 = sld [smem:[%s9760_s0 + %s8458_s16]]   ;;  %s8462_s16 = smov 39  }
  0x40   :  { %9813 = sst [smem:[#allocation28_spill]] %s8647_s25 }
  0x41   :  { %9814 = sst [smem:[#allocation29_spill]] %s8652_s17 }
  0x42   :  { %s8667_s25 = sld [smem:[%s9760_s0 + %s8460_s1]]  }
  0x43   :  { %s8672_s17 = sld [smem:[%s9760_s0 + %s8461_s10]]  }
  0x45   :  { %9815 = sst [smem:[#allocation30_spill]] %s8657_s3 }
  0x46   :  { %s8677_s3 = sld [smem:[%s9760_s0 + %s8462_s16]]  }
  0x47   :  { %87 = vsyncpa [#allocation4], 0  ;;  %v234_v0 = vld [vmem:[%s6361_s29] sm:$0xff]  ;;  %v235_v1 = vld [vmem:[%s6361_s29 + $0x8] sm:$0xff]  ;;  %vm253_vm0 = vcmask 261120   ;;  %v9784_v6 = vmov 0.0|0.0  }
  0x48   :  { %v236_v2 = vld [vmem:[%s6361_s29 + $0x10] sm:$0xff]  ;;  %v8684_v3 = vpack.c.bf16 %v235_v1, %v234_v0  ;;  %v237_v4 = vld [vmem:[%s6361_s29 + $0x18] sm:$0xff]  ;;  %v243_v5 = vld [vmem:[%s8504_s21] sm:$0xff]  ;;  %7618 = vmatprep.subr.bf16.mxu1 %v9784_v6  ;;  %vm8465_vm1 = vmmov 0   ;;  %v9782_v11 = vmov 0.0  }
  0x49   :  { %v8688_v7 = vpack.c.bf16 %v237_v4, %v236_v2  ;;  %6860 = vmatprep.mubr.msk.f32.mxu0 %vm253_vm0, %v243_v5  ;;  %v433_v8 = vld [vmem:[%s8554_s12] sm:$0xff]  ;;  %v434_v9 = vld [vmem:[%s8554_s12 + $0x8] sm:$0xff]  ;;  %6882 = vmatprep.mubr.msk.f32.mxu1 %vm8465_vm1, %v9782_v11  ;;  %v353_v14 = vld [vmem:[%s8529_s14 + $0x10] sm:$0xff] }
  0x4a   :  { %v351_v10 = vld [vmem:[%s8529_s14] sm:$0xff]  ;;  %7611 = vmatprep.subr.bf16.mxu0 %v8684_v3  ;;  %v352_v12 = vld [vmem:[%s8529_s14 + $0x8] sm:$0xff]  ;;  %v7630_v15 = vpack.c.bf16 %v434_v9, %v433_v8  ;;  %v354_v16 = vld [vmem:[%s8529_s14 + $0x18] sm:$0xff] }
  0x4b   :  { %9817 = vst [vmem:[#allocation32_spill] sm:$0xff] %v8688_v7  ;;  %7613 = vmatpush3.bf16.msra.mxu0 %v8684_v3  ;;  %v7619_v13 = vpack.c.bf16 %v352_v12, %v351_v10  ;;  %v435_v17 = vld [vmem:[%s8554_s12 + $0x10] sm:$0xff]  ;;  %v436_v18 = vld [vmem:[%s8554_s12 + $0x18] sm:$0xff]  ;;  %v7622_v19 = vpack.c.bf16 %v354_v16, %v353_v14  ;;  %v355_v20 = vld [vmem:[%s8529_s14 + $0x20] sm:$0xff] }
  0x4c   :  { %7615 = vmatprep.subr.bf16.mxu0 %v8688_v7  ;;  %v356_v21 = vld [vmem:[%s8529_s14 + $0x28] sm:$0xff]  ;;  %v245_v23 = vld [vmem:[%s8504_s21 + $0x10] sm:$0xff]  ;;  %v7634_v24 = vpack.c.bf16 %v436_v18, %v435_v17 }
  0x4d   :  { %7620 = vmatpush3.bf16.msra.mxu1 %v7619_v13  ;;  %v244_v22 = vld [vmem:[%s8504_s21 + $0x8] sm:$0xff]  ;;  %v7625_v25 = vpack.c.bf16 %v356_v21, %v355_v20 }
  0x4e   :  { %7621 = vmatprep.subr.bf16.mxu1 %v9784_v6 }
  0x4f   :  { %7617 = vmatpush3.bf16.msra.mxu0 %v8688_v7 }
  0x50   :  { %7631 = vmatprep.subr.bf16.mxu0 %v7630_v15 }
  0x51   :  { %7623 = vmatpush3.bf16.msra.mxu1 %v7622_v19 }
  0x52   :  { %88 = vsyncpa [#allocation6], 0  ;;  %6861 = vmatmul.mubr.msk.f32.vlgmr.msra.gmra.mrb[0].mxu0 %vm253_vm0, %v244_v22  ;;  %7624 = vmatprep.subr.bf16.mxu1 %v9784_v6  ;;  %v357_v26 = vld [vmem:[%s8529_s14 + $0x30] sm:$0xff]  ;;  %v358_v27 = vld [vmem:[%s8529_s14 + $0x38] sm:$0xff]  ;;  %vm359_vm2 = vcmask 523264   ;;  %vm762_vm3 = vcmask 15360  }
  0x53   :  { %7633 = vmatpush3.bf16.msra.mxu0 %v7630_v15  ;;  %6863 = vmatprep.mubr.msk.f32.mxu0 %vm253_vm0, %v245_v23  ;;  %v246_v28 = vld [vmem:[%s8504_s21 + $0x18] sm:$0x3f]  ;;  %v8717_v29 = vld [vmem:[%s8489_s9] sm:$0xff]  ;;  %v170_v31 = vld [vmem:[%s8534_s19 + $0x8] sm:$0xff]  ;;  %v7628_v32 = vpack.c.bf16 %v358_v27, %v357_v26  ;;  %vm769_vm4 = vcmask 1041408   ;;  %s9821_s0 = sld [smem:[#allocation14_spill]] }
  0x54   :  { %7635 = vmatprep.subr.bf16.mxu0 %v7634_v24  ;;  %v169_v30 = vld [vmem:[%s8534_s19] sm:$0xff]  ;;  %v8726_v33 = vld [vmem:[%s8489_s9 + $0x8] sm:$0xf]  ;;  %v171_v35 = vld [vmem:[%s8534_s19 + $0x10] sm:$0xff]  ;;  %vm950_vm5 = vcmask 257024   ;;  %vm679_vm6 = vcmask 517120  }
  0x55   :  { %7626 = vmatpush3.bf16.msra.mxu1 %v7625_v25  ;;  %v8728_v34 = vpack.c.bf16 %v170_v31, %v169_v30  ;;  %v172_v36 = vld [vmem:[%s8534_s19 + $0x18] sm:$0xff]  ;;  %v8734_v37 = vld [vmem:[%s8484_s5] sm:$0x3]  ;;  %v184_v40 = vld [vmem:[%s8559_s20 + $0x8] sm:$0xff]  ;;  %s9822_s21 = sld [smem:[#allocation15_spill]]  ;;  %s9823_s29 = sld [smem:[#allocation16_spill]] }
  0x56   :  { %6864 = vmatmul.mubr.msk.f32.gmra.mrb[2].mxu0 %vm253_vm0, %v246_v28  ;;  %7627 = vmatprep.subr.bf16.mxu1 %v9784_v6  ;;  %v8740_v38 = vpack.c.bf16 %v172_v36, %v171_v35  ;;  %v183_v39 = vld [vmem:[%s8559_s20] sm:$0xff]  ;;  %v185_v42 = vld [vmem:[%s8559_s20 + $0x10] sm:$0xff]  ;;  %v186_v43 = vld [vmem:[%s8559_s20 + $0x18] sm:$0xff]  ;;  %s9824_s14 = sld [smem:[#allocation9_spill]]  ;;  %vm976_vm7 = vcmask 1043456   ;;  %vm8467_vm8 = vmmov 1  }
  0x57   :  { %7637 = vmatpush3.bf16.msra.mxu0 %v7634_v24  ;;  %6893 = vmatprep.mubr.msk.f32.mxu0 %vm253_vm0, %v8717_v29  ;;  %v8752_v41 = vpack.c.bf16 %v184_v40, %v183_v39  ;;  %v8759_v44 = vpack.c.bf16 %v186_v43, %v185_v42  ;;  %v174_v45 = vld [vmem:[%s8544_s30] sm:$0xff]  ;;  %v175_v46 = vld [vmem:[%s8544_s30 + $0x8] sm:$0xff]  ;;  %v176_v48 = vld [vmem:[%s8544_s30 + $0x10] sm:$0xff]  ;;  %s9827_s19 = sld [smem:[#allocation19_spill]]  ;;  %vm972_vm10 = vcmask 97280   ;;  %s9829_s12 = sld [smem:[#allocation23_spill]] }
  0x58   :  { %7638 = vmatprep.subr.bf16.mxu0 %v9784_v6  ;;  %v8768_v47 = vpack.c.bf16 %v175_v46, %v174_v45  ;;  %v177_v49 = vld [vmem:[%s8544_s30 + $0x18] sm:$0xff]  ;;  %v178_v51 = vld [vmem:[%s8544_s30 + $0x20] sm:$0xff]  ;;  %v179_v52 = vld [vmem:[%s8544_s30 + $0x28] sm:$0xff]  ;;  %s9830_s20 = sld [smem:[#allocation17_spill]]  ;;  %s8468_s1 = smov 64   ;;  %vm1692_vm11 = vcmask 9216  }
  0x59   :  { %7629 = vmatpush3.bf16.msra.mxu1 %v7628_v32  ;;  %v8774_v50 = vpack.c.bf16 %v177_v49, %v176_v48  ;;  %v8780_v53 = vpack.c.bf16 %v179_v52, %v178_v51  ;;  %v8784_v54 = vld [vmem:[%s8494_s13] sm:$0xff]  ;;  %v180_v55 = vld [vmem:[%s8544_s30 + $0x30] sm:$0xff]  ;;  %v181_v56 = vld [vmem:[%s8544_s30 + $0x38] sm:$0xff]  ;;  %s9828_s30 = sld [smem:[#allocation18_spill]]  ;;  %s9832_s28 = sld [smem:[#allocation21_spill]]  ;;  %vm1895_vm12 = vcmask 254976  }
  0x5a   :  { %6894 = vmatmul.mubr.msk.f32.vlgmr.msra.gmra.mrb[4].mxu0 %vm253_vm0, %v8726_v33  ;;  %7644 = vmatprep.subr.bf16.mxu1 %v9784_v6  ;;  %v8791_v57 = vpack.c.bf16 %v181_v56, %v180_v55  ;;  %v8809_v2 = vld [vmem:[%s8539_s24] ss:$0 sm:$0xff]  ;;  %v8814_v12 = vld [vmem:[%s8494_s13 + $0x8] sm:$0xf]  ;;  %v190_v18 = vld [vmem:[%s8569_s4 + $0x10] sm:$0xff]  ;;  %s8469_s2 = smov 32  }
  0x5b   :  { %7640 = vmatpush3.bf16.msra.mxu0 %v8728_v34  ;;  %6904 = vmatprep.mubr.msk.f32.mxu0 %vm8465_vm1, %v9782_v11  ;;  %v188_v15 = vld [vmem:[%s8569_s4] sm:$0xff]  ;;  %v189_v16 = vld [vmem:[%s8569_s4 + $0x8] sm:$0xff]  ;;  %v191_v19 = vld [vmem:[%s8569_s4 + $0x18] sm:$0xff]  ;;  %s9831_s4 = sld [smem:[#allocation20_spill]]  ;;  %s9833_s10 = sld [smem:[#allocation24_spill]]  ;;  %vm2004_vm13 = vcmask 257026  }
  0x5c   :  { %7641 = vmatprep.subr.bf16.mxu0 %v9784_v6  ;;  %6883 = vmatmul.mubr.msk.f32.vlgmr.msra.gmra.mrb[0].mxu1 %vm359_vm2, %v8734_v37  ;;  %v8826_v17 = vpack.c.bf16 %v189_v16, %v188_v15  ;;  %v8830_v20 = vpack.c.bf16 %v191_v19, %v190_v18  ;;  %v8838_v21 = vld [vmem:[%s8564_s27] ss:$0 sm:$0xff]  ;;  %vm8890_vm9 = vmpackc.low %vm976_vm7, %vm8467_vm8  ;;  %s9834_s7 = sld [smem:[#allocation22_spill]]  ;;  %s9835_s11 = sld [smem:[#allocation29_spill]]  ;;  %vm2228_vm14 = vcmask 261126   ;;  %vm2116_vm15 = vcmask 259076  }
  0x5d   :  { %6923 = vmatprep.mubr.msk.f32.mxu1 %vm8465_vm1, %v9782_v11  ;;  %7646 = vmatpush3.bf16.msra.mxu1 %v8768_v47  ;;  %v8849_v35 = vld [vmem:[%s8574_s8] ss:$0 sm:$0xff]  ;;  %s9837_s16 = sld [smem:[#allocation26_spill]]  ;;  %s9839_s15 = sld [smem:[#allocation25_spill]] }
  0x5e   :  { %7647 = vmatprep.subr.bf16.mxu1 %v9784_v6  ;;  %v8855_v45 = vld [vmem:[%s9821_s0] ss:$0 sm:$0xff]  ;;  %s8470_s18 = smov 96   ;;  %s9840_s23 = sld [smem:[#allocation28_spill]] }
  0x5f   :  { %7643 = vmatpush3.bf16.msra.mxu0 %v8740_v38  ;;  %v193_v19 = vld [vmem:[%s9822_s21] sm:$0xff]  ;;  %s9843_s22 = sld [smem:[#allocation27_spill]] }
  0x60   :  { %7656 = vmatprep.subr.bf16.mxu0 %v9784_v6 }
  0x61   :  { %7649 = vmatpush3.bf16.msra.mxu1 %v8774_v50 }
  0x62   :  { %6905 = vmatmul.mubr.f32.vlgmr.msra.gmra.mrb[6].mxu0 %v9782_v11  ;;  %7650 = vmatprep.subr.bf16.mxu1 %v9784_v6 }
  0x63   :  { %7658 = vmatpush3.bf16.msra.mxu0 %v8752_v41  ;;  %6934 = vmatprep.mubr.msk.f32.mxu0 %vm8465_vm1, %v9782_v11 }
  0x64   :  { %7659 = vmatprep.subr.bf16.mxu0 %v9784_v6 }
  0x65   :  { %7652 = vmatpush3.bf16.msra.mxu1 %v8780_v53 }
  0x66   :  { %7653 = vmatprep.subr.bf16.mxu1 %v9784_v6 }
  0x67   :  { %7661 = vmatpush3.bf16.msra.mxu0 %v8759_v44 }
  0x69   :  { %7655 = vmatpush3.bf16.msra.mxu1 %v8791_v57 }
  0x6a   :  { %6935 = vmatmul.mubr.f32.vlgmr.msra.gmra.mrb[8].mxu0 %v9782_v11  ;;  %7663 = vmatprep.subr.bf16.mxu1 %v8826_v17 }
  0x6b   :  { %6939 = vmatprep.mubr.msk.f32.mxu0 %vm762_vm3, %v8784_v54 }
 0x125   :  { %v8794_v58 = vpop.f32.mrb[0].mxu0 }
 0x126   :  { %9818 = vst [vmem:[#allocation33_spill] sm:$0xff] %v8794_v58  ;;  %v8796_v59 = vpop.f32.mrb[1].mxu0 }
 0x129   :  { %v8798_v60 = vpop.f32.mrb[2].mxu0 }
 0x12a   :  { %9819 = vst [vmem:[#allocation34_spill] sm:$0xff] %v8798_v60  ;;  %v8800_v61 = vpop.f32.mrb[3].mxu0 }
 0x12b   :  { %9820 = vst [vmem:[#allocation35_spill] sm:$0xff] %v8800_v61  ;;  %v241_v61 = vld [vmem:[%s9840_s23 + $0x18] sm:$0xff] }
 0x12d   :  { %v8802_v62 = vpop.f32.mrb[4].mxu0 }
 0x12e   :  { %v8804_v63 = vpop.f32.mrb[5].mxu0 }
 0x12f   :  { %v8806_v0 = vpop.f32.mrb[0].mxu1 }
 0x130   :  { %v6884_v1 = vpop.f32.mrb[1].mxu1 }
 0x135   :  { %v587_v4 = vpop.f32.mrb[6].mxu0 }
 0x136   :  { %v591_v5 = vadd.f32 %v587_v4, %v8806_v0  ;;  %v6906_v8 = vpop.f32.mrb[7].mxu0 }
 0x138   :  { %v598_v9 = vadd.f32 %v8809_v2, %v591_v5 }
 0x13a   :  { %8102 = vtanh.f32 %v598_v9 }
 0x13d   :  { %v758_v10 = vpop.f32.mrb[8].mxu0 }
 0x13e   :  { %v6936_v13 = vpop.f32.mrb[9].mxu0  ;;  %6937 = vmatprep.subr.msk.mxu0 %vm769_vm4, %v758_v10 }
 0x13f   :  { %6938 = vmatpush3.msk.msra.mxu0 %vm769_vm4, %v758_v10 }
 0x140   :  { %6940 = vmatmul.mubr.msk.f32.vlgmr.msra.gmra.mrb[10].mxu0 %vm762_vm3, %v8814_v12  ;;  %7670 = vmatprep.subr.bf16.mxu0 %v9784_v6 }
 0x141   :  { %6957 = vmatprep.mubr.msk.f32.mxu0 %vm8465_vm1, %v9782_v11 }
 0x144   :  { %v8103_v14 = vpop.eup %8102 }
 0x145   :  { %6924 = vmatmul.mubr.msk.f32.vlgmr.msra.gmra.mrb[2].mxu1 %vm359_vm2, %v8103_v14 }
 0x146   :  { %7665 = vmatpush3.bf16.msra.mxu1 %v8826_v17 }
 0x147   :  { %7667 = vmatprep.subr.bf16.mxu1 %v8830_v20 }
 0x14a   :  { %7669 = vmatpush3.bf16.msra.mxu1 %v8830_v20 }
 0x14b   :  { %7680 = vmatprep.subr.bf16.mxu1 %v9784_v6 }
 0x213   :  { %v6941_v22 = vpop.f32.mrb[10].mxu0 }
 0x214   :  { %v849_v23 = vadd.f32 %v6941_v22, %v8802_v62  ;;  %v839_v24 = vpop.f32.mrb[11].mxu0  ;;  %v194_v22 = vld [vmem:[%s9822_s21 + $0x8] sm:$0xff] }
 0x215   :  { %v848_v25 = vadd.f32 %v839_v24, %v8804_v63  ;;  %v195_v24 = vld [vmem:[%s9822_s21 + $0x10] sm:$0xff] }
 0x216   :  { %v857_v26 = vadd.f32 %v8838_v21, %v849_v23  ;;  %v8865_v23 = vpack.c.bf16 %v194_v22, %v193_v19  ;;  %v212_v19 = vld [vmem:[%s9827_s19 + $0x10] sm:$0xff]  ;;  %v213_v22 = vld [vmem:[%s9827_s19 + $0x18] sm:$0xff] }
 0x217   :  { %v856_v27 = vadd.f32 %v8838_v21, %v848_v25  ;;  %v196_v25 = vld [vmem:[%s9822_s21 + $0x18] sm:$0xff] }
 0x218   :  { %v675_v28 = vpop.f32.mrb[2].mxu1 }
 0x219   :  { %8104 = vtanh.f32 %v856_v27  ;;  %v6925_v30 = vpop.f32.mrb[3].mxu1  ;;  %v676_v46 = vadd.f32 %v8855_v45, %v675_v28  ;;  %v197_v27 = vld [vmem:[%s9822_s21 + $0x20] sm:$0xff]  ;;  %v198_v28 = vld [vmem:[%s9822_s21 + $0x28] sm:$0xff] }
 0x21a   :  { %8106 = vtanh.f32 %v857_v26  ;;  %v8871_v26 = vpack.c.bf16 %v196_v25, %v195_v24  ;;  %v8877_v30 = vpack.c.bf16 %v198_v28, %v197_v27  ;;  %v8928_v28 = vpack.c.bf16 %v213_v22, %v212_v19 }
 0x21b   :  { %v680_v49 = vsel %vm679_vm6, %v676_v46, -inf }
 0x223   :  { %v8105_v31 = vpop.eup %8104 }
 0x224   :  { %v8107_v32 = vpop.eup %8106  ;;  %6950 = vmatprep.mubr.msk.f32.mxu1 %vm253_vm0, %v8105_v31  ;;  %v199_v31 = vld [vmem:[%s9822_s21 + $0x30] sm:$0xff] }
 0x225   :  { %6951 = vmatmul.mubr.msk.f32.vlgmr.msra.gmra.mrb[4].mxu1 %vm253_vm0, %v8107_v32  ;;  %v200_v32 = vld [vmem:[%s9822_s21 + $0x38] sm:$0xff] }
 0x226   :  { %6987 = vmatprep.mubr.msk.f32.mxu1 %vm8465_vm1, %v9782_v11  ;;  %7682 = vmatpush3.bf16.msra.mxu1 %v8865_v23 }
 0x227   :  { %7683 = vmatprep.subr.bf16.mxu1 %v9784_v6 }
 0x22a   :  { %7685 = vmatpush3.bf16.msra.mxu1 %v8871_v26 }
 0x22b   :  { %7686 = vmatprep.subr.bf16.mxu1 %v9784_v6 }
 0x22e   :  { %7688 = vmatpush3.bf16.msra.mxu1 %v8877_v30 }
 0x22f   :  { %7689 = vmatprep.subr.bf16.mxu1 %v9784_v6 }
 0x2f8   :  { %v6952_v36 = vpop.f32.mrb[4].mxu1 }
 0x2f9   :  { %v938_v39 = vpop.f32.mrb[5].mxu1  ;;  %v944_v42 = vadd.f32 %v6952_v36, %v8849_v35  ;;  %v8883_v36 = vpack.c.bf16 %v200_v32, %v199_v31  ;;  %v206_v31 = vld [vmem:[%s9828_s30] sm:$0xff]  ;;  %v207_v32 = vld [vmem:[%s9828_s30 + $0x8] sm:$0xff] }
 0x2fa   :  { %v939_v40 = vadd.f32 %v8849_v35, %v938_v39 }
 0x2fb   :  { %v951_v48 = vsel %vm950_vm5, %v944_v42, -inf  ;;  %7691 = vmatpush3.bf16.msra.mxu1 %v8883_v36 }
 0x2fc   :  { %v947_v43 = vsel %vm253_vm0, %v939_v40, -inf  ;;  %7704 = vmatprep.subr.bf16.mxu1 %v9784_v6 }
 0x2fd   :  { %948 = vmax.xlane.f32.xlu0 %v947_v43 }
 0x301   :  { %952 = vmax.xlane.f32.xlu0 %v951_v48 }
 0x305   :  { %681 = vmax.xlane.f32.xlu0 %v680_v49 }
 0x38a   :  { %v949_v51 = vpop.xlane.xlu0 %948 }
 0x38b   :  { %v954_v52 = vsub.f32 %v939_v40, %v949_v51 }
 0x38d   :  { %v956_v55 = vmul.f32 1.442695, %v954_v52 }
 0x38e   :  { %v953_v56 = vpop.xlane.xlu0 %952 }
 0x38f   :  { %8108 = vpow2.f32 %v956_v55  ;;  %v955_v1 = vsub.f32 %v944_v42, %v953_v56 }
 0x391   :  { %v958_v4 = vmul.f32 1.442695, %v955_v1  ;;  %v201_v1 = vld [vmem:[%s9823_s29] sm:$0xff] }
 0x392   :  { %v682_v5 = vpop.xlane.xlu0 %681 }
 0x393   :  { %8110 = vpow2.f32 %v958_v4  ;;  %v683_v8 = vsub.f32 %v676_v46, %v682_v5  ;;  %v202_v4 = vld [vmem:[%s9823_s29 + $0x8] sm:$0xff] }
 0x395   :  { %v684_v9 = vmul.f32 1.442695, %v683_v8 }
 0x397   :  { %8112 = vpow2.f32 %v684_v9 }
 0x399   :  { %v8109_v10 = vpop.eup %8108 }
 0x39a   :  { %v960_v13 = vsel %vm253_vm0, %v8109_v10, 0.0 }
 0x39b   :  { %961 = vadd.xlane.f32.xlu1 %v960_v13  ;;  %v204_v13 = vld [vmem:[%s9823_s29 + $0x18] sm:$0xff] }
 0x39d   :  { %v8111_v14 = vpop.eup %8110 }
 0x39e   :  { %v963_v15 = vsel %vm950_vm5, %v8111_v14, 0.0 }
 0x39f   :  { %964 = vadd.xlane.f32.xlu1 %v963_v15  ;;  %v211_v15 = vld [vmem:[%s9827_s19 + $0x8] sm:$0xff] }
 0x3a1   :  { %v8113_v16 = vpop.eup %8112 }
 0x3a2   :  { %v686_v18 = vsel %vm679_vm6, %v8113_v16, 0.0 }
 0x3a3   :  { %687 = vadd.xlane.f32.xlu1 %v686_v18 }
 0x428   :  { %v962_v39 = vpop.xlane.xlu1 %961 }
 0x429   :  { %8114 = vrcp.f32 %v962_v39  ;;  %v8936_v39 = vpack.c.bf16 %v207_v32, %v206_v31 }
 0x42c   :  { %v965_v40 = vpop.xlane.xlu1 %964 }
 0x42d   :  { %8116 = vrcp.f32 %v965_v40  ;;  %v208_v40 = vld [vmem:[%s9828_s30 + $0x10] sm:$0xff] }
 0x430   :  { %v688_v42 = vpop.xlane.xlu1 %687 }
 0x431   :  { %8118 = vrcp.f32 %v688_v42  ;;  %v209_v42 = vld [vmem:[%s9828_s30 + $0x18] sm:$0xff] }
 0x433   :  { %v8115_v43 = vpop.eup %8114 }
 0x434   :  { %v967_v46 = vmul.f32 %v8115_v43, %v8109_v10  ;;  %v203_v10 = vld [vmem:[%s9823_s29 + $0x10] sm:$0xff]  ;;  %v8946_v43 = vpack.c.bf16 %v209_v42, %v208_v40 }
 0x436   :  { %v970_v51 = vmul.f32 %v967_v46, %v8717_v29  ;;  %v8900_v29 = vld [vmem:[%s9824_s14] sm:$0x3] }
 0x437   :  { %v8117_v48 = vpop.eup %8116  ;;  %v220_v46 = vld [vmem:[%s9829_s12] sm:$0xff] }
 0x438   :  { %v969_v49 = vmul.f32 %v8117_v48, %v8111_v14  ;;  %v210_v14 = vld [vmem:[%s9827_s19] sm:$0xff]  ;;  %v221_v48 = vld [vmem:[%s9829_s12 + $0x8] sm:$0xff] }
 0x43a   :  { %v971_v52 = vmul.f32 %v969_v49, %v8726_v33  ;;  %v8902_v33 = vpack.c.bf16 %v202_v4, %v201_v1  ;;  %v8953_v49 = vld [vmem:[%s9830_s20] ss:$0 sm:$0xff]  ;;  %v8955_v1 = vpack.c.bf16 %v221_v48, %v220_v46 }
 0x43b   :  { %v8119_v55 = vpop.eup %8118 }
 0x43c   :  { %v690_v5 = vmul.f32 %v8119_v55, %v8113_v16  ;;  %v7671_v8 = vpack.c.bf16 %v971_v52, %v970_v51  ;;  %v8922_v16 = vpack.c.bf16 %v211_v15, %v210_v14  ;;  %v8973_v14 = vld [vmem:[%s9831_s4] ss:$0 sm:$0xff] }
 0x43e   :  { %7673 = vmatpush3.bf16.msk.msra.mxu0 %vm8890_vm9, %v7671_v8  ;;  %v691_v9 = vmul.f32 %v690_v5, %v8734_v37  ;;  %v8913_v37 = vpack.c.bf16 %v204_v13, %v203_v10  ;;  %v222_v5 = vld [vmem:[%s9829_s12 + $0x10] sm:$0xff]  ;;  %v223_v8 = vld [vmem:[%s9829_s12 + $0x18] sm:$0xff] }
 0x43f   :  { %7674 = vmatprep.subr.bf16.mxu0 %v9784_v6 }
 0x440   :  { %6988 = vmatmul.mubr.msk.f32.vlgmr.msra.gmra.mrb[6].mxu1 %vm359_vm2, %v691_v9  ;;  %v8962_v9 = vpack.c.bf16 %v223_v8, %v222_v5  ;;  %v216_v5 = vld [vmem:[%s9832_s28 + $0x8] sm:$0xff]  ;;  %v217_v8 = vld [vmem:[%s9832_s28 + $0x10] sm:$0xff] }
 0x441   :  { %6958 = vmatmul.mubr.msk.f32.vlgmr.msra.gmra.mrb[12].mxu0 %vm972_vm10, %v8900_v29  ;;  %7020 = vmatprep.mubr.msk.f32.mxu1 %vm8465_vm1, %v9782_v11 }
 0x442   :  { %7676 = vmatpush3.bf16.msra.mxu0 %v8902_v33  ;;  %6968 = vmatprep.mubr.msk.f32.mxu0 %vm8465_vm1, %v9782_v11 }
 0x443   :  { %7677 = vmatprep.subr.bf16.mxu0 %v9784_v6 }
 0x446   :  { %7679 = vmatpush3.bf16.msra.mxu0 %v8913_v37 }
 0x447   :  { %7692 = vmatprep.subr.bf16.mxu0 %v9784_v6 }
 0x513   :  { %v1192_v18 = vpop.f32.mrb[6].mxu1 }
 0x514   :  { %v1046_v24 = vpop.f32.mrb[12].mxu0  ;;  %v6989_v25 = vpop.f32.mrb[7].mxu1 }
 0x515   :  { %6969 = vmatmul.mubr.msk.f32.vlgmr.msra.gmra.mrb[14].mxu0 %vm253_vm0, %v1046_v24  ;;  %v6959_v27 = vpop.f32.mrb[13].mxu0 }
 0x516   :  { %7694 = vmatpush3.bf16.msra.mxu0 %v8922_v16  ;;  %6998 = vmatprep.mubr.msk.f32.mxu0 %vm8465_vm1, %v9782_v11 }
 0x517   :  { %7695 = vmatprep.subr.bf16.mxu0 %v9784_v6 }
 0x51a   :  { %7697 = vmatpush3.bf16.msra.mxu0 %v8928_v28 }
 0x51b   :  { %7698 = vmatprep.subr.bf16.mxu0 %v9784_v6 }
 0x51d   :  { %6999 = vmatmul.mubr.f32.vlgmr.msra.gmra.mrb[16].mxu0 %v9782_v11 }
 0x51e   :  { %7700 = vmatpush3.bf16.msra.mxu0 %v8936_v39  ;;  %7009 = vmatprep.mubr.msk.f32.mxu0 %vm8465_vm1, %v9782_v11 }
 0x51f   :  { %7701 = vmatprep.subr.bf16.mxu0 %v9784_v6 }
 0x522   :  { %7703 = vmatpush3.bf16.msra.mxu0 %v8946_v43 }
 0x523   :  { %7710 = vmatprep.subr.bf16.mxu0 %v9784_v6 }
 0x5e8   :  { %v1119_v51 = vpop.f32.mrb[14].mxu0 }
 0x5e9   :  { %v1193_v52 = vadd.f32 %v1192_v18, %v1119_v51  ;;  %v6970_v55 = vpop.f32.mrb[15].mxu0 }
 0x5eb   :  { %v1202_v4 = vadd.f32 %v8953_v49, %v1193_v52 }
 0x5ed   :  { %7010 = vmatmul.mubr.msk.f32.vlgmr.msra.gmra.mrb[18].mxu0 %vm253_vm0, %v1202_v4 }
 0x5ee   :  { %7712 = vmatpush3.bf16.msra.mxu0 %v8955_v1  ;;  %7031 = vmatprep.mubr.msk.f32.mxu0 %vm8465_vm1, %v9782_v11 }
 0x5ef   :  { %7713 = vmatprep.subr.bf16.mxu0 %v9784_v6 }
 0x5f0   :  { %v1269_v10 = vpop.f32.mrb[16].mxu0 }
 0x5f1   :  { %v7000_v13 = vpop.f32.mrb[17].mxu0 }
 0x5f2   :  { %7715 = vmatpush3.bf16.msra.mxu0 %v8962_v9  ;;  %v218_v13 = vld [vmem:[%s9832_s28 + $0x18] sm:$0xff] }
 0x5f3   :  { %7722 = vmatprep.subr.bf16.mxu0 %v9784_v6 }
 0x5f5   :  { %7032 = vmatmul.mubr.msk.f32.vlgmr.msra.gmra.mrb[20].mxu0 %vm253_vm0, %v1202_v4  ;;  %v215_v4 = vld [vmem:[%s9832_s28] sm:$0xff] }
 0x5f6   :  { %7053 = vmatprep.mubr.msk.f32.mxu0 %vm8465_vm1, %v9782_v11 }
 0x6c0   :  { %v1342_v15 = vpop.f32.mrb[18].mxu0 }
 0x6c1   :  { %v1343_v18 = vadd.f32 %v1342_v15, %v1269_v10  ;;  %v7011_v19 = vpop.f32.mrb[19].mxu0  ;;  %v8984_v10 = vpack.c.bf16 %v216_v5, %v215_v4  ;;  %v8988_v15 = vpack.c.bf16 %v218_v13, %v217_v8 }
 0x6c3   :  { %v1352_v22 = vadd.f32 %v8973_v14, %v1343_v18  ;;  %7706 = vmatpush3.bf16.msra.mxu1 %v8984_v10 }
 0x6c4   :  { %7707 = vmatprep.subr.bf16.mxu1 %v9784_v6 }
 0x6c5   :  { %8120 = vtanh.f32 %v1352_v22  ;;  %v6395_v31 = vmul.f32 -1.442695, %v1352_v22 }
 0x6c7   :  { %8122 = vpow2.f32 %v6395_v31  ;;  %7709 = vmatpush3.bf16.msra.mxu1 %v8988_v15  ;;  %v225_v31 = vld [vmem:[%s9833_s10 + $0x8] sm:$0xff] }
 0x6c8   :  { %v1518_v24 = vpop.f32.mrb[20].mxu0  ;;  %7716 = vmatprep.subr.bf16.mxu1 %v9784_v6 }
 0x6c9   :  { %v7033_v25 = vpop.f32.mrb[21].mxu0 }
 0x6cf   :  { %v8121_v27 = vpop.eup %8120 }
 0x6d0   :  { %1362 = vrot.lane.b32.xlu0 %v8121_v27, %s8468_s1  ;;  %v224_v27 = vld [vmem:[%s9833_s10] sm:$0xff] }
 0x6d1   :  { %v8123_v32 = vpop.eup %8122 }
 0x6d2   :  { %v1356_v40 = vadd.f32 1.0, %v8123_v32  ;;  %v9003_v32 = vpack.c.bf16 %v225_v31, %v224_v27 }
 0x6d4   :  { %8124 = vrcp.f32 %v1356_v40  ;;  %v226_v40 = vld [vmem:[%s9833_s10 + $0x10] sm:$0xff] }
 0x6de   :  { %v8125_v42 = vpop.eup %8124 }
 0x6df   :  { %v1360_v51 = vmul.f32 0.0, %v8125_v42 }
 0x742   :  { %v1363_v46 = vpop.permute.xlu0 %1362 }
 0x743   :  { %v1365_v48 = vmul.f32 %v8125_v42, %v1363_v46 }
 0x745   :  { %1367 = vrot.lane.b32.xlu1 %v1365_v48, %s8469_s2  ;;  %v9021_v48 = vld [vmem:[%s9834_s7] ss:$0 sm:$0xff] }
 0x746   :  { %9836 = vst [vmem:[#allocation36_spill] sm:$0xff] %v9021_v48 }
 0x7b7   :  { %v1368_v52 = vpop.permute.xlu1 %1367 }
 0x7b8   :  { %v8978_v55 = vadd.f32 %v1368_v52, %v1360_v51 }
 0x7ba   :  { %8126 = vtanh.f32 %v8978_v55 }
 0x7c4   :  { %v8127_v18 = vpop.eup %8126 }
 0x7c5   :  { %1373 = vrot.lane.b32.xlu1 %v8127_v18, %s8468_s1 }
 0x837   :  { %v1374_v19 = vpop.permute.xlu1 %1373 }
 0x838   :  { %v1376_v22 = vmul.f32 %v8125_v42, %v1374_v19  ;;  %v227_v42 = vld [vmem:[%s9833_s10 + $0x18] sm:$0xff]  ;;  %v9028_v19 = vld [vmem:[%s9835_s11] ss:$0 sm:$0xff] }
 0x839   :  { %v9009_v46 = vpack.c.bf16 %v227_v42, %v226_v40  ;;  %9838 = vst [vmem:[#allocation37_spill] sm:$0xff] %v9028_v19 }
 0x83a   :  { %1378 = vrot.lane.b32.xlu1 %v1376_v22, %s8469_s2 }
 0x8ac   :  { %v8995_v25 = vpop.permute.xlu1 %1378 }
 0x8ad   :  { %7021 = vmatmul.mubr.msk.f32.vlgmr.msra.gmra.mrb[8].mxu1 %vm253_vm0, %v8995_v25 }
 0x8ae   :  { %7042 = vmatprep.mubr.msk.f32.mxu1 %vm8465_vm1, %v9782_v11  ;;  %7718 = vmatpush3.bf16.msra.mxu1 %v9003_v32 }
 0x8af   :  { %7719 = vmatprep.subr.bf16.mxu1 %v9784_v6 }
 0x8b2   :  { %7721 = vmatpush3.bf16.msra.mxu1 %v9009_v46 }
 0x8b3   :  { %7728 = vmatprep.subr.bf16.mxu1 %v9784_v6 }
 0x8b5   :  { %7043 = vmatmul.mubr.f32.vlgmr.msra.gmra.mrb[10].mxu1 %v9782_v11 }
 0x8b6   :  { %7730 = vmatpush3.bf16.msra.mxu1 %v8684_v3  ;;  %7064 = vmatprep.mubr.msk.f32.mxu1 %vm8465_vm1, %v9782_v11 }
 0x8b7   :  { %7731 = vmatprep.subr.bf16.mxu1 %v9784_v6 }
 0x8ba   :  { %7733 = vmatpush3.bf16.msra.mxu1 %v8688_v7 }
 0x8bb   :  { %7740 = vmatprep.subr.bf16.mxu1 %v9784_v6 }
 0x980   :  { %v1448_v51 = vpop.f32.mrb[8].mxu1 }
 0x981   :  { %v1522_v52 = vadd.f32 %v1518_v24, %v1448_v51  ;;  %v7022_v4 = vpop.f32.mrb[9].mxu1 }
 0x982   :  { %v229_v4 = vld [vmem:[%s9837_s16] sm:$0xff] }
 0x983   :  { %v1529_v5 = vadd.f32 %v9021_v48, %v1522_v52 }
 0x985   :  { %8128 = vtanh.f32 %v1529_v5  ;;  %v230_v5 = vld [vmem:[%s9837_s16 + $0x8] sm:$0xff] }
 0x988   :  { %v1601_v13 = vpop.f32.mrb[10].mxu1 }
 0x989   :  { %v7044_v18 = vpop.f32.mrb[11].mxu1 }
 0x98f   :  { %v8129_v8 = vpop.eup %8128 }
 0x990   :  { %7065 = vmatmul.mubr.msk.f32.vlgmr.msra.gmra.mrb[12].mxu1 %vm253_vm0, %v8129_v8  ;;  %v9034_v8 = vpack.c.bf16 %v230_v5, %v229_v4 }
 0x991   :  { %7086 = vmatprep.mubr.msk.f32.mxu1 %vm8465_vm1, %v9782_v11 }
 0x992   :  { %7724 = vmatpush3.bf16.msra.mxu0 %v9034_v8 }
 0x993   :  { %7725 = vmatprep.subr.bf16.mxu0 %v9784_v6 }
 0xa63   :  { %v1763_v22 = vpop.f32.mrb[12].mxu1 }
 0xa64   :  { %v1764_v27 = vadd.f32 %v9028_v19, %v1763_v22  ;;  %v7066_v24 = vpop.f32.mrb[13].mxu1 }
 0xa65   :  { %v231_v24 = vld [vmem:[%s9837_s16 + $0x10] sm:$0xff] }
 0xa66   :  { %8130 = vtanh.f32 %v1764_v27  ;;  %v6403_v40 = vmul.f32 -1.442695, %v1764_v27  ;;  %v232_v27 = vld [vmem:[%s9837_s16 + $0x18] sm:$0xff] }
 0xa68   :  { %8132 = vpow2.f32 %v6403_v40 }
 0xa70   :  { %v8131_v31 = vpop.eup %8130 }
 0xa71   :  { %1776 = vrot.lane.b32.xlu0 %v8131_v31, %s8468_s1  ;;  %v9041_v31 = vpack.c.bf16 %v232_v27, %v231_v24  ;;  %v9842_v27 = vmov 0.0  }
 0xa72   :  { %v8133_v42 = vpop.eup %8132 }
 0xa73   :  { %v1770_v52 = vadd.f32 1.0, %v8133_v42  ;;  %7727 = vmatpush3.bf16.msra.mxu0 %v9041_v31 }
 0xa74   :  { %7734 = vmatprep.subr.bf16.mxu0 %v9784_v6  ;;  %v238_v6 = vld [vmem:[%s9840_s23] sm:$0xff] }
 0xa75   :  { %8134 = vrcp.f32 %v1770_v52  ;;  %v9047_v52 = vld [vmem:[%s9839_s15] ss:$0 sm:$0xff] }
 0xa76   :  { %9841 = vst [vmem:[#allocation38_spill] sm:$0xff] %v9047_v52 }
 0xa7f   :  { %v8135_v18 = vpop.eup %8134 }
 0xae3   :  { %v1777_v11 = vpop.permute.xlu0 %1776 }
 0xae4   :  { %v1779_v22 = vmul.f32 %v8135_v18, %v1777_v11  ;;  %v1774_v11 = vmul.f32 0.0, %v8135_v18 }
 0xae6   :  { %1781 = vrot.lane.b32.xlu1 %v1779_v22, %s8469_s2 }
 0xaea   :  { %1532 = vrot.lane.b32.xlu1 %v1448_v51, %s8470_s18 }
 0xb58   :  { %v1782_v40 = vpop.permute.xlu1 %1781 }
 0xb59   :  { %v1784_v42 = vadd.f32 %v1782_v40, %v1774_v11  ;;  %v239_v11 = vld [vmem:[%s9840_s23 + $0x8] sm:$0xff]  ;;  %v240_v40 = vld [vmem:[%s9840_s23 + $0x10] sm:$0xff] }
 0xb5a   :  { %v9057_v60 = vpack.c.bf16 %v239_v11, %v238_v6 }
 0xb5b   :  { %8136 = vtanh.f32 %v1784_v42 }
 0xb5c   :  { %v1533_v4 = vpop.permute.xlu1 %1532  ;;  %7742 = vmatpush3.bf16.msra.mxu1 %v9057_v60 }
 0xb5d   :  { %v1602_v5 = vadd.f32 %v1601_v13, %v1533_v4  ;;  %v9061_v13 = vpack.c.bf16 %v241_v61, %v240_v40  ;;  %v9844_v4 = vmov 0.0|0.0   ;;  %v9072_v61 = vld [vmem:[%s9843_s22] ss:$0 sm:$0xff] }
 0xb5e   :  { %7743 = vmatprep.subr.bf16.mxu1 %v9844_v4  ;;  %9845 = vst [vmem:[#allocation39_spill] sm:$0xff] %v9072_v61 }
 0xb5f   :  { %v1611_v22 = vadd.f32 %v9047_v52, %v1602_v5 }
 0xb60   :  { %7745 = vmatpush3.bf16.msra.mxu1 %v9061_v13 }
 0xb61   :  { %8138 = vtanh.f32 %v1611_v22  ;;  %7752 = vmatprep.subr.bf16.mxu1 %v9844_v4 }
 0xb65   :  { %v8137_v24 = vpop.eup %8136 }
 0xb66   :  { %1787 = vrot.lane.b32.xlu0 %v8137_v24, %s8468_s1 }
 0xb6b   :  { %v8139_v51 = vpop.eup %8138 }
 0xb6c   :  { %7054 = vmatmul.mubr.msk.f32.vlgmr.msra.gmra.mrb[22].mxu0 %vm253_vm0, %v8139_v51 }
 0xb6d   :  { %7075 = vmatprep.mubr.msk.f32.mxu0 %vm8465_vm1, %v9842_v27  ;;  %7736 = vmatpush3.bf16.msra.mxu0 %v9057_v60 }
 0xb6e   :  { %7737 = vmatprep.subr.bf16.mxu0 %v9844_v4 }
 0xb71   :  { %7739 = vmatpush3.bf16.msra.mxu0 %v9061_v13 }
 0xb72   :  { %7746 = vmatprep.subr.bf16.mxu0 %v9844_v4 }
 0xbd8   :  { %v1788_v6 = vpop.permute.xlu0 %1787 }
 0xbd9   :  { %v1790_v5 = vmul.f32 %v8135_v18, %v1788_v6  ;;  %v9086_v18 = vadd.f32 %v9028_v19, %v8796_v59 }
 0xbdb   :  { %1792 = vrot.lane.b32.xlu0 %v1790_v5, %s8469_s2 }
 0xc3f   :  { %v1688_v22 = vpop.f32.mrb[22].mxu0 }
 0xc40   :  { %v1689_v24 = vadd.f32 %v9072_v61, %v1688_v22  ;;  %v7055_v51 = vpop.f32.mrb[23].mxu0 }
 0xc42   :  { %1693 = vst.msk [vmem:[%s8672_s17] sm:$0x3] %vm1692_vm11, %v1689_v24 }
 0xc4d   :  { %v1793_v11 = vpop.permute.xlu0 %1792 }
 0xc4e   :  { %7076 = vmatmul.mubr.msk.f32.vlgmr.msra.gmra.mrb[24].mxu0 %vm253_vm0, %v1793_v11 }
 0xc4f   :  { %7748 = vmatpush3.bf16.msra.mxu0 %v9057_v60  ;;  %7097 = vmatprep.mubr.msk.f32.mxu0 %vm8465_vm1, %v9842_v27 }
 0xc50   :  { %7749 = vmatprep.subr.bf16.mxu0 %v9844_v4 }
 0xc53   :  { %7751 = vmatpush3.bf16.msra.mxu0 %v9061_v13 }
 0xc54   :  { %7758 = vmatprep.subr.bf16.mxu0 %v9844_v4 }
 0xd21   :  { %v1862_v40 = vpop.f32.mrb[24].mxu0 }
 0xd22   :  { %v1866_v6 = vadd.f32 %v1862_v40, %v9086_v18  ;;  %v7077_v5 = vpop.f32.mrb[25].mxu0 }
 0xd24   :  { %8140 = vtanh.f32 %v1866_v6  ;;  %v6405_v24 = vmul.f32 -1.442695, %v1866_v6 }
 0xd26   :  { %8142 = vpow2.f32 %v6405_v24 }
 0xd2e   :  { %v8141_v22 = vpop.eup %8140 }
 0xd2f   :  { %1876 = vrot.lane.b32.xlu1 %v8141_v22, %s8468_s1 }
 0xd30   :  { %v8143_v51 = vpop.eup %8142 }
 0xd31   :  { %v1870_v11 = vadd.f32 1.0, %v8143_v51 }
 0xd33   :  { %8144 = vrcp.f32 %v1870_v11 }
 0xd3d   :  { %v8145_v58 = vpop.eup %8144 }
 0xd3e   :  { %v1874_v59 = vmul.f32 %v8145_v58, %v1784_v42 }
 0xda1   :  { %v1877_v61 = vpop.permute.xlu1 %1876 }
 0xda2   :  { %v1879_v52 = vmul.f32 %v8145_v58, %v1877_v61 }
 0xda4   :  { %1881 = vrot.lane.b32.xlu0 %v1879_v52, %s8469_s2 }
 0xe16   :  { %v1882_v19 = vpop.permute.xlu0 %1881 }
 0xe17   :  { %v1884_v48 = vadd.f32 %v1882_v19, %v1874_v59 }
 0xe19   :  { %8146 = vtanh.f32 %v1884_v48 }
 0xe23   :  { %v8147_v40 = vpop.eup %8146 }
 0xe24   :  { %1887 = vrot.lane.b32.xlu1 %v8147_v40, %s8468_s1  ;;  %v1981_v40 = vrot.slane %v1884_v48, 6 }
 0xe96   :  { %v1888_v5 = vpop.permute.xlu1 %1887 }
 0xe97   :  { %v1890_v7 = vmul.f32 %v8145_v58, %v1888_v5 }
 0xe99   :  { %1892 = vrot.lane.b32.xlu0 %v1890_v7, %s8469_s2 }
 0xf0b   :  { %v1893_v6 = vpop.permute.xlu0 %1892 }
 0xf0c   :  { %1896 = vst.msk [vmem:[#allocation2] sm:$0x3] %vm1895_vm12, %v1893_v6  ;;  %7087 = vmatmul.mubr.msk.f32.vlgmr.msra.gmra.mrb[14].mxu1 %vm253_vm0, %v1893_v6 }
 0xf0d   :  { %7754 = vmatpush3.bf16.msra.mxu1 %v9057_v60  ;;  %7108 = vmatprep.mubr.msk.f32.mxu1 %vm8465_vm1, %v9842_v27 }
 0xf0e   :  { %7755 = vmatprep.subr.bf16.mxu1 %v9844_v4 }
 0xf11   :  { %7757 = vmatpush3.bf16.msra.mxu1 %v9061_v13 }
 0xf12   :  { %7764 = vmatprep.subr.bf16.mxu1 %v9844_v4 }
 0xfdf   :  { %v1965_v58 = vpop.f32.mrb[14].mxu1 }
 0xfe0   :  { %v1970_v19 = vrot.slane %v1965_v58, 6  ;;  %v7088_v7 = vpop.f32.mrb[15].mxu1 }
 0xfe2   :  { %v1972_v42 = vadd.f32 %v1970_v19, %v9086_v18 }
 0xfe4   :  { %8148 = vtanh.f32 %v1972_v42  ;;  %v6407_v61 = vmul.f32 -1.442695, %v1972_v42 }
 0xfe6   :  { %8150 = vpow2.f32 %v6407_v61 }
 0xfee   :  { %v8149_v52 = vpop.eup %8148 }
 0xfef   :  { %1985 = vrot.lane.b32.xlu1 %v8149_v52, %s8468_s1 }
 0xff0   :  { %v8151_v22 = vpop.eup %8150 }
 0xff1   :  { %v1976_v24 = vadd.f32 1.0, %v8151_v22 }
 0xff3   :  { %8152 = vrcp.f32 %v1976_v24 }
 0xffd   :  { %v8153_v51 = vpop.eup %8152 }
 0xffe   :  { %v1983_v5 = vmul.f32 %v8153_v51, %v1981_v40 }
0x1061   :  { %v1986_v11 = vpop.permute.xlu1 %1985 }
0x1062   :  { %v1988_v59 = vmul.f32 %v8153_v51, %v1986_v11 }
0x1064   :  { %1990 = vrot.lane.b32.xlu0 %v1988_v59, %s8469_s2 }
0x10d6   :  { %v1991_v6 = vpop.permute.xlu0 %1990 }
0x10d7   :  { %v1993_v58 = vadd.f32 %v1991_v6, %v1983_v5 }
0x10d9   :  { %8154 = vtanh.f32 %v1993_v58 }
0x10e3   :  { %v8155_v19 = vpop.eup %8154 }
0x10e4   :  { %1996 = vrot.lane.b32.xlu1 %v8155_v19, %s8468_s1 }
0x1156   :  { %v1997_v7 = vpop.permute.xlu1 %1996 }
0x1157   :  { %v9105_v52 = vmul.f32 %v8153_v51, %v1997_v7 }
0x1159   :  { %9846 = vst [vmem:[#allocation40_spill] sm:$0xff] %v9105_v52  ;;  %v2006_v42 = vrot.slane %v9105_v52, 2 }
0x115b   :  { %2007 = vrot.lane.b32.xlu0 %v2006_v42, %s8469_s2  ;;  %v2093_v42 = vrot.slane %v1993_v58, 6 }
0x11cd   :  { %v2008_v61 = vpop.permute.xlu0 %2007 }
0x11ce   :  { %7098 = vmatmul.mubr.msk.f32.vlgmr.msra.gmra.mrb[26].mxu0 %vm253_vm0, %v2008_v61 }
0x11cf   :  { %7760 = vmatpush3.bf16.msra.mxu0 %v9057_v60  ;;  %7119 = vmatprep.mubr.msk.f32.mxu0 %vm8465_vm1, %v9842_v27 }
0x11d0   :  { %7761 = vmatprep.subr.bf16.mxu0 %v9844_v4 }
0x11d3   :  { %7763 = vmatpush3.bf16.msra.mxu0 %v9061_v13 }
0x11d4   :  { %7770 = vmatprep.subr.bf16.mxu0 %v9844_v4 }
0x12a1   :  { %v2077_v48 = vpop.f32.mrb[26].mxu0 }
0x12a2   :  { %v2082_v22 = vrot.slane %v2077_v48, 4  ;;  %v7099_v24 = vpop.f32.mrb[27].mxu0 }
0x12a4   :  { %v2084_v51 = vadd.f32 %v2082_v22, %v9086_v18 }
0x12a6   :  { %8156 = vtanh.f32 %v2084_v51  ;;  %v6409_v59 = vmul.f32 -1.442695, %v2084_v51 }
0x12a8   :  { %8158 = vpow2.f32 %v6409_v59 }
0x12b0   :  { %v8157_v11 = vpop.eup %8156 }
0x12b1   :  { %2097 = vrot.lane.b32.xlu1 %v8157_v11, %s8468_s1 }
0x12b2   :  { %v8159_v40 = vpop.eup %8158 }
0x12b3   :  { %v2088_v5 = vadd.f32 1.0, %v8159_v40 }
0x12b5   :  { %8160 = vrcp.f32 %v2088_v5 }
0x12bf   :  { %v8161_v6 = vpop.eup %8160 }
0x12c0   :  { %v2095_v61 = vmul.f32 %v8161_v6, %v2093_v42 }
0x1323   :  { %v2098_v19 = vpop.permute.xlu1 %2097 }
0x1324   :  { %v2100_v7 = vmul.f32 %v8161_v6, %v2098_v19 }
0x1326   :  { %2102 = vrot.lane.b32.xlu0 %v2100_v7, %s8469_s2 }
0x1398   :  { %v2103_v48 = vpop.permute.xlu0 %2102 }
0x1399   :  { %v2105_v24 = vadd.f32 %v2103_v48, %v2095_v61 }
0x139b   :  { %8162 = vtanh.f32 %v2105_v24 }
0x13a5   :  { %v8163_v22 = vpop.eup %8162 }
0x13a6   :  { %2108 = vrot.lane.b32.xlu1 %v8163_v22, %s8468_s1 }
0x1418   :  { %v2109_v52 = vpop.permute.xlu1 %2108 }
0x1419   :  { %v9120_v11 = vmul.f32 %v8161_v6, %v2109_v52 }
0x141b   :  { %v2118_v51 = vrot.slane %v9120_v11, 4 }
0x141d   :  { %2119 = vrot.lane.b32.xlu0 %v2118_v51, %s8469_s2 }
0x148f   :  { %v2120_v59 = vpop.permute.xlu0 %2119 }
0x1490   :  { %7109 = vmatmul.mubr.msk.f32.vlgmr.msra.gmra.mrb[16].mxu1 %vm253_vm0, %v2120_v59 }
0x1491   :  { %7766 = vmatpush3.bf16.msra.mxu1 %v8728_v34  ;;  %7130 = vmatprep.mubr.msk.f32.mxu1 %vm8465_vm1, %v9842_v27 }
0x1492   :  { %7767 = vmatprep.subr.bf16.mxu1 %v9844_v4 }
0x1495   :  { %7769 = vmatpush3.bf16.msra.mxu1 %v8740_v38 }
0x1496   :  { %7782 = vmatprep.subr.bf16.mxu1 %v9844_v4 }
0x1498   :  { %7131 = vmatmul.mubr.msk.f32.vlgmr.msra.gmra.mrb[18].mxu1 %vm253_vm0, %v8995_v25 }
0x1499   :  { %7784 = vmatpush3.bf16.msra.mxu1 %v8752_v41  ;;  %7160 = vmatprep.mubr.msk.f32.mxu1 %vm8465_vm1, %v9842_v27 }
0x149a   :  { %7785 = vmatprep.subr.bf16.mxu1 %v9844_v4 }
0x149d   :  { %7787 = vmatpush3.bf16.msra.mxu1 %v8759_v44 }
0x14a0   :  { %7161 = vmatmul.mubr.msk.f32.vlgmr.msra.gmra.mrb[20].mxu1 %vm253_vm0, %v8995_v25 }
0x14a1   :  { %7165 = vmatprep.mubr.msk.f32.mxu1 %vm762_vm3, %v8784_v54 }
0x1563   :  { %v2189_v58 = vpop.f32.mrb[16].mxu1 }
0x1564   :  { %v2194_v52 = vrot.slane %v2189_v58, 2  ;;  %v7110_v40 = vpop.f32.mrb[17].mxu1 }
0x1566   :  { %v2196_v5 = vadd.f32 %v2194_v52, %v9086_v18 }
0x1568   :  { %8164 = vtanh.f32 %v2196_v5  ;;  %v6411_v54 = vmul.f32 -1.442695, %v2196_v5  ;;  %v2205_v5 = vrot.slane %v2105_v24, 6 }
0x156a   :  { %8166 = vpow2.f32 %v6411_v54 }
0x156b   :  { %v2404_v6 = vpop.f32.mrb[18].mxu1 }
0x156c   :  { %v9144_v19 = vadd.f32 %v2404_v6, %v8806_v0  ;;  %v7132_v7 = vpop.f32.mrb[19].mxu1 }
0x1572   :  { %v8165_v42 = vpop.eup %8164 }
0x1573   :  { %v2562_v61 = vpop.f32.mrb[20].mxu1  ;;  %2209 = vrot.lane.b32.xlu1 %v8165_v42, %s8468_s1 }
0x1574   :  { %v7162_v48 = vpop.f32.mrb[21].mxu1  ;;  %7163 = vmatprep.subr.msk.mxu1 %vm769_vm4, %v2562_v61  ;;  %v8167_v18 = vpop.eup %8166 }
0x1575   :  { %7164 = vmatpush3.msk.msra.mxu1 %vm769_vm4, %v2562_v61  ;;  %v2200_v22 = vadd.f32 1.0, %v8167_v18 }
0x1576   :  { %7166 = vmatmul.mubr.msk.f32.vlgmr.msra.gmra.mrb[22].mxu1 %vm762_vm3, %v8814_v12  ;;  %7789 = vmatprep.subr.bf16.mxu1 %v8826_v17 }
0x1577   :  { %7791 = vmatpush3.bf16.msra.mxu1 %v8826_v17  ;;  %8168 = vrcp.f32 %v2200_v22 }
0x1578   :  { %7793 = vmatprep.subr.bf16.mxu1 %v8830_v20 }
0x157b   :  { %7795 = vmatpush3.bf16.msra.mxu1 %v8830_v20 }
0x157c   :  { %7806 = vmatprep.subr.bf16.mxu1 %v9844_v4 }
0x1581   :  { %v8169_v51 = vpop.eup %8168 }
0x1582   :  { %v2207_v48 = vmul.f32 %v8169_v51, %v2205_v5 }
0x15e5   :  { %v2210_v59 = vpop.permute.xlu1 %2209 }
0x15e6   :  { %v2212_v58 = vmul.f32 %v8169_v51, %v2210_v59 }
0x15e8   :  { %2214 = vrot.lane.b32.xlu0 %v2212_v58, %s8469_s2 }
0x1649   :  { %v7167_v12 = vpop.f32.mrb[22].mxu1 }
0x164a   :  { %v2645_v52 = vadd.f32 %v7167_v12, %v8802_v62  ;;  %v2635_v40 = vpop.f32.mrb[23].mxu1 }
0x164b   :  { %v2644_v6 = vadd.f32 %v2635_v40, %v8804_v63 }
0x164c   :  { %v2647_v7 = vadd.f32 %v8838_v21, %v2645_v52 }
0x164d   :  { %v2646_v42 = vadd.f32 %v8838_v21, %v2644_v6 }
0x164f   :  { %8170 = vtanh.f32 %v2646_v42 }
0x1650   :  { %8172 = vtanh.f32 %v2647_v7 }
0x1659   :  { %v8171_v61 = vpop.eup %8170 }
0x165a   :  { %v8173_v54 = vpop.eup %8172  ;;  %7176 = vmatprep.mubr.msk.f32.mxu1 %vm253_vm0, %v8171_v61  ;;  %v2215_v18 = vpop.permute.xlu0 %2214 }
0x165b   :  { %v9162_v22 = vadd.f32 %v2215_v18, %v2207_v48  ;;  %7177 = vmatmul.mubr.msk.f32.vlgmr.msra.gmra.mrb[24].mxu1 %vm253_vm0, %v8173_v54 }
0x165c   :  { %7808 = vmatpush3.bf16.msra.mxu1 %v8865_v23  ;;  %7213 = vmatprep.mubr.msk.f32.mxu1 %vm8465_vm1, %v9842_v27 }
0x165d   :  { %8174 = vtanh.f32 %v9162_v22  ;;  %7809 = vmatprep.subr.bf16.mxu1 %v9844_v4 }
0x1660   :  { %7811 = vmatpush3.bf16.msra.mxu1 %v8871_v26 }
0x1661   :  { %7812 = vmatprep.subr.bf16.mxu1 %v9844_v4 }
0x1664   :  { %7814 = vmatpush3.bf16.msra.mxu1 %v8877_v30 }
0x1665   :  { %7815 = vmatprep.subr.bf16.mxu1 %v9844_v4 }
0x1667   :  { %v8175_v21 = vpop.eup %8174 }
0x1668   :  { %2220 = vrot.lane.b32.xlu1 %v8175_v21, %s8468_s1  ;;  %7817 = vmatpush3.bf16.msra.mxu1 %v8883_v36 }
0x1669   :  { %7830 = vmatprep.subr.bf16.mxu1 %v9844_v4 }
0x16da   :  { %v2221_v24 = vpop.permute.xlu1 %2220 }
0x16db   :  { %v9177_v59 = vmul.f32 %v8169_v51, %v2221_v24  ;;  %v2409_v51 = vadd.f32 %v8809_v2, %v9144_v19 }
0x16dd   :  { %v2230_v58 = vrot.slane %v9177_v59, 6  ;;  %8176 = vtanh.f32 %v2409_v51 }
0x16df   :  { %2231 = vrot.lane.b32.xlu0 %v2230_v58, %s8469_s2 }
0x16e7   :  { %v8177_v2 = vpop.eup %8176 }
0x172e   :  { %v7178_v12 = vpop.f32.mrb[24].mxu1 }
0x172f   :  { %v2728_v52 = vadd.f32 %v7178_v12, %v8849_v35  ;;  %v2722_v40 = vpop.f32.mrb[25].mxu1 }
0x1730   :  { %v2723_v6 = vadd.f32 %v8849_v35, %v2722_v40 }
0x1731   :  { %v2734_v7 = vsel %vm950_vm5, %v2728_v52, -inf }
0x1732   :  { %2735 = vmax.xlane.f32.xlu0 %v2734_v7  ;;  %v2731_v42 = vsel %vm253_vm0, %v2723_v6, -inf }
0x1733   :  { %2732 = vmax.xlane.f32.xlu1 %v2731_v42 }
0x1751   :  { %v2232_v5 = vpop.permute.xlu0 %2231 }
0x1752   :  { %7120 = vmatmul.mubr.msk.f32.vlgmr.msra.gmra.mrb[28].mxu0 %vm253_vm0, %v2232_v5 }
0x1753   :  { %7772 = vmatpush3.bf16.msra.mxu0 %v8768_v47  ;;  %7149 = vmatprep.mubr.msk.f32.mxu0 %vm8465_vm1, %v9842_v27 }
0x1754   :  { %7773 = vmatprep.subr.bf16.mxu0 %v9844_v4 }
0x1757   :  { %7775 = vmatpush3.bf16.msra.mxu0 %v8774_v50 }
0x1758   :  { %7776 = vmatprep.subr.bf16.mxu0 %v9844_v4 }
0x175b   :  { %7778 = vmatpush3.bf16.msra.mxu0 %v8780_v53 }
0x175c   :  { %7779 = vmatprep.subr.bf16.mxu0 %v9844_v4 }
0x175f   :  { %7781 = vmatpush3.bf16.msra.mxu0 %v8791_v57 }
0x1760   :  { %7796 = vmatprep.subr.bf16.mxu0 %v9844_v4 }
0x1762   :  { %7150 = vmatmul.mubr.msk.f32.vlgmr.msra.gmra.mrb[30].mxu0 %vm359_vm2, %v8177_v2 }
0x1763   :  { %7183 = vmatprep.mubr.msk.f32.mxu0 %vm8465_vm1, %v9842_v27 }
0x17bf   :  { %v2736_v35 = vpop.xlane.xlu0 %2735 }
0x17c0   :  { %v2738_v19 = vsub.f32 %v2728_v52, %v2736_v35  ;;  %v2733_v61 = vpop.xlane.xlu1 %2732 }
0x17c1   :  { %v2737_v48 = vsub.f32 %v2723_v6, %v2733_v61 }
0x17c2   :  { %v2741_v54 = vmul.f32 1.442695, %v2738_v19 }
0x17c3   :  { %v2739_v18 = vmul.f32 1.442695, %v2737_v48 }
0x17c5   :  { %8178 = vpow2.f32 %v2739_v18 }
0x17c6   :  { %8180 = vpow2.f32 %v2741_v54  ;;  %v9208_v54 = vld [vmem:[%s8489_s9] sm:$0xff] }
0x17cf   :  { %v8179_v21 = vpop.eup %8178 }
0x17d0   :  { %v2743_v24 = vsel %vm253_vm0, %v8179_v21, 0.0  ;;  %v8181_v58 = vpop.eup %8180 }
0x17d1   :  { %2744 = vadd.xlane.f32.xlu0 %v2743_v24  ;;  %v2746_v12 = vsel %vm950_vm5, %v8181_v58, 0.0  ;;  %v9212_v24 = vld [vmem:[%s8489_s9 + $0x8] sm:$0xf]  ;;  %s9857_s9 = sld [smem:[#allocation31_spill]] }
0x17d5   :  { %2747 = vadd.xlane.f32.xlu0 %v2746_v12 }
0x1825   :  { %v9203_v40 = vpop.f32.mrb[28].mxu0 }
0x1826   :  { %v7121_v7 = vpop.f32.mrb[29].mxu0 }
0x1835   :  { %v2480_v52 = vpop.f32.mrb[30].mxu0 }
0x1836   :  { %v2481_v6 = vadd.f32 %v8855_v45, %v2480_v52  ;;  %v7151_v42 = vpop.f32.mrb[31].mxu0 }
0x1838   :  { %v2484_v5 = vsel %vm679_vm6, %v2481_v6, -inf }
0x1839   :  { %2485 = vmax.xlane.f32.xlu1 %v2484_v5 }
0x185e   :  { %v2745_v51 = vpop.xlane.xlu0 %2744 }
0x185f   :  { %8182 = vrcp.f32 %v2745_v51 }
0x1862   :  { %v2748_v2 = vpop.xlane.xlu0 %2747 }
0x1863   :  { %8184 = vrcp.f32 %v2748_v2 }
0x1869   :  { %v8183_v35 = vpop.eup %8182 }
0x186a   :  { %v2750_v19 = vmul.f32 %v8183_v35, %v8179_v21  ;;  %v9243_v35 = vld [vmem:[%s8484_s5] sm:$0x3]  ;;  %s9855_s5 = sld [smem:[#allocation30_spill]] }
0x186c   :  { %v2753_v18 = vmul.f32 %v9208_v54, %v2750_v19 }
0x186d   :  { %v8185_v61 = vpop.eup %8184 }
0x186e   :  { %v2752_v48 = vmul.f32 %v8185_v61, %v8181_v58 }
0x1870   :  { %v2754_v45 = vmul.f32 %v9212_v24, %v2752_v48 }
0x1872   :  { %v7797_v12 = vpack.c.bf16 %v2754_v45, %v2753_v18 }
0x1874   :  { %7799 = vmatpush3.bf16.msk.msra.mxu0 %vm8890_vm9, %v7797_v12 }
0x1875   :  { %7800 = vmatprep.subr.bf16.mxu0 %v9844_v4 }
0x1877   :  { %7184 = vmatmul.mubr.msk.f32.vlgmr.msra.gmra.mrb[32].mxu0 %vm972_vm10, %v8900_v29 }
0x1878   :  { %7802 = vmatpush3.bf16.msra.mxu0 %v8902_v33  ;;  %7194 = vmatprep.mubr.msk.f32.mxu0 %vm8465_vm1, %v9842_v27 }
0x1879   :  { %7803 = vmatprep.subr.bf16.mxu0 %v9844_v4 }
0x187c   :  { %7805 = vmatpush3.bf16.msra.mxu0 %v8913_v37 }
0x187d   :  { %7818 = vmatprep.subr.bf16.mxu0 %v9844_v4 }
0x18c6   :  { %v2486_v21 = vpop.xlane.xlu1 %2485 }
0x18c7   :  { %v2487_v58 = vsub.f32 %v2481_v6, %v2486_v21 }
0x18c9   :  { %v2488_v7 = vmul.f32 1.442695, %v2487_v58 }
0x18cb   :  { %8186 = vpow2.f32 %v2488_v7 }
0x18d5   :  { %v8187_v52 = vpop.eup %8186 }
0x18d6   :  { %v2490_v42 = vsel %vm679_vm6, %v8187_v52, 0.0 }
0x18d7   :  { %2491 = vadd.xlane.f32.xlu0 %v2490_v42 }
0x194a   :  { %v2824_v29 = vpop.f32.mrb[32].mxu0 }
0x194b   :  { %7195 = vmatmul.mubr.msk.f32.vlgmr.msra.gmra.mrb[34].mxu0 %vm253_vm0, %v2824_v29  ;;  %v7185_v5 = vpop.f32.mrb[33].mxu0 }
0x194c   :  { %7820 = vmatpush3.bf16.msra.mxu0 %v8922_v16  ;;  %7224 = vmatprep.mubr.msk.f32.mxu0 %vm8465_vm1, %v9842_v27 }
0x194d   :  { %7821 = vmatprep.subr.bf16.mxu0 %v9844_v4 }
0x1950   :  { %7823 = vmatpush3.bf16.msra.mxu0 %v8928_v28 }
0x1951   :  { %7824 = vmatprep.subr.bf16.mxu0 %v9844_v4 }
0x1953   :  { %7225 = vmatmul.mubr.msk.f32.vlgmr.msra.gmra.mrb[36].mxu0 %vm253_vm0, %v8995_v25 }
0x1954   :  { %7826 = vmatpush3.bf16.msra.mxu0 %v8936_v39  ;;  %7235 = vmatprep.mubr.msk.f32.mxu0 %vm8465_vm1, %v9842_v27 }
0x1955   :  { %7827 = vmatprep.subr.bf16.mxu0 %v9844_v4 }
0x1958   :  { %7829 = vmatpush3.bf16.msra.mxu0 %v8946_v43 }
0x1959   :  { %7836 = vmatprep.subr.bf16.mxu0 %v9844_v4 }
0x1964   :  { %v2492_v6 = vpop.xlane.xlu0 %2491 }
0x1965   :  { %8188 = vrcp.f32 %v2492_v6 }
0x196f   :  { %v8189_v51 = vpop.eup %8188 }
0x1970   :  { %v2494_v2 = vmul.f32 %v8189_v51, %v8187_v52 }
0x1972   :  { %v2495_v19 = vmul.f32 %v9243_v35, %v2494_v2 }
0x1974   :  { %7214 = vmatmul.mubr.msk.f32.vlgmr.msra.gmra.mrb[26].mxu1 %vm359_vm2, %v2495_v19 }
0x1975   :  { %7832 = vmatpush3.bf16.msra.mxu1 %v8984_v10  ;;  %7246 = vmatprep.mubr.msk.f32.mxu1 %vm8465_vm1, %v9842_v27 }
0x1976   :  { %7833 = vmatprep.subr.bf16.mxu1 %v9844_v4 }
0x1979   :  { %7835 = vmatpush3.bf16.msra.mxu1 %v8988_v15 }
0x197a   :  { %7842 = vmatprep.subr.bf16.mxu1 %v9844_v4 }
0x1a1e   :  { %v2897_v61 = vpop.f32.mrb[34].mxu0 }
0x1a1f   :  { %v7196_v48 = vpop.f32.mrb[35].mxu0 }
0x1a26   :  { %v3041_v18 = vpop.f32.mrb[36].mxu0 }
0x1a27   :  { %v7226_v45 = vpop.f32.mrb[37].mxu0 }
0x1a47   :  { %v2970_v12 = vpop.f32.mrb[26].mxu1 }
0x1a48   :  { %v2971_v21 = vadd.f32 %v2970_v12, %v2897_v61  ;;  %v7215_v58 = vpop.f32.mrb[27].mxu1 }
0x1a4a   :  { %v2974_v7 = vadd.f32 %v8953_v49, %v2971_v21 }
0x1a4c   :  { %7236 = vmatmul.mubr.msk.f32.vlgmr.msra.gmra.mrb[38].mxu0 %vm253_vm0, %v2974_v7 }
0x1a4d   :  { %7838 = vmatpush3.bf16.msra.mxu0 %v8955_v1  ;;  %7257 = vmatprep.mubr.msk.f32.mxu0 %vm8465_vm1, %v9842_v27 }
0x1a4e   :  { %7839 = vmatprep.subr.bf16.mxu0 %v9844_v4 }
0x1a51   :  { %7841 = vmatpush3.bf16.msra.mxu0 %v8962_v9 }
0x1a52   :  { %7848 = vmatprep.subr.bf16.mxu0 %v9844_v4 }
0x1a54   :  { %7258 = vmatmul.mubr.msk.f32.vlgmr.msra.gmra.mrb[40].mxu0 %vm253_vm0, %v2974_v7 }
0x1a55   :  { %7850 = vmatpush3.bf16.msra.mxu0 %v9034_v8  ;;  %7279 = vmatprep.mubr.msk.f32.mxu0 %vm8465_vm1, %v9842_v27 }
0x1a56   :  { %7851 = vmatprep.subr.bf16.mxu0 %v9844_v4 }
0x1a59   :  { %7853 = vmatpush3.bf16.msra.mxu0 %v9041_v31 }
0x1a5a   :  { %7860 = vmatprep.subr.bf16.mxu0 %v9844_v4 }
0x1b1f   :  { %v3114_v49 = vpop.f32.mrb[38].mxu0 }
0x1b20   :  { %v3115_v52 = vadd.f32 %v3114_v49, %v3041_v18  ;;  %v7237_v42 = vpop.f32.mrb[39].mxu0 }
0x1b22   :  { %v3118_v29 = vadd.f32 %v8973_v14, %v3115_v52 }
0x1b24   :  { %8190 = vtanh.f32 %v3118_v29  ;;  %v6428_v2 = vmul.f32 -1.442695, %v3118_v29 }
0x1b26   :  { %8192 = vpow2.f32 %v6428_v2 }
0x1b27   :  { %v3284_v5 = vpop.f32.mrb[40].mxu0 }
0x1b28   :  { %v7259_v6 = vpop.f32.mrb[41].mxu0 }
0x1b2e   :  { %v8191_v51 = vpop.eup %8190 }
0x1b2f   :  { %3128 = vrot.lane.b32.xlu1 %v8191_v51, %s8468_s1  ;;  %v9848_v51 = vld [vmem:[#allocation36_spill] sm:$0xff] }
0x1b30   :  { %v8193_v19 = vpop.eup %8192 }
0x1b31   :  { %v3122_v61 = vadd.f32 1.0, %v8193_v19 }
0x1b33   :  { %8194 = vrcp.f32 %v3122_v61 }
0x1b3d   :  { %v8195_v48 = vpop.eup %8194 }
0x1b3e   :  { %v3126_v18 = vmul.f32 %v8195_v48, %v8978_v55  ;;  %v9847_v55 = vld [vmem:[#allocation32_spill] sm:$0xff] }
0x1ba1   :  { %v3129_v45 = vpop.permute.xlu1 %3128 }
0x1ba2   :  { %v3131_v12 = vmul.f32 %v8195_v48, %v3129_v45 }
0x1ba4   :  { %3133 = vrot.lane.b32.xlu0 %v3131_v12, %s8469_s2 }
0x1c16   :  { %v3134_v21 = vpop.permute.xlu0 %3133 }
0x1c17   :  { %v9272_v14 = vadd.f32 %v3134_v21, %v3126_v18 }
0x1c19   :  { %8196 = vtanh.f32 %v9272_v14 }
0x1c23   :  { %v8197_v58 = vpop.eup %8196 }
0x1c24   :  { %3139 = vrot.lane.b32.xlu1 %v8197_v58, %s8468_s1 }
0x1c96   :  { %v3140_v7 = vpop.permute.xlu1 %3139 }
0x1c97   :  { %v3142_v49 = vmul.f32 %v8195_v48, %v3140_v7  ;;  %v9849_v48 = vld [vmem:[#allocation37_spill] sm:$0xff] }
0x1c99   :  { %3144 = vrot.lane.b32.xlu1 %v3142_v49, %s8469_s2 }
0x1d0b   :  { %v9277_v52 = vpop.permute.xlu1 %3144 }
0x1d0c   :  { %7247 = vmatmul.mubr.msk.f32.vlgmr.msra.gmra.mrb[28].mxu1 %vm253_vm0, %v9277_v52 }
0x1d0d   :  { %7844 = vmatpush3.bf16.msra.mxu1 %v9003_v32  ;;  %7268 = vmatprep.mubr.msk.f32.mxu1 %vm8465_vm1, %v9842_v27 }
0x1d0e   :  { %7845 = vmatprep.subr.bf16.mxu1 %v9844_v4 }
0x1d11   :  { %7847 = vmatpush3.bf16.msra.mxu1 %v9009_v46 }
0x1d12   :  { %7854 = vmatprep.subr.bf16.mxu1 %v9844_v4 }
0x1d14   :  { %7269 = vmatmul.mubr.msk.f32.vlgmr.msra.gmra.mrb[30].mxu1 %vm253_vm0, %v8995_v25 }
0x1d15   :  { %7856 = vmatpush3.bf16.msra.mxu1 %v8684_v3  ;;  %7290 = vmatprep.mubr.msk.f32.mxu1 %vm8465_vm1, %v9842_v27 }
0x1d16   :  { %7857 = vmatprep.subr.bf16.mxu1 %v9844_v4 }
0x1d19   :  { %7859 = vmatpush3.bf16.msra.mxu1 %v9847_v55 }
0x1d1a   :  { %7866 = vmatprep.subr.bf16.mxu1 %v9844_v4 }
0x1ddf   :  { %v3214_v42 = vpop.f32.mrb[28].mxu1 }
0x1de0   :  { %v3288_v29 = vadd.f32 %v3284_v5, %v3214_v42  ;;  %v7248_v6 = vpop.f32.mrb[29].mxu1 }
0x1de2   :  { %v3289_v2 = vadd.f32 %v9848_v51, %v3288_v29 }
0x1de4   :  { %8198 = vtanh.f32 %v3289_v2 }
0x1de7   :  { %v3361_v19 = vpop.f32.mrb[30].mxu1 }
0x1de8   :  { %v7270_v61 = vpop.f32.mrb[31].mxu1 }
0x1dee   :  { %v8199_v25 = vpop.eup %8198 }
0x1def   :  { %7291 = vmatmul.mubr.msk.f32.vlgmr.msra.gmra.mrb[32].mxu1 %vm253_vm0, %v8199_v25 }
0x1df0   :  { %7868 = vmatpush3.bf16.msra.mxu1 %v9057_v60  ;;  %7312 = vmatprep.mubr.msk.f32.mxu1 %vm8465_vm1, %v9842_v27 }
0x1df1   :  { %7869 = vmatprep.subr.bf16.mxu1 %v9844_v4 }
0x1df4   :  { %7871 = vmatpush3.bf16.msra.mxu1 %v9061_v13 }
0x1df5   :  { %7878 = vmatprep.subr.bf16.mxu1 %v9844_v4 }
0x1ec2   :  { %v3510_v5 = vpop.f32.mrb[32].mxu1 }
0x1ec3   :  { %v3511_v45 = vadd.f32 %v9849_v48, %v3510_v5  ;;  %v7292_v12 = vpop.f32.mrb[33].mxu1 }
0x1ec4   :  { %v9850_v12 = vld [vmem:[#allocation38_spill] sm:$0xff] }
0x1ec5   :  { %8200 = vtanh.f32 %v3511_v45  ;;  %v6434_v21 = vmul.f32 -1.442695, %v3511_v45 }
0x1ec7   :  { %8202 = vpow2.f32 %v6434_v21 }
0x1ecf   :  { %v8201_v18 = vpop.eup %8200 }
0x1ed0   :  { %3523 = vrot.lane.b32.xlu1 %v8201_v18, %s8468_s1 }
0x1ed1   :  { %v8203_v58 = vpop.eup %8202 }
0x1ed2   :  { %v3517_v7 = vadd.f32 1.0, %v8203_v58 }
0x1ed4   :  { %8204 = vrcp.f32 %v3517_v7  ;;  %v9851_v7 = vld [vmem:[#allocation39_spill] sm:$0xff] }
0x1ede   :  { %v8205_v49 = vpop.eup %8204 }
0x1edf   :  { %v3521_v51 = vmul.f32 0.0, %v8205_v49 }
0x1f42   :  { %v3524_v29 = vpop.permute.xlu1 %3523 }
0x1f43   :  { %v3526_v6 = vmul.f32 %v8205_v49, %v3524_v29 }
0x1f45   :  { %3528 = vrot.lane.b32.xlu0 %v3526_v6, %s8469_s2 }
0x1f49   :  { %3292 = vrot.lane.b32.xlu0 %v3214_v42, %s8470_s18 }
0x1fb7   :  { %v3529_v2 = vpop.permute.xlu0 %3528 }
0x1fb8   :  { %v3531_v61 = vadd.f32 %v3529_v2, %v3521_v51  ;;  %v9852_v2 = vld [vmem:[#allocation33_spill] sm:$0xff] }
0x1fba   :  { %8206 = vtanh.f32 %v3531_v61 }
0x1fbb   :  { %v3293_v25 = vpop.permute.xlu0 %3292 }
0x1fbc   :  { %v3362_v5 = vadd.f32 %v3361_v19, %v3293_v25  ;;  %v9329_v25 = vadd.f32 %v9852_v2, %v9849_v48  ;;  %v3625_v48 = vrot.slane %v3531_v61, 6 }
0x1fbe   :  { %v3365_v18 = vadd.f32 %v9850_v12, %v3362_v5 }
0x1fc0   :  { %8208 = vtanh.f32 %v3365_v18 }
0x1fc4   :  { %v8207_v45 = vpop.eup %8206 }
0x1fc5   :  { %3534 = vrot.lane.b32.xlu1 %v8207_v45, %s8468_s1 }
0x1fca   :  { %v8209_v21 = vpop.eup %8208 }
0x1fcb   :  { %7280 = vmatmul.mubr.msk.f32.vlgmr.msra.gmra.mrb[42].mxu0 %vm253_vm0, %v8209_v21 }
0x1fcc   :  { %7862 = vmatpush3.bf16.msra.mxu0 %v9057_v60  ;;  %7301 = vmatprep.mubr.msk.f32.mxu0 %vm8465_vm1, %v9842_v27 }
0x1fcd   :  { %7863 = vmatprep.subr.bf16.mxu0 %v9844_v4 }
0x1fd0   :  { %7865 = vmatpush3.bf16.msra.mxu0 %v9061_v13 }
0x1fd1   :  { %7872 = vmatprep.subr.bf16.mxu0 %v9844_v4 }
0x2037   :  { %v3535_v42 = vpop.permute.xlu1 %3534 }
0x2038   :  { %v3537_v19 = vmul.f32 %v8205_v49, %v3535_v42 }
0x203a   :  { %3539 = vrot.lane.b32.xlu1 %v3537_v19, %s8469_s2 }
0x209e   :  { %v3436_v58 = vpop.f32.mrb[42].mxu0 }
0x209f   :  { %v3437_v29 = vadd.f32 %v9851_v7, %v3436_v58  ;;  %v7281_v6 = vpop.f32.mrb[43].mxu0 }
0x20a1   :  { %3440 = vst.msk [vmem:[%s8672_s17 + $0x2] sm:$0x3] %vm1692_vm11, %v3437_v29 }
0x20ac   :  { %v3540_v51 = vpop.permute.xlu1 %3539 }
0x20ad   :  { %7302 = vmatmul.mubr.msk.f32.vlgmr.msra.gmra.mrb[44].mxu0 %vm253_vm0, %v3540_v51 }
0x20ae   :  { %7874 = vmatpush3.bf16.msra.mxu0 %v9057_v60  ;;  %7323 = vmatprep.mubr.msk.f32.mxu0 %vm8465_vm1, %v9842_v27 }
0x20af   :  { %7875 = vmatprep.subr.bf16.mxu0 %v9844_v4 }
0x20b2   :  { %7877 = vmatpush3.bf16.msra.mxu0 %v9061_v13 }
0x20b3   :  { %7884 = vmatprep.subr.bf16.mxu0 %v9844_v4 }
0x2180   :  { %v3609_v49 = vpop.f32.mrb[44].mxu0 }
0x2181   :  { %v3614_v5 = vrot.slane %v3609_v49, 6  ;;  %v7303_v12 = vpop.f32.mrb[45].mxu0 }
0x2183   :  { %v3616_v18 = vadd.f32 %v3614_v5, %v9329_v25 }
0x2185   :  { %8210 = vtanh.f32 %v3616_v18  ;;  %v6436_v21 = vmul.f32 -1.442695, %v3616_v18 }
0x2187   :  { %8212 = vpow2.f32 %v6436_v21 }
0x218f   :  { %v8211_v45 = vpop.eup %8210 }
0x2190   :  { %3629 = vrot.lane.b32.xlu0 %v8211_v45, %s8468_s1 }
0x2191   :  { %v8213_v42 = vpop.eup %8212 }
0x2192   :  { %v3620_v19 = vadd.f32 1.0, %v8213_v42 }
0x2194   :  { %8214 = vrcp.f32 %v3620_v19 }
0x219e   :  { %v8215_v58 = vpop.eup %8214 }
0x219f   :  { %v3627_v6 = vmul.f32 %v8215_v58, %v3625_v48 }
0x2202   :  { %v3630_v7 = vpop.permute.xlu0 %3629 }
0x2203   :  { %v3632_v29 = vmul.f32 %v8215_v58, %v3630_v7 }
0x2205   :  { %3634 = vrot.lane.b32.xlu1 %v3632_v29, %s8469_s2 }
0x2277   :  { %v3635_v51 = vpop.permute.xlu1 %3634 }
0x2278   :  { %v3637_v49 = vadd.f32 %v3635_v51, %v3627_v6 }
0x227a   :  { %8216 = vtanh.f32 %v3637_v49 }
0x2284   :  { %v8217_v2 = vpop.eup %8216 }
0x2285   :  { %3640 = vrot.lane.b32.xlu0 %v8217_v2, %s8468_s1 }
0x22f7   :  { %v3641_v5 = vpop.permute.xlu0 %3640 }
0x22f8   :  { %v9335_v12 = vmul.f32 %v8215_v58, %v3641_v5  ;;  %v3736_v5 = vrot.slane %v3637_v49, 6 }
0x22fa   :  { %v3649_v18 = vrot.slane %v9335_v12, 2 }
0x22fc   :  { %3650 = vrot.lane.b32.xlu1 %v3649_v18, %s8469_s2 }
0x236e   :  { %v3651_v45 = vpop.permute.xlu1 %3650 }
0x236f   :  { %7313 = vmatmul.mubr.msk.f32.vlgmr.msra.gmra.mrb[34].mxu1 %vm253_vm0, %v3651_v45 }
0x2370   :  { %7880 = vmatpush3.bf16.msra.mxu1 %v9057_v60  ;;  %7334 = vmatprep.mubr.msk.f32.mxu1 %vm8465_vm1, %v9842_v27 }
0x2371   :  { %7881 = vmatprep.subr.bf16.mxu1 %v9844_v4 }
0x2374   :  { %7883 = vmatpush3.bf16.msra.mxu1 %v9061_v13 }
0x2375   :  { %7890 = vmatprep.subr.bf16.mxu1 %v9844_v4 }
0x2442   :  { %v3720_v61 = vpop.f32.mrb[34].mxu1 }
0x2443   :  { %v3725_v21 = vrot.slane %v3720_v61, 4  ;;  %v7314_v42 = vpop.f32.mrb[35].mxu1 }
0x2445   :  { %v3727_v19 = vadd.f32 %v3725_v21, %v9329_v25 }
0x2447   :  { %8218 = vtanh.f32 %v3727_v19  ;;  %v6438_v7 = vmul.f32 -1.442695, %v3727_v19 }
0x2449   :  { %8220 = vpow2.f32 %v6438_v7 }
0x2451   :  { %v8219_v58 = vpop.eup %8218 }
0x2452   :  { %3740 = vrot.lane.b32.xlu0 %v8219_v58, %s8468_s1 }
0x2453   :  { %v8221_v29 = vpop.eup %8220 }
0x2454   :  { %v3731_v48 = vadd.f32 1.0, %v8221_v29 }
0x2456   :  { %8222 = vrcp.f32 %v3731_v48 }
0x2460   :  { %v8223_v6 = vpop.eup %8222 }
0x2461   :  { %v3738_v18 = vmul.f32 %v8223_v6, %v3736_v5 }
0x24c4   :  { %v3741_v51 = vpop.permute.xlu0 %3740 }
0x24c5   :  { %v3743_v2 = vmul.f32 %v8223_v6, %v3741_v51 }
0x24c7   :  { %3745 = vrot.lane.b32.xlu1 %v3743_v2, %s8469_s2 }
0x2539   :  { %v3746_v45 = vpop.permute.xlu1 %3745 }
0x253a   :  { %v3748_v61 = vadd.f32 %v3746_v45, %v3738_v18 }
0x253c   :  { %8224 = vtanh.f32 %v3748_v61 }
0x2546   :  { %v8225_v21 = vpop.eup %8224 }
0x2547   :  { %3751 = vrot.lane.b32.xlu0 %v8225_v21, %s8468_s1 }
0x25b9   :  { %v3752_v42 = vpop.permute.xlu0 %3751 }
0x25ba   :  { %v9350_v58 = vmul.f32 %v8223_v6, %v3752_v42 }
0x25bc   :  { %v3760_v19 = vrot.slane %v9350_v58, 4 }
0x25be   :  { %3761 = vrot.lane.b32.xlu1 %v3760_v19, %s8469_s2  ;;  %v3847_v19 = vrot.slane %v3748_v61, 6  ;;  %v9853_v61 = vld [vmem:[#allocation35_spill] sm:$0xff] }
0x2630   :  { %v3762_v7 = vpop.permute.xlu1 %3761 }
0x2631   :  { %7324 = vmatmul.mubr.msk.f32.vlgmr.msra.gmra.mrb[46].mxu0 %vm253_vm0, %v3762_v7 }
0x2632   :  { %7886 = vmatpush3.bf16.msra.mxu0 %v9057_v60  ;;  %7345 = vmatprep.mubr.msk.f32.mxu0 %vm8465_vm1, %v9842_v27 }
0x2633   :  { %7887 = vmatprep.subr.bf16.mxu0 %v9844_v4 }
0x2636   :  { %7889 = vmatpush3.bf16.msra.mxu0 %v9061_v13 }
0x2637   :  { %7896 = vmatprep.subr.bf16.mxu0 %v9844_v4 }
0x2704   :  { %v3831_v49 = vpop.f32.mrb[46].mxu0 }
0x2705   :  { %v3836_v29 = vrot.slane %v3831_v49, 2  ;;  %v7325_v48 = vpop.f32.mrb[47].mxu0 }
0x2707   :  { %v3838_v6 = vadd.f32 %v3836_v29, %v9329_v25 }
0x2709   :  { %8226 = vtanh.f32 %v3838_v6  ;;  %v6440_v2 = vmul.f32 -1.442695, %v3838_v6 }
0x270b   :  { %8228 = vpow2.f32 %v6440_v2 }
0x2713   :  { %v8227_v51 = vpop.eup %8226 }
0x2714   :  { %3851 = vrot.lane.b32.xlu0 %v8227_v51, %s8468_s1 }
0x2715   :  { %v8229_v5 = vpop.eup %8228 }
0x2716   :  { %v3842_v18 = vadd.f32 1.0, %v8229_v5 }
0x2718   :  { %8230 = vrcp.f32 %v3842_v18 }
0x2722   :  { %v8231_v45 = vpop.eup %8230 }
0x2723   :  { %v3849_v7 = vmul.f32 %v8231_v45, %v3847_v19 }
0x2786   :  { %v3852_v21 = vpop.permute.xlu0 %3851 }
0x2787   :  { %v3854_v42 = vmul.f32 %v8231_v45, %v3852_v21 }
0x2789   :  { %3856 = vrot.lane.b32.xlu1 %v3854_v42, %s8469_s2 }
0x27fb   :  { %v3857_v49 = vpop.permute.xlu1 %3856 }
0x27fc   :  { %v9364_v48 = vadd.f32 %v3857_v49, %v3849_v7 }
0x27fe   :  { %8232 = vtanh.f32 %v9364_v48 }
0x2808   :  { %v8233_v29 = vpop.eup %8232 }
0x2809   :  { %3862 = vrot.lane.b32.xlu0 %v8233_v29, %s8468_s1 }
0x287b   :  { %v3863_v6 = vpop.permute.xlu0 %3862 }
0x287c   :  { %v9368_v51 = vmul.f32 %v8231_v45, %v3863_v6  ;;  %v8365_v6 = vld [vmem:[%s8494_s13 + $0x8] sm:$0xf] }
0x287e   :  { %v3871_v2 = vrot.slane %v9368_v51, 6 }
0x2880   :  { %3872 = vrot.lane.b32.xlu1 %v3871_v2, %s8469_s2 }
0x28f2   :  { %v3873_v5 = vpop.permute.xlu1 %3872 }
0x28f3   :  { %7335 = vmatmul.mubr.msk.f32.vlgmr.msra.gmra.mrb[36].mxu1 %vm253_vm0, %v3873_v5 }
0x28f4   :  { %7892 = vmatpush3.bf16.msra.mxu1 %v8728_v34  ;;  %7356 = vmatprep.mubr.msk.f32.mxu1 %vm8465_vm1, %v9842_v27  ;;  %v8363_v34 = vld [vmem:[%s8494_s13] sm:$0xff]  ;;  %s9858_s13 = sld [smem:[#allocation10_spill]] }
0x28f5   :  { %7893 = vmatprep.subr.bf16.mxu1 %v9844_v4 }
0x28f8   :  { %7895 = vmatpush3.bf16.msra.mxu1 %v8740_v38  ;;  %v9391_v38 = vld [vmem:[%s9835_s11] ss:$0 sm:$0xff] }
0x28f9   :  { %7908 = vmatprep.subr.bf16.mxu1 %v9844_v4  ;;  %v9395_v18 = vadd.f32 %v9391_v38, %v9853_v61 }
0x28fb   :  { %7357 = vmatmul.mubr.msk.f32.vlgmr.msra.gmra.mrb[38].mxu1 %vm253_vm0, %v9277_v52 }
0x28fc   :  { %7910 = vmatpush3.bf16.msra.mxu1 %v8752_v41  ;;  %7386 = vmatprep.mubr.msk.f32.mxu1 %vm8465_vm1, %v9842_v27 }
0x28fd   :  { %7911 = vmatprep.subr.bf16.mxu1 %v9844_v4 }
0x2900   :  { %7913 = vmatpush3.bf16.msra.mxu1 %v8759_v44 }
0x2903   :  { %7387 = vmatmul.mubr.msk.f32.vlgmr.msra.gmra.mrb[40].mxu1 %vm253_vm0, %v9277_v52 }
0x2904   :  { %7391 = vmatprep.mubr.msk.f32.mxu1 %vm762_vm3, %v8363_v34 }
0x29c6   :  { %v3942_v41 = vpop.f32.mrb[36].mxu1 }
0x29c7   :  { %v3946_v45 = vadd.f32 %v3942_v41, %v9395_v18  ;;  %v7336_v21 = vpop.f32.mrb[37].mxu1 }
0x29c9   :  { %8234 = vtanh.f32 %v3946_v45 }
0x29ce   :  { %v4153_v42 = vpop.f32.mrb[38].mxu1 }
0x29cf   :  { %v9399_v44 = vadd.f32 %v4153_v42, %v8806_v0  ;;  %v7358_v19 = vpop.f32.mrb[39].mxu1  ;;  %v6442_v0 = vmul.f32 -1.442695, %v3946_v45  ;;  %v3955_v45 = vrot.slane %v9364_v48, 6 }
0x29d1   :  { %8236 = vpow2.f32 %v6442_v0 }
0x29d3   :  { %v8235_v7 = vpop.eup %8234 }
0x29d4   :  { %3959 = vrot.lane.b32.xlu0 %v8235_v7, %s8468_s1  ;;  %v8366_v7 = vld [vmem:[%s8564_s27] ss:$0 sm:$0xff] }
0x29d6   :  { %v4311_v49 = vpop.f32.mrb[40].mxu1 }
0x29d7   :  { %v7388_v29 = vpop.f32.mrb[41].mxu1  ;;  %7389 = vmatprep.subr.msk.mxu1 %vm769_vm4, %v4311_v49 }
0x29d8   :  { %7390 = vmatpush3.msk.msra.mxu1 %vm769_vm4, %v4311_v49 }
0x29d9   :  { %7392 = vmatmul.mubr.msk.f32.vlgmr.msra.gmra.mrb[42].mxu1 %vm762_vm3, %v8365_v6  ;;  %7915 = vmatprep.subr.bf16.mxu1 %v8826_v17 }
0x29da   :  { %7917 = vmatpush3.bf16.msra.mxu1 %v8826_v17 }
0x29db   :  { %7919 = vmatprep.subr.bf16.mxu1 %v8830_v20  ;;  %v8237_v2 = vpop.eup %8236 }
0x29dc   :  { %v3950_v5 = vadd.f32 1.0, %v8237_v2 }
0x29de   :  { %7921 = vmatpush3.bf16.msra.mxu1 %v8830_v20  ;;  %8238 = vrcp.f32 %v3950_v5 }
0x29df   :  { %7932 = vmatprep.subr.bf16.mxu1 %v9844_v4 }
0x29e8   :  { %v8239_v34 = vpop.eup %8238 }
0x29e9   :  { %v3957_v29 = vmul.f32 %v8239_v34, %v3955_v45 }
0x2a46   :  { %v3960_v61 = vpop.permute.xlu0 %3959 }
0x2a47   :  { %v3962_v41 = vmul.f32 %v8239_v34, %v3960_v61 }
0x2a49   :  { %3964 = vrot.lane.b32.xlu1 %v3962_v41, %s8469_s2 }
0x2aac   :  { %v7393_v21 = vpop.f32.mrb[42].mxu1 }
0x2aad   :  { %v4394_v17 = vadd.f32 %v7393_v21, %v8802_v62  ;;  %v4384_v42 = vpop.f32.mrb[43].mxu1 }
0x2aae   :  { %v4393_v19 = vadd.f32 %v4384_v42, %v8804_v63 }
0x2aaf   :  { %v4396_v20 = vadd.f32 %v8366_v7, %v4394_v17 }
0x2ab0   :  { %v4395_v49 = vadd.f32 %v8366_v7, %v4393_v19 }
0x2ab2   :  { %8240 = vtanh.f32 %v4395_v49 }
0x2ab3   :  { %8242 = vtanh.f32 %v4396_v20 }
0x2abb   :  { %v3965_v6 = vpop.permute.xlu1 %3964 }
0x2abc   :  { %v8241_v0 = vpop.eup %8240  ;;  %v9416_v2 = vadd.f32 %v3965_v6, %v3957_v29 }
0x2abd   :  { %v8243_v5 = vpop.eup %8242  ;;  %7402 = vmatprep.mubr.msk.f32.mxu1 %vm253_vm0, %v8241_v0 }
0x2abe   :  { %8244 = vtanh.f32 %v9416_v2  ;;  %7403 = vmatmul.mubr.msk.f32.vlgmr.msra.gmra.mrb[44].mxu1 %vm253_vm0, %v8243_v5 }
0x2abf   :  { %7934 = vmatpush3.bf16.msra.mxu1 %v8865_v23  ;;  %7439 = vmatprep.mubr.msk.f32.mxu1 %vm8465_vm1, %v9842_v27 }
0x2ac0   :  { %7935 = vmatprep.subr.bf16.mxu1 %v9844_v4 }
0x2ac3   :  { %7937 = vmatpush3.bf16.msra.mxu1 %v8871_v26  ;;  %v8367_v26 = vld [vmem:[%s8574_s8] ss:$0 sm:$0xff]  ;;  %s9860_s8 = sld [smem:[#allocation12_spill]] }
0x2ac4   :  { %7938 = vmatprep.subr.bf16.mxu1 %v9844_v4 }
0x2ac7   :  { %7940 = vmatpush3.bf16.msra.mxu1 %v8877_v30 }
0x2ac8   :  { %v8245_v62 = vpop.eup %8244  ;;  %7941 = vmatprep.subr.bf16.mxu1 %v9844_v4 }
0x2ac9   :  { %3970 = vrot.lane.b32.xlu0 %v8245_v62, %s8468_s1  ;;  %v8369_v62 = vld [vmem:[%s9821_s0] ss:$0 sm:$0xff]  ;;  %s8475_s0 = smov [#allocation5]  }
0x2aca   :  { %s6314_s21 = sshll.u32 %s8475_s0, 4  ;;  %s6315_s21 = int_to_ptr.vmem [resolvable:$true] %s6314_s21 }
0x2acb   :  { %7943 = vmatpush3.bf16.msra.mxu1 %v8883_v36  ;;  %v8368_v36 = vld [vmem:[%s8539_s24] ss:$0 sm:$0xff]  ;;  %s8474_s24 = smov [#allocation3]  }
0x2acc   :  { %7956 = vmatprep.subr.bf16.mxu1 %v9844_v4  ;;  %s6304_s27 = sshll.u32 %s8474_s24, 4  ;;  %s6305_s27 = int_to_ptr.vmem [resolvable:$true] %s6304_s27 }
0x2acd   :  { %s8380_s19 = scalar_lea.vmem %s6305_s27, 32  ;;  %p8381_p1 = scmp.lt.s32.totalorder %s6305_s27, %s6305_s27 }
0x2b3b   :  { %v3971_v63 = vpop.permute.xlu0 %3970 }
0x2b3c   :  { %v3973_v23 = vmul.f32 %v8239_v34, %v3971_v63  ;;  %v4158_v34 = vadd.f32 %v8368_v36, %v9399_v44 }
0x2b3e   :  { %3975 = vrot.lane.b32.xlu1 %v3973_v23, %s8469_s2  ;;  %8246 = vtanh.f32 %v4158_v34 }
0x2b48   :  { %v8247_v44 = vpop.eup %8246 }
0x2b91   :  { %v7404_v48 = vpop.f32.mrb[44].mxu1 }
0x2b92   :  { %v4477_v61 = vadd.f32 %v8367_v26, %v7404_v48  ;;  %v4471_v41 = vpop.f32.mrb[45].mxu1 }
0x2b93   :  { %v4472_v21 = vadd.f32 %v8367_v26, %v4471_v41 }
0x2b94   :  { %v4483_v30 = vsel %vm950_vm5, %v4477_v61, -inf }
0x2b95   :  { %4484 = vmax.xlane.f32.xlu1 %v4483_v30  ;;  %v4480_v17 = vsel %vm253_vm0, %v4472_v21, -inf }
0x2b96   :  { %4481 = vmax.xlane.f32.xlu0 %v4480_v17 }
0x2bb0   :  { %v3976_v42 = vpop.permute.xlu1 %3975 }
0x2bb1   :  { %3978 = vst.msk [vmem:[#allocation2 + $0x10] sm:$0x3] %vm1895_vm12, %v3976_v42  ;;  %7346 = vmatmul.mubr.msk.f32.vlgmr.msra.gmra.mrb[48].mxu0 %vm253_vm0, %v3976_v42 }
0x2bb2   :  { %7898 = vmatpush3.bf16.msra.mxu0 %v8768_v47  ;;  %7375 = vmatprep.mubr.msk.f32.mxu0 %vm8465_vm1, %v9842_v27 }
0x2bb3   :  { %7899 = vmatprep.subr.bf16.mxu0 %v9844_v4 }
0x2bb6   :  { %7901 = vmatpush3.bf16.msra.mxu0 %v8774_v50 }
0x2bb7   :  { %7902 = vmatprep.subr.bf16.mxu0 %v9844_v4 }
0x2bba   :  { %7904 = vmatpush3.bf16.msra.mxu0 %v8780_v53 }
0x2bbb   :  { %7905 = vmatprep.subr.bf16.mxu0 %v9844_v4 }
0x2bbe   :  { %7907 = vmatpush3.bf16.msra.mxu0 %v8791_v57 }
0x2bbf   :  { %7922 = vmatprep.subr.bf16.mxu0 %v9844_v4 }
0x2bc1   :  { %7376 = vmatmul.mubr.msk.f32.vlgmr.msra.gmra.mrb[50].mxu0 %vm359_vm2, %v8247_v44  ;;  %v8370_v44 = vld [vmem:[%s9824_s14] sm:$0x3]  ;;  %s8376_s14 = scalar_lea.vmem %s6305_s27, 16 }
0x2bc2   :  { %7409 = vmatprep.mubr.msk.f32.mxu0 %vm8465_vm1, %v9842_v27  ;;  %p8377_p0 = scmp.ne.s32.totalorder %s6305_s27, %s8376_s14  ;;  %p8382_p2 = scmp.lt.s32.totalorder %s8380_s19, %s8376_s14 }
0x2bc4   :  { %p8383_p3 = por %p8382_p2, %p8381_p1 }
0x2bc6   :  { %p8384_p4 = pnand %p8383_p3, %p8377_p0 }
0x2c22   :  { %v4485_v47 = vpop.xlane.xlu1 %4484 }
0x2c23   :  { %v4487_v19 = vsub.f32 %v4477_v61, %v4485_v47  ;;  %v4482_v50 = vpop.xlane.xlu0 %4481 }
0x2c24   :  { %v4486_v7 = vsub.f32 %v4472_v21, %v4482_v50 }
0x2c25   :  { %v4490_v20 = vmul.f32 1.442695, %v4487_v19 }
0x2c26   :  { %v4488_v49 = vmul.f32 1.442695, %v4486_v7 }
0x2c28   :  { %8248 = vpow2.f32 %v4488_v49 }
0x2c29   :  { %8250 = vpow2.f32 %v4490_v20 }
0x2c32   :  { %v8249_v53 = vpop.eup %8248 }
0x2c33   :  { %v4492_v57 = vsel %vm253_vm0, %v8249_v53, 0.0  ;;  %v8251_v45 = vpop.eup %8250 }
0x2c34   :  { %4493 = vadd.xlane.f32.xlu0 %v4492_v57  ;;  %v4495_v29 = vsel %vm950_vm5, %v8251_v45, 0.0 }
0x2c38   :  { %4496 = vadd.xlane.f32.xlu0 %v4495_v29 }
0x2c84   :  { %v9455_v6 = vpop.f32.mrb[48].mxu0 }
0x2c85   :  { %v7347_v0 = vpop.f32.mrb[49].mxu0 }
0x2c86   :  { %v8372_v0 = vld [vmem:[%s9831_s4] ss:$0 sm:$0xff] }
0x2c94   :  { %v4229_v5 = vpop.f32.mrb[50].mxu0 }
0x2c95   :  { %v4230_v63 = vadd.f32 %v8369_v62, %v4229_v5  ;;  %v7377_v23 = vpop.f32.mrb[51].mxu0 }
0x2c97   :  { %v4233_v48 = vsel %vm679_vm6, %v4230_v63, -inf }
0x2c98   :  { %4234 = vmax.xlane.f32.xlu0 %v4233_v48 }
0x2cc1   :  { %v4494_v26 = vpop.xlane.xlu0 %4493 }
0x2cc2   :  { %8252 = vrcp.f32 %v4494_v26 }
0x2cc5   :  { %v4497_v61 = vpop.xlane.xlu0 %4496 }
0x2cc6   :  { %8254 = vrcp.f32 %v4497_v61 }
0x2ccc   :  { %v8253_v41 = vpop.eup %8252 }
0x2ccd   :  { %v4499_v21 = vmul.f32 %v8253_v41, %v8249_v53 }
0x2ccf   :  { %v4502_v42 = vmul.f32 %v9208_v54, %v4499_v21 }
0x2cd0   :  { %v8255_v30 = vpop.eup %8254 }
0x2cd1   :  { %v4501_v17 = vmul.f32 %v8255_v30, %v8251_v45  ;;  %v8371_v45 = vld [vmem:[%s9830_s20] ss:$0 sm:$0xff] }
0x2cd3   :  { %v4503_v36 = vmul.f32 %v9212_v24, %v4501_v17 }
0x2cd5   :  { %v7923_v34 = vpack.c.bf16 %v4503_v36, %v4502_v42 }
0x2cd7   :  { %7925 = vmatpush3.bf16.msk.msra.mxu0 %vm8890_vm9, %v7923_v34 }
0x2cd8   :  { %7926 = vmatprep.subr.bf16.mxu0 %v9844_v4 }
0x2cda   :  { %7410 = vmatmul.mubr.msk.f32.vlgmr.msra.gmra.mrb[52].mxu0 %vm972_vm10, %v8370_v44 }
0x2cdb   :  { %7928 = vmatpush3.bf16.msra.mxu0 %v8902_v33  ;;  %7420 = vmatprep.mubr.msk.f32.mxu0 %vm8465_vm1, %v9842_v27 }
0x2cdc   :  { %7929 = vmatprep.subr.bf16.mxu0 %v9844_v4 }
0x2cdf   :  { %7931 = vmatpush3.bf16.msra.mxu0 %v8913_v37 }
0x2ce0   :  { %7944 = vmatprep.subr.bf16.mxu0 %v9844_v4 }
0x2d25   :  { %v4235_v54 = vpop.xlane.xlu0 %4234 }
0x2d26   :  { %v4236_v24 = vsub.f32 %v4230_v63, %v4235_v54 }
0x2d28   :  { %v4237_v56 = vmul.f32 1.442695, %v4236_v24 }
0x2d2a   :  { %8256 = vpow2.f32 %v4237_v56 }
0x2d34   :  { %v8257_v47 = vpop.eup %8256 }
0x2d35   :  { %v4239_v19 = vsel %vm679_vm6, %v8257_v47, 0.0  ;;  %vm5838_vm6 = vcmask 13312  }
0x2d36   :  { %4240 = vadd.xlane.f32.xlu1 %v4239_v19 }
0x2dad   :  { %v4573_v50 = vpop.f32.mrb[52].mxu0 }
0x2dae   :  { %7421 = vmatmul.mubr.msk.f32.vlgmr.msra.gmra.mrb[54].mxu0 %vm253_vm0, %v4573_v50  ;;  %v7411_v33 = vpop.f32.mrb[53].mxu0 }
0x2daf   :  { %7946 = vmatpush3.bf16.msra.mxu0 %v8922_v16  ;;  %7450 = vmatprep.mubr.msk.f32.mxu0 %vm8465_vm1, %v9842_v27 }
0x2db0   :  { %7947 = vmatprep.subr.bf16.mxu0 %v9844_v4 }
0x2db3   :  { %7949 = vmatpush3.bf16.msra.mxu0 %v8928_v28 }
0x2db4   :  { %7950 = vmatprep.subr.bf16.mxu0 %v9844_v4 }
0x2db6   :  { %7451 = vmatmul.mubr.msk.f32.vlgmr.msra.gmra.mrb[56].mxu0 %vm253_vm0, %v9277_v52 }
0x2db7   :  { %7952 = vmatpush3.bf16.msra.mxu0 %v8936_v39  ;;  %7461 = vmatprep.mubr.msk.f32.mxu0 %vm8465_vm1, %v9842_v27 }
0x2db8   :  { %7953 = vmatprep.subr.bf16.mxu0 %v9844_v4 }
0x2dbb   :  { %7955 = vmatpush3.bf16.msra.mxu0 %v8946_v43 }
0x2dbc   :  { %7962 = vmatprep.subr.bf16.mxu0 %v9844_v4 }
0x2dc3   :  { %v4241_v37 = vpop.xlane.xlu1 %4240 }
0x2dc4   :  { %8258 = vrcp.f32 %v4241_v37 }
0x2dce   :  { %v8259_v16 = vpop.eup %8258 }
0x2dcf   :  { %v4243_v28 = vmul.f32 %v8259_v16, %v8257_v47 }
0x2dd1   :  { %v4244_v7 = vmul.f32 %v9243_v35, %v4243_v28 }
0x2dd3   :  { %7440 = vmatmul.mubr.msk.f32.vlgmr.msra.gmra.mrb[46].mxu1 %vm359_vm2, %v4244_v7 }
0x2dd4   :  { %7958 = vmatpush3.bf16.msra.mxu1 %v8984_v10  ;;  %7472 = vmatprep.mubr.msk.f32.mxu1 %vm8465_vm1, %v9842_v27 }
0x2dd5   :  { %7959 = vmatprep.subr.bf16.mxu1 %v9844_v4 }
0x2dd8   :  { %7961 = vmatpush3.bf16.msra.mxu1 %v8988_v15 }
0x2dd9   :  { %7968 = vmatprep.subr.bf16.mxu1 %v9844_v4 }
0x2e81   :  { %v4646_v39 = vpop.f32.mrb[54].mxu0 }
0x2e82   :  { %v7422_v43 = vpop.f32.mrb[55].mxu0 }
0x2e89   :  { %v4790_v20 = vpop.f32.mrb[56].mxu0 }
0x2e8a   :  { %v7452_v49 = vpop.f32.mrb[57].mxu0 }
0x2ea6   :  { %v4719_v53 = vpop.f32.mrb[46].mxu1 }
0x2ea7   :  { %v4720_v57 = vadd.f32 %v4719_v53, %v4646_v39  ;;  %v7441_v35 = vpop.f32.mrb[47].mxu1 }
0x2ea9   :  { %v4723_v29 = vadd.f32 %v8371_v45, %v4720_v57  ;;  %v8374_v57 = vld [vmem:[%s9839_s15] ss:$0 sm:$0xff] }
0x2eab   :  { %7462 = vmatmul.mubr.msk.f32.vlgmr.msra.gmra.mrb[58].mxu0 %vm253_vm0, %v4723_v29 }
0x2eac   :  { %7964 = vmatpush3.bf16.msra.mxu0 %v8955_v1  ;;  %7483 = vmatprep.mubr.msk.f32.mxu0 %vm8465_vm1, %v9842_v27 }
0x2ead   :  { %7965 = vmatprep.subr.bf16.mxu0 %v9844_v4 }
0x2eb0   :  { %7967 = vmatpush3.bf16.msra.mxu0 %v8962_v9 }
0x2eb1   :  { %7974 = vmatprep.subr.bf16.mxu0 %v9844_v4 }
0x2eb3   :  { %7484 = vmatmul.mubr.msk.f32.vlgmr.msra.gmra.mrb[60].mxu0 %vm253_vm0, %v4723_v29 }
0x2eb4   :  { %7976 = vmatpush3.bf16.msra.mxu0 %v9034_v8  ;;  %7505 = vmatprep.mubr.msk.f32.mxu0 %vm8465_vm1, %v9842_v27 }
0x2eb5   :  { %7977 = vmatprep.subr.bf16.mxu0 %v9844_v4 }
0x2eb8   :  { %7979 = vmatpush3.bf16.msra.mxu0 %v9041_v31 }
0x2eb9   :  { %7986 = vmatprep.subr.bf16.mxu0 %v9844_v4 }
0x2f7e   :  { %v4863_v1 = vpop.f32.mrb[58].mxu0 }
0x2f7f   :  { %v4864_v10 = vadd.f32 %v4863_v1, %v4790_v20  ;;  %v7463_v15 = vpop.f32.mrb[59].mxu0 }
0x2f81   :  { %v4867_v9 = vadd.f32 %v8372_v0, %v4864_v10  ;;  %v8375_v0 = vld [vmem:[%s9843_s22] ss:$0 sm:$0xff] }
0x2f83   :  { %8260 = vtanh.f32 %v4867_v9  ;;  %v6459_v8 = vmul.f32 -1.442695, %v4867_v9 }
0x2f85   :  { %8262 = vpow2.f32 %v6459_v8 }
0x2f86   :  { %v5033_v5 = vpop.f32.mrb[60].mxu0 }
0x2f87   :  { %v7485_v62 = vpop.f32.mrb[61].mxu0 }
0x2f8d   :  { %v8261_v63 = vpop.eup %8260 }
0x2f8e   :  { %4877 = vrot.lane.b32.xlu0 %v8261_v63, %s8468_s1 }
0x2f8f   :  { %v8263_v23 = vpop.eup %8262 }
0x2f90   :  { %v4871_v48 = vadd.f32 1.0, %v8263_v23 }
0x2f92   :  { %8264 = vrcp.f32 %v4871_v48 }
0x2f9c   :  { %v8265_v26 = vpop.eup %8264 }
0x2f9d   :  { %v4875_v41 = vmul.f32 %v8265_v26, %v9272_v14 }
0x3000   :  { %v4878_v31 = vpop.permute.xlu0 %4877 }
0x3001   :  { %v4880_v61 = vmul.f32 %v8265_v26, %v4878_v31 }
0x3003   :  { %4882 = vrot.lane.b32.xlu1 %v4880_v61, %s8469_s2 }
0x3075   :  { %v4883_v21 = vpop.permute.xlu1 %4882 }
0x3076   :  { %v4885_v30 = vadd.f32 %v4883_v21, %v4875_v41 }
0x3078   :  { %8266 = vtanh.f32 %v4885_v30 }
0x3082   :  { %v8267_v17 = vpop.eup %8266 }
0x3083   :  { %4888 = vrot.lane.b32.xlu1 %v8267_v17, %s8468_s1 }
0x30f5   :  { %v4889_v42 = vpop.permute.xlu1 %4888 }
0x30f6   :  { %v4891_v36 = vmul.f32 %v8265_v26, %v4889_v42 }
0x30f8   :  { %4893 = vrot.lane.b32.xlu1 %v4891_v36, %s8469_s2 }
0x316a   :  { %v4894_v34 = vpop.permute.xlu1 %4893 }
0x316b   :  { %7473 = vmatmul.mubr.msk.f32.vlgmr.msra.gmra.mrb[48].mxu1 %vm253_vm0, %v4894_v34 }
0x316c   :  { %7970 = vmatpush3.bf16.msra.mxu1 %v9003_v32  ;;  %7494 = vmatprep.mubr.msk.f32.mxu1 %vm8465_vm1, %v9842_v27 }
0x316d   :  { %7971 = vmatprep.subr.bf16.mxu1 %v9844_v4 }
0x3170   :  { %7973 = vmatpush3.bf16.msra.mxu1 %v9009_v46  ;;  %v8373_v46 = vld [vmem:[%s9834_s7] ss:$0 sm:$0xff] }
0x3171   :  { %7980 = vmatprep.subr.bf16.mxu1 %v9844_v4 }
0x3173   :  { %7495 = vmatmul.mubr.msk.f32.vlgmr.msra.gmra.mrb[50].mxu1 %vm253_vm0, %v9277_v52 }
0x3174   :  { %7982 = vmatpush3.bf16.msra.mxu1 %v8684_v3  ;;  %7516 = vmatprep.mubr.msk.f32.mxu1 %vm8465_vm1, %v9842_v27 }
0x3175   :  { %7983 = vmatprep.subr.bf16.mxu1 %v9844_v4 }
0x3178   :  { %7985 = vmatpush3.bf16.msra.mxu1 %v9847_v55 }
0x3179   :  { %7992 = vmatprep.subr.bf16.mxu1 %v9844_v4 }
0x323e   :  { %v4963_v32 = vpop.f32.mrb[48].mxu1 }
0x323f   :  { %v5037_v14 = vadd.f32 %v5033_v5, %v4963_v32  ;;  %v7474_v44 = vpop.f32.mrb[49].mxu1 }
0x3241   :  { %v5038_v54 = vadd.f32 %v8373_v46, %v5037_v14 }
0x3243   :  { %8268 = vtanh.f32 %v5038_v54 }
0x3246   :  { %v5110_v24 = vpop.f32.mrb[50].mxu1 }
0x3247   :  { %v7496_v56 = vpop.f32.mrb[51].mxu1 }
0x324d   :  { %v8269_v52 = vpop.eup %8268 }
0x324e   :  { %7517 = vmatmul.mubr.msk.f32.vlgmr.msra.gmra.mrb[52].mxu1 %vm253_vm0, %v8269_v52 }
0x324f   :  { %7994 = vmatpush3.bf16.msra.mxu1 %v9057_v60  ;;  %7538 = vmatprep.mubr.msk.f32.mxu1 %vm8465_vm1, %v9842_v27 }
0x3250   :  { %7995 = vmatprep.subr.bf16.mxu1 %v9844_v4 }
0x3253   :  { %7997 = vmatpush3.bf16.msra.mxu1 %v9061_v13 }
0x3254   :  { %8004 = vmatprep.subr.bf16.mxu1 %v9844_v4 }
0x3321   :  { %v5259_v3 = vpop.f32.mrb[52].mxu1 }
0x3322   :  { %v5260_v55 = vadd.f32 %v9391_v38, %v5259_v3  ;;  %v7518_v47 = vpop.f32.mrb[53].mxu1 }
0x3324   :  { %8270 = vtanh.f32 %v5260_v55  ;;  %v6465_v50 = vmul.f32 -1.442695, %v5260_v55 }
0x3326   :  { %8272 = vpow2.f32 %v6465_v50 }
0x332e   :  { %v8271_v19 = vpop.eup %8270 }
0x332f   :  { %5272 = vrot.lane.b32.xlu0 %v8271_v19, %s8468_s1 }
0x3330   :  { %v8273_v33 = vpop.eup %8272 }
0x3331   :  { %v5266_v37 = vadd.f32 1.0, %v8273_v33 }
0x3333   :  { %8274 = vrcp.f32 %v5266_v37 }
0x333d   :  { %v8275_v16 = vpop.eup %8274 }
0x333e   :  { %v5270_v39 = vmul.f32 0.0, %v8275_v16 }
0x33a1   :  { %v5273_v28 = vpop.permute.xlu0 %5272 }
0x33a2   :  { %v5275_v7 = vmul.f32 %v8275_v16, %v5273_v28 }
0x33a4   :  { %5277 = vrot.lane.b32.xlu1 %v5275_v7, %s8469_s2 }
0x33a8   :  { %5041 = vrot.lane.b32.xlu1 %v4963_v32, %s8470_s18 }
0x3416   :  { %v5278_v43 = vpop.permute.xlu1 %5277 }
0x3417   :  { %v5280_v20 = vadd.f32 %v5278_v43, %v5270_v39 }
0x3419   :  { %8276 = vtanh.f32 %v5280_v20  ;;  %v5374_v42 = vrot.slane %v5280_v20, 4 }
0x341a   :  { %v5042_v49 = vpop.permute.xlu1 %5041 }
0x341b   :  { %v5111_v53 = vadd.f32 %v5110_v24, %v5042_v49 }
0x341d   :  { %v5114_v35 = vadd.f32 %v8374_v57, %v5111_v53 }
0x341f   :  { %8278 = vtanh.f32 %v5114_v35 }
0x3423   :  { %v8277_v45 = vpop.eup %8276 }
0x3424   :  { %5283 = vrot.lane.b32.xlu0 %v8277_v45, %s8468_s1 }
0x3429   :  { %v8279_v29 = vpop.eup %8278 }
0x342a   :  { %7506 = vmatmul.mubr.msk.f32.vlgmr.msra.gmra.mrb[62].mxu0 %vm253_vm0, %v8279_v29  ;;  %v9854_v29 = vld [vmem:[#allocation34_spill] sm:$0xff] }
0x342b   :  { %7988 = vmatpush3.bf16.msra.mxu0 %v9057_v60  ;;  %7527 = vmatprep.mubr.msk.f32.mxu0 %vm8465_vm1, %v9842_v27 }
0x342c   :  { %7989 = vmatprep.subr.bf16.mxu0 %v9844_v4 }
0x342f   :  { %7991 = vmatpush3.bf16.msra.mxu0 %v9061_v13 }
0x3430   :  { %7998 = vmatprep.subr.bf16.mxu0 %v9844_v4 }
0x3496   :  { %v5284_v1 = vpop.permute.xlu0 %5283 }
0x3497   :  { %v5286_v10 = vmul.f32 %v8275_v16, %v5284_v1  ;;  %v9594_v1 = vadd.f32 %v9391_v38, %v9854_v29 }
0x3499   :  { %5288 = vrot.lane.b32.xlu0 %v5286_v10, %s8469_s2 }
0x34fd   :  { %v5185_v15 = vpop.f32.mrb[62].mxu0 }
0x34fe   :  { %v5186_v9 = vadd.f32 %v8375_v0, %v5185_v15  ;;  %v7507_v5 = vpop.f32.mrb[63].mxu0 }
0x3500   :  { %5189 = vst.msk [vmem:[%s8672_s17 + $0x4] sm:$0x3] %vm1692_vm11, %v5186_v9 }
0x350b   :  { %v5289_v62 = vpop.permute.xlu0 %5288 }
0x350c   :  { %7528 = vmatmul.mubr.msk.f32.vlgmr.msra.gmra.mrb[64].mxu0 %vm253_vm0, %v5289_v62 }
0x350d   :  { %8000 = vmatpush3.bf16.msra.mxu0 %v9057_v60  ;;  %7549 = vmatprep.mubr.msk.f32.mxu0 %vm8465_vm1, %v9842_v27 }
0x350e   :  { %8001 = vmatprep.subr.bf16.mxu0 %v9844_v4 }
0x3511   :  { %8003 = vmatpush3.bf16.msra.mxu0 %v9061_v13 }
0x3512   :  { %8010 = vmatprep.subr.bf16.mxu0 %v9844_v4 }
0x35df   :  { %v5358_v63 = vpop.f32.mrb[64].mxu0 }
0x35e0   :  { %v5363_v8 = vrot.slane %v5358_v63, 4  ;;  %v7529_v23 = vpop.f32.mrb[65].mxu0 }
0x35e2   :  { %v5365_v48 = vadd.f32 %v5363_v8, %v9395_v18 }
0x35e4   :  { %8280 = vtanh.f32 %v5365_v48  ;;  %v6467_v31 = vmul.f32 -1.442695, %v5365_v48 }
0x35e6   :  { %8282 = vpow2.f32 %v6467_v31 }
0x35ee   :  { %v8281_v26 = vpop.eup %8280 }
0x35ef   :  { %5378 = vrot.lane.b32.xlu1 %v8281_v26, %s8468_s1 }
0x35f0   :  { %v8283_v61 = vpop.eup %8282 }
0x35f1   :  { %v5369_v41 = vadd.f32 1.0, %v8283_v61 }
0x35f3   :  { %8284 = vrcp.f32 %v5369_v41 }
0x35fd   :  { %v8285_v21 = vpop.eup %8284 }
0x35fe   :  { %v5376_v36 = vmul.f32 %v8285_v21, %v5374_v42 }
0x3661   :  { %v5379_v30 = vpop.permute.xlu1 %5378 }
0x3662   :  { %v5381_v17 = vmul.f32 %v8285_v21, %v5379_v30 }
0x3664   :  { %5383 = vrot.lane.b32.xlu0 %v5381_v17, %s8469_s2 }
0x36d6   :  { %v5384_v34 = vpop.permute.xlu0 %5383 }
0x36d7   :  { %v5386_v32 = vadd.f32 %v5384_v34, %v5376_v36 }
0x36d9   :  { %8286 = vtanh.f32 %v5386_v32  ;;  %v5485_v7 = vrot.slane %v5386_v32, 6 }
0x36e3   :  { %v8287_v14 = vpop.eup %8286 }
0x36e4   :  { %5389 = vrot.lane.b32.xlu1 %v8287_v14, %s8468_s1 }
0x3756   :  { %v5390_v44 = vpop.permute.xlu1 %5389 }
0x3757   :  { %v9568_v46 = vmul.f32 %v8285_v21, %v5390_v44 }
0x3759   :  { %v5398_v54 = vrot.slane %v9568_v46, 4 }
0x375b   :  { %5399 = vrot.lane.b32.xlu0 %v5398_v54, %s8469_s2 }
0x37cd   :  { %v5400_v24 = vpop.permute.xlu0 %5399 }
0x37ce   :  { %7539 = vmatmul.mubr.msk.f32.vlgmr.msra.gmra.mrb[54].mxu1 %vm253_vm0, %v5400_v24 }
0x37cf   :  { %8006 = vmatpush3.bf16.msra.mxu1 %v9057_v60  ;;  %7560 = vmatprep.mubr.msk.f32.mxu1 %vm8465_vm1, %v9842_v27 }
0x37d0   :  { %8007 = vmatprep.subr.bf16.mxu1 %v9844_v4 }
0x37d3   :  { %8009 = vmatpush3.bf16.msra.mxu1 %v9061_v13 }
0x38a1   :  { %v5469_v56 = vpop.f32.mrb[54].mxu1 }
0x38a2   :  { %v5474_v52 = vrot.slane %v5469_v56, 2  ;;  %v7540_v3 = vpop.f32.mrb[55].mxu1 }
0x38a4   :  { %v5476_v55 = vadd.f32 %v5474_v52, %v9395_v18 }
0x38a6   :  { %8288 = vtanh.f32 %v5476_v55  ;;  %v6469_v19 = vmul.f32 -1.442695, %v5476_v55 }
0x38a8   :  { %8290 = vpow2.f32 %v6469_v19 }
0x38b0   :  { %v8289_v47 = vpop.eup %8288 }
0x38b1   :  { %5489 = vrot.lane.b32.xlu1 %v8289_v47, %s8468_s1  ;;  %v2305_v47 = vadd.f32 %v9203_v40, %v9329_v25 }
0x38b2   :  { %v8291_v50 = vpop.eup %8290 }
0x38b3   :  { %v5480_v33 = vadd.f32 1.0, %v8291_v50 }
0x38b5   :  { %8292 = vrcp.f32 %v5480_v33  ;;  %v6413_v33 = vmul.f32 -1.442695, %v2305_v47 }
0x38bf   :  { %v8293_v37 = vpop.eup %8292 }
0x38c0   :  { %v5487_v39 = vmul.f32 %v8293_v37, %v5485_v7 }
0x3923   :  { %v5490_v16 = vpop.permute.xlu1 %5489 }
0x3924   :  { %v5492_v28 = vmul.f32 %v8293_v37, %v5490_v16 }
0x3926   :  { %5494 = vrot.lane.b32.xlu0 %v5492_v28, %s8469_s2 }
0x3998   :  { %v5495_v43 = vpop.permute.xlu0 %5494 }
0x3999   :  { %v5497_v20 = vadd.f32 %v5495_v43, %v5487_v39 }
0x399b   :  { %8294 = vtanh.f32 %v5497_v20  ;;  %v5593_v38 = vrot.slane %v5497_v20, 6 }
0x39a5   :  { %v8295_v49 = vpop.eup %8294 }
0x39a6   :  { %5500 = vrot.lane.b32.xlu1 %v8295_v49, %s8468_s1 }
0x3a18   :  { %v5501_v53 = vpop.permute.xlu1 %5500 }
0x3a19   :  { %v9582_v57 = vmul.f32 %v8293_v37, %v5501_v53  ;;  %v4052_v37 = vrot.slane %v9455_v6, 6 }
0x3a1b   :  { %v5509_v35 = vrot.slane %v9582_v57, 6  ;;  %v4054_v28 = vadd.f32 %v4052_v37, %v9395_v18 }
0x3a1d   :  { %5510 = vrot.lane.b32.xlu0 %v5509_v35, %s8469_s2  ;;  %v6444_v18 = vmul.f32 -1.442695, %v4054_v28 }
0x3a8f   :  { %v5511_v45 = vpop.permute.xlu0 %5510 }
0x3a90   :  { %7550 = vmatmul.mubr.msk.f32.vlgmr.msra.gmra.mrb[66].mxu0 %vm253_vm0, %v5511_v45 }
0x3a91   :  { %8012 = vmatpush3.bf16.msra.mxu0 %v9057_v60  ;;  %7571 = vmatprep.mubr.msk.f32.mxu0 %vm8465_vm1, %v9842_v27  ;;  %vm5990_vm1 = vcmask 162816  }
0x3a92   :  { %8013 = vmatprep.subr.bf16.mxu0 %v9844_v4 }
0x3a95   :  { %8015 = vmatpush3.bf16.msra.mxu0 %v9061_v13 }
0x3b63   :  { %v5580_v10 = vpop.f32.mrb[66].mxu0 }
0x3b64   :  { %v5584_v15 = vadd.f32 %v5580_v10, %v9594_v1  ;;  %v7551_v0 = vpop.f32.mrb[67].mxu0 }
0x3b66   :  { %8296 = vtanh.f32 %v5584_v15  ;;  %v6471_v60 = vmul.f32 -1.442695, %v5584_v15 }
0x3b68   :  { %8298 = vpow2.f32 %v6471_v60  ;;  %v2314_v60 = vrot.slane %v9162_v22, 6 }
0x3b70   :  { %v8297_v9 = vpop.eup %8296 }
0x3b71   :  { %5597 = vrot.lane.b32.xlu1 %v8297_v9, %s8468_s1 }
0x3b72   :  { %v8299_v5 = vpop.eup %8298 }
0x3b73   :  { %v5588_v62 = vadd.f32 1.0, %v8299_v5 }
0x3b75   :  { %8300 = vrcp.f32 %v5588_v62 }
0x3b7f   :  { %v8301_v4 = vpop.eup %8300 }
0x3b80   :  { %v5595_v8 = vmul.f32 %v8301_v4, %v5593_v38 }
0x3be3   :  { %v5598_v63 = vpop.permute.xlu1 %5597 }
0x3be4   :  { %v5600_v13 = vmul.f32 %v8301_v4, %v5598_v63 }
0x3be6   :  { %5602 = vrot.lane.b32.xlu0 %v5600_v13, %s8469_s2 }
0x3c58   :  { %v5603_v23 = vpop.permute.xlu0 %5602 }
0x3c59   :  { %v5605_v48 = vadd.f32 %v5603_v23, %v5595_v8 }
0x3c5b   :  { %8302 = vtanh.f32 %v5605_v48  ;;  %v5701_v56 = vrot.slane %v5605_v48, 6 }
0x3c65   :  { %v8303_v26 = vpop.eup %8302 }
0x3c66   :  { %5608 = vrot.lane.b32.xlu1 %v8303_v26, %s8468_s1 }
0x3cd8   :  { %v5609_v31 = vpop.permute.xlu1 %5608 }
0x3cd9   :  { %v5611_v61 = vmul.f32 %v8301_v4, %v5609_v31  ;;  %v4063_v31 = vrot.slane %v9416_v2, 6 }
0x3cdb   :  { %5613 = vrot.lane.b32.xlu0 %v5611_v61, %s8469_s2 }
0x3d4d   :  { %v5614_v41 = vpop.permute.xlu0 %5613 }
0x3d4e   :  { %5616 = vst.msk [vmem:[#allocation2 + $0x18] sm:$0x3] %vm1895_vm12, %v5614_v41  ;;  %7561 = vmatmul.mubr.msk.f32.vlgmr.msra.gmra.mrb[56].mxu1 %vm253_vm0, %v5614_v41 }
0x3e21   :  { %v5685_v21 = vpop.f32.mrb[56].mxu1 }
0x3e22   :  { %v5690_v30 = vrot.slane %v5685_v21, 6  ;;  %v7562_v17 = vpop.f32.mrb[57].mxu1 }
0x3e24   :  { %v5692_v42 = vadd.f32 %v5690_v30, %v9594_v1 }
0x3e26   :  { %8304 = vtanh.f32 %v5692_v42  ;;  %v6473_v34 = vmul.f32 -1.442695, %v5692_v42  ;;  %v9856_v42 = vld [vmem:[#allocation40_spill] sm:$0xff] }
0x3e28   :  { %8306 = vpow2.f32 %v6473_v34 }
0x3e30   :  { %v8305_v36 = vpop.eup %8304 }
0x3e31   :  { %5705 = vrot.lane.b32.xlu1 %v8305_v36, %s8468_s1 }
0x3e32   :  { %v8307_v32 = vpop.eup %8306 }
0x3e33   :  { %v5696_v14 = vadd.f32 1.0, %v8307_v32 }
0x3e35   :  { %8308 = vrcp.f32 %v5696_v14  ;;  %v5883_v14 = vld [vmem:[%s9855_s5 + $0x8] sm:$0xff] }
0x3e3f   :  { %v8309_v44 = vpop.eup %8308 }
0x3e40   :  { %v5703_v52 = vmul.f32 %v8309_v44, %v5701_v56 }
0x3ea3   :  { %v5706_v54 = vpop.permute.xlu1 %5705 }
0x3ea4   :  { %v5708_v24 = vmul.f32 %v8309_v44, %v5706_v54  ;;  %v5884_v54 = vld [vmem:[%s9855_s5 + $0x10] sm:$0xff] }
0x3ea6   :  { %5710 = vrot.lane.b32.xlu0 %v5708_v24, %s8469_s2 }
0x3f18   :  { %v5711_v3 = vpop.permute.xlu0 %5710 }
0x3f19   :  { %v9606_v55 = vadd.f32 %v5711_v3, %v5703_v52 }
0x3f1b   :  { %8310 = vtanh.f32 %v9606_v55  ;;  %v5812_v2 = vrot.slane %v9606_v55, 6 }
0x3f1c   :  { %8312 = vtanh.f32 %v2305_v47 }
0x3f1d   :  { %8314 = vpow2.f32 %v6413_v33 }
0x3f1e   :  { %8316 = vtanh.f32 %v4054_v28 }
0x3f25   :  { %v8311_v19 = vpop.eup %8310 }
0x3f26   :  { %5716 = vrot.lane.b32.xlu1 %v8311_v19, %s8468_s1  ;;  %v8313_v50 = vpop.eup %8312 }
0x3f27   :  { %v8315_v16 = vpop.eup %8314 }
0x3f28   :  { %v2309_v7 = vadd.f32 1.0, %v8315_v16  ;;  %v8317_v43 = vpop.eup %8316 }
0x3f2a   :  { %2318 = vrot.lane.b32.xlu1 %v8313_v50, %s8468_s1  ;;  %8318 = vrcp.f32 %v2309_v7 }
0x3f2b   :  { %8320 = vpow2.f32 %v6444_v18 }
0x3f34   :  { %v9617_v49 = vpop.eup %8318 }
0x3f35   :  { %v8321_v35 = vpop.eup %8320  ;;  %v2316_v62 = vmul.f32 %v9617_v49, %v2314_v60 }
0x3f36   :  { %v4058_v0 = vadd.f32 1.0, %v8321_v35 }
0x3f98   :  { %v5717_v40 = vpop.permute.xlu1 %5716 }
0x3f99   :  { %v5719_v25 = vmul.f32 %v8309_v44, %v5717_v40 }
0x3f9b   :  { %v5725_v39 = vrot.slane %v5719_v25, 2 }
0x3f9c   :  { %v2319_v20 = vpop.permute.xlu1 %2318 }
0x3f9d   :  { %5726 = vrot.lane.b32.xlu0 %v5725_v39, %s8469_s2  ;;  %v2321_v53 = vmul.f32 %v9617_v49, %v2319_v20 }
0x3fa1   :  { %4067 = vrot.lane.b32.xlu0 %v8317_v43, %s8468_s1 }
0x3fa5   :  { %2323 = vrot.lane.b32.xlu0 %v2321_v53, %s8469_s2  ;;  %v6476_v53 = vld [vmem:[%s9857_s9] ss:$0 sm:$0xff] }
0x400f   :  { %v5727_v6 = vpop.permute.xlu0 %5726 }
0x4010   :  { %7572 = vmatmul.mubr.msk.f32.vlgmr.msra.gmra.mrb[68].mxu0 %vm253_vm0, %v5727_v6 }
0x4013   :  { %v4068_v45 = vpop.permute.xlu0 %4067 }
0x4017   :  { %v2324_v5 = vpop.permute.xlu0 %2323 }
0x4018   :  { %v2326_v4 = vadd.f32 %v2324_v5, %v2316_v62 }
0x40e3   :  { %v5796_v29 = vpop.f32.mrb[68].mxu0 }
0x40e4   :  { %v5801_v10 = vrot.slane %v5796_v29, 4  ;;  %v7573_v15 = vpop.f32.mrb[69].mxu0 }
0x40e6   :  { %v5803_v9 = vadd.f32 %v5801_v10, %v9594_v1 }
0x40e8   :  { %8322 = vtanh.f32 %v5803_v9  ;;  %v6475_v1 = vmul.f32 -1.442695, %v5803_v9 }
0x40e9   :  { %8324 = vrcp.f32 %v4058_v0 }
0x40ea   :  { %8326 = vtanh.f32 %v2326_v4 }
0x40eb   :  { %8328 = vpow2.f32 %v6475_v1 }
0x40f2   :  { %v8323_v63 = vpop.eup %8322 }
0x40f3   :  { %5816 = vrot.lane.b32.xlu1 %v8323_v63, %s8468_s1  ;;  %v8325_v13 = vpop.eup %8324  ;;  %v8471_v63 = vmov 0  }
0x40f4   :  { %v4070_v38 = vmul.f32 %v8325_v13, %v4068_v45  ;;  %v8327_v8 = vpop.eup %8326  ;;  %v4065_v41 = vmul.f32 %v8325_v13, %v4063_v31  ;;  %8101 = vset.pattern.permute.xlu1 %v8471_v63  ;;  %8100 = vset.pattern.permute.xlu0 %v8471_v63 }
0x40f5   :  { %v8329_v22 = vpop.eup %8328 }
0x40f6   :  { %v5807_v23 = vadd.f32 1.0, %v8329_v22 }
0x40f7   :  { %4072 = vrot.lane.b32.xlu1 %v4070_v38, %s8469_s2 }
0x40f8   :  { %8330 = vrcp.f32 %v5807_v23 }
0x40fb   :  { %2329 = vrot.lane.b32.xlu1 %v8327_v8, %s8468_s1 }
0x4102   :  { %v8331_v48 = vpop.eup %8330 }
0x4103   :  { %v5814_v36 = vmul.f32 %v8331_v48, %v5812_v2 }
0x4165   :  { %v5817_v26 = vpop.permute.xlu1 %5816 }
0x4166   :  { %v5819_v61 = vmul.f32 %v8331_v48, %v5817_v26 }
0x4168   :  { %5821 = vrot.lane.b32.xlu0 %v5819_v61, %s8469_s2 }
0x4169   :  { %v4073_v21 = vpop.permute.xlu1 %4072 }
0x416a   :  { %v4075_v30 = vadd.f32 %v4073_v21, %v4065_v41 }
0x416c   :  { %8332 = vtanh.f32 %v4075_v30 }
0x416d   :  { %v2330_v56 = vpop.permute.xlu1 %2329 }
0x416e   :  { %v2332_v3 = vmul.f32 %v9617_v49, %v2330_v56 }
0x4176   :  { %v8333_v17 = vpop.eup %8332 }
0x4177   :  { %4078 = vrot.lane.b32.xlu0 %v8333_v17, %s8468_s1 }
0x417b   :  { %2001 = vrot.lane.b32.xlu0 %v9856_v42, %s8469_s2 }
0x417f   :  { %2225 = vrot.lane.b32.xlu0 %v9177_v59, %s8469_s2  ;;  %v5882_v59 = vld [vmem:[%s9855_s5] sm:$0xff] }
0x4180   :  { %v8016_v44 = vpack.c.bf16 %v5883_v14, %v5882_v59  ;;  %v9692_v59 = vld [vmem:[%s9858_s13 + $0x8] sm:$0xff]  ;;  %v9695_v14 = vld [vmem:[%s9858_s13] sm:$0xff] }
0x4181   :  { %vm6084_vm9 = vcmp.ne.s32.totalorder %v9695_v14, 0  ;;  %vm6085_vm10 = vcmp.ne.s32.totalorder %v9692_v59, 0 }
0x4182   :  { %8017 = vmatprep.subr.bf16.mxu1 %v8016_v44  ;;  %v6481_v63 = vsel %vm6084_vm9, 1.0, %v9842_v27 }
0x4183   :  { %3645 = vrot.lane.b32.xlu0 %v9335_v12, %s8469_s2  ;;  %8019 = vmatpush3.bf16.msra.mxu1 %v8016_v44  ;;  %v9700_v44 = vld [vmem:[%s9858_s13 + $0x10] sm:$0xff] }
0x4184   :  { %vm6086_vm11 = vcmp.ne.s32.totalorder %v9700_v44, 0 }
0x4187   :  { %3867 = vrot.lane.b32.xlu0 %v9368_v51, %s8469_s2 }
0x418b   :  { %5394 = vrot.lane.b32.xlu0 %v9568_v46, %s8469_s2  ;;  %v5885_v46 = vld [vmem:[%s9855_s5 + $0x18] sm:$0xff] }
0x418c   :  { %v8020_v24 = vpack.c.bf16 %v5885_v46, %v5884_v54 }
0x418e   :  { %8021 = vmatprep.subr.bf16.mxu1 %v8020_v24 }
0x418f   :  { %5721 = vrot.lane.b32.xlu0 %v5719_v25, %s8469_s2  ;;  %8023 = vmatpush3.bf16.msra.mxu1 %v8020_v24 }
0x41da   :  { %v5822_v34 = vpop.permute.xlu0 %5821 }
0x41db   :  { %v5824_v32 = vadd.f32 %v5822_v34, %v5814_v36 }
0x41dd   :  { %8334 = vtanh.f32 %v5824_v32 }
0x41e7   :  { %v8335_v12 = vpop.eup %8334 }
0x41e8   :  { %5827 = vrot.lane.b32.xlu1 %v8335_v12, %s8468_s1  ;;  %v5999_v12 = vld [vmem:[%s9858_s13 + $0x18] sm:$0x3f] }
0x41e9   :  { %v4079_v51 = vpop.permute.xlu0 %4078  ;;  %vm6087_vm7 = vcmp.ne.s32.totalorder %v5999_v12, 0 }
0x41ea   :  { %v4081_v19 = vmul.f32 %v8325_v13, %v4079_v51 }
0x41ec   :  { %2113 = vrot.lane.b32.xlu1 %v9120_v11, %s8469_s2 }
0x41ed   :  { %v2002_v52 = vpop.permute.xlu0 %2001 }
0x41ee   :  { %2005 = vst.msk [vmem:[#allocation2] sm:$0xc] %vm2004_vm13, %v2002_v52  ;;  %v5851_v52 = vlaneseq }
0x41f0   :  { %2334 = vrot.lane.b32.xlu1 %v2332_v3, %s8469_s2 }
0x41f1   :  { %v2226_v55 = vpop.permute.xlu0 %2225 }
0x41f2   :  { %2229 = vst.msk [vmem:[#allocation2] sm:$0xc0] %vm2228_vm14, %v2226_v55 }
0x41f4   :  { %3756 = vrot.lane.b32.xlu1 %v9350_v58, %s8469_s2 }
0x41f5   :  { %v3646_v47 = vpop.permute.xlu0 %3645 }
0x41f6   :  { %3648 = vst.msk [vmem:[#allocation2 + $0x8] sm:$0xc] %vm2004_vm13, %v3646_v47 }
0x41f8   :  { %4083 = vrot.lane.b32.xlu1 %v4081_v19, %s8469_s2  ;;  %v9704_v19 = vand.u32 127, %v5851_v52 }
0x41f9   :  { %v3868_v11 = vpop.permute.xlu0 %3867 }
0x41fa   :  { %3870 = vst.msk [vmem:[#allocation2 + $0x8] sm:$0xc0] %vm2228_vm14, %v3868_v11 }
0x41fc   :  { %5505 = vrot.lane.b32.xlu1 %v9582_v57, %s8469_s2 }
0x41fd   :  { %v5395_v50 = vpop.permute.xlu0 %5394 }
0x41fe   :  { %5397 = vst.msk [vmem:[#allocation2 + $0x10] sm:$0x30] %vm2116_vm15, %v5395_v50 }
0x4201   :  { %v5722_v33 = vpop.permute.xlu0 %5721 }
0x4202   :  { %5724 = vst.msk [vmem:[#allocation2 + $0x18] sm:$0xc] %vm2004_vm13, %v5722_v33 }
0x425a   :  { %v5828_v58 = vpop.permute.xlu1 %5827 }
0x425b   :  { %v5830_v37 = vmul.f32 %v8331_v48, %v5828_v58 }
0x425d   :  { %5832 = vrot.lane.b32.xlu1 %v5830_v37, %s8469_s2 }
0x425e   :  { %v2114_v16 = vpop.permute.xlu1 %2113 }
0x425f   :  { %2117 = vst.msk [vmem:[#allocation2] sm:$0x30] %vm2116_vm15, %v2114_v16 }
0x4262   :  { %v2335_v28 = vpop.permute.xlu1 %2334 }
0x4263   :  { %2337 = vst.msk [vmem:[#allocation2 + $0x8] sm:$0x3] %vm1895_vm12, %v2335_v28  ;;  %vm6109_vm12 = vcmask 1045504  }
0x4266   :  { %v3757_v7 = vpop.permute.xlu1 %3756  ;;  %v5878_v40 = vld [vmem:[#allocation2] sm:$0xff] }
0x4267   :  { %3759 = vst.msk [vmem:[#allocation2 + $0x8] sm:$0x30] %vm2116_vm15, %v3757_v7  ;;  %7582 = vmatprep.mubr.msk.f32.mxu1 %vm253_vm0, %v5878_v40 }
0x426a   :  { %v4084_v57 = vpop.permute.xlu1 %4083 }
0x426b   :  { %4086 = vst.msk [vmem:[#allocation2 + $0x10] sm:$0xc] %vm2004_vm13, %v4084_v57  ;;  %vm8034_vm13 = vmpackc.low %vm6085_vm10, %vm6084_vm9 }
0x426e   :  { %v5506_v25 = vpop.permute.xlu1 %5505  ;;  %v5879_v39 = vld [vmem:[#allocation2 + $0x8] sm:$0xff] }
0x426f   :  { %5508 = vst.msk [vmem:[#allocation2 + $0x10] sm:$0xc0] %vm2228_vm14, %v5506_v25  ;;  %7583 = vmatmul.mubr.msk.f32.vlgmr.msra.gmra.mrb[58].mxu1 %vm253_vm0, %v5879_v39  ;;  %vm6102_vm14 = vcmask 244736  }
0x4276   :  { %v5880_v43 = vld [vmem:[#allocation2 + $0x10] sm:$0xff] }
0x4277   :  { %7585 = vmatprep.mubr.msk.f32.mxu1 %vm253_vm0, %v5880_v43 }
0x42cf   :  { %v5833_v20 = vpop.permute.xlu1 %5832 }
0x42d0   :  { %5835 = vst.msk [vmem:[#allocation2 + $0x18] sm:$0x30] %vm2116_vm15, %v5833_v20  ;;  %vm8039_vm15 = vmpackc.low %vm6109_vm12, %vm6086_vm11 }
0x42d7   :  { %v5881_v49 = vld [vmem:[#allocation2 + $0x18] sm:$0x3f] }
0x42d8   :  { %7586 = vmatmul.mubr.msk.f32.gmra.mrb[60].mxu1 %vm253_vm0, %v5881_v49  ;;  %vm5994_vm0 = vcmask 160768  }
0x4342   :  { %v7584_v6 = vpop.f32.mrb[58].mxu1 }
0x4343   :  { %v5977_v18 = vadd.f32 %v7584_v6, %v6476_v53  ;;  %v5971_v35 = vpop.f32.mrb[59].mxu1 }
0x4344   :  { %v5972_v45 = vadd.f32 %v6476_v53, %v5971_v35 }
0x4345   :  { %5992 = vst.msk [vmem:[%s8667_s25 + $0x8] sm:$0xff] %vm5990_vm1, %v5977_v18  ;;  %v6003_v29 = vsel %vm5990_vm1, %v5977_v18, -inf }
0x4346   :  { %5991 = vst.msk [vmem:[%s8667_s25] sm:$0xff] %vm5990_vm1, %v5972_v45  ;;  %6004 = vmax.xlane.f32.xlu1 %v6003_v29  ;;  %v6000_v10 = vsel %vm5990_vm1, %v5972_v45, -inf  ;;  %v5836_v29 = vld [vmem:[%s8672_s17] sm:$0x3f]  ;;  %s9861_s17 = sld [smem:[#allocation13_spill]] }
0x4347   :  { %6001 = vmax.xlane.f32.xlu0 %v6000_v10  ;;  %v5839_v10 = vsel %vm5838_vm6, %v5836_v29, -inf }
0x43ab   :  { %v7587_v15 = vpop.f32.mrb[60].mxu1 }
0x43ac   :  { %v5987_v0 = vadd.f32 %v7587_v15, %v6476_v53  ;;  %v5981_v9 = vpop.f32.mrb[61].mxu1 }
0x43ad   :  { %v5982_v60 = vadd.f32 %v6476_v53, %v5981_v9  ;;  %v8472_v9 = vmov 1.0  }
0x43ae   :  { %5995 = vst.msk [vmem:[%s8667_s25 + $0x18] sm:$0x3f] %vm5994_vm0, %v5987_v0  ;;  %v6009_v62 = vsel %vm5994_vm0, %v5987_v0, -inf }
0x43af   :  { %5993 = vst.msk [vmem:[%s8667_s25 + $0x10] sm:$0xff] %vm5990_vm1, %v5982_v60  ;;  %v6006_v5 = vsel %vm5990_vm1, %v5982_v60, -inf  ;;  %s9859_s25 = sld [smem:[#allocation11_spill]] }
0x43b0   :  { %6007 = vmax.xlane.f32.xlu0 %v6006_v5  ;;  %v6096_v5 = vld [vmem:[%s9860_s8] sm:$0xff] }
0x43b1   :  { %7607 = vmatprep.mubr.msk.f32.mxu1 %vm6102_vm14, %v6096_v5  ;;  %7596 = vmatprep.mubr.msk.f32.mxu0 %vm6102_vm14, %v6096_v5 }
0x43b4   :  { %6010 = vmax.xlane.f32.xlu0 %v6009_v62  ;;  %v8473_v62 = vmov 1.0|1.0  }
0x43b5   :  { %v5837_v15 = vld [vmem:[%s9859_s25] sm:$0x3f]  ;;  %8035 = vmatprep.subr.msk.bf16.mxu1 %vm8034_vm13, %v8473_v62 }
0x43b6   :  { %8037 = vmatpush3.bf16.msk.msra.mxu1 %vm8034_vm13, %v8473_v62 }
0x43d3   :  { %v6005_v4 = vpop.xlane.xlu1 %6004 }
0x43d4   :  { %v6013_v13 = vsub.f32 %v5977_v18, %v6005_v4  ;;  %v6002_v38 = vpop.xlane.xlu0 %6001  ;;  %v6097_v4 = vld [vmem:[%s9860_s8 + $0x8] sm:$0x7f] }
0x43d5   :  { %v6012_v8 = vsub.f32 %v5972_v45, %v6002_v38  ;;  %v6482_v38 = vsel %vm6085_vm10, 1.0, %v9842_v27 }
0x43d6   :  { %v6018_v1 = vmul.f32 1.442695, %v6013_v13 }
0x43d7   :  { %v6016_v22 = vmul.f32 1.442695, %v6012_v8 }
0x43d8   :  { %8336 = vpow2.f32 %v6018_v1 }
0x43d9   :  { %8338 = vpow2.f32 %v6016_v22 }
0x43e2   :  { %v8337_v23 = vpop.eup %8336 }
0x43e3   :  { %v8339_v48 = vpop.eup %8338  ;;  %v6027_v26 = vsel %vm5990_vm1, %v8337_v23, 0.0 }
0x43e4   :  { %6028 = vadd.xlane.f32.xlu1 %v6027_v26  ;;  %v6024_v31 = vsel %vm5990_vm1, %v8339_v48, 0.0 }
0x43e5   :  { %6025 = vadd.xlane.f32.xlu0 %v6024_v31 }
0x443d   :  { %v6008_v61 = vpop.xlane.xlu0 %6007 }
0x443e   :  { %v6014_v41 = vsub.f32 %v5982_v60, %v6008_v61 }
0x4440   :  { %v6020_v21 = vmul.f32 1.442695, %v6014_v41 }
0x4441   :  { %v6011_v30 = vpop.xlane.xlu0 %6010 }
0x4442   :  { %8340 = vpow2.f32 %v6020_v21  ;;  %v6015_v17 = vsub.f32 %v5987_v0, %v6011_v30  ;;  %v6484_v0 = vsel %vm6087_vm7, 1.0, %v9842_v27 }
0x4443   :  { %v8038_v60 = vpack.c.bf16 %v6484_v0, %v8472_v9 }
0x4444   :  { %v6022_v42 = vmul.f32 1.442695, %v6015_v17 }
0x4445   :  { %8040 = vmatprep.subr.msk.bf16.mxu1 %vm8039_vm15, %v8038_v60 }
0x4446   :  { %8342 = vpow2.f32 %v6022_v42  ;;  %8043 = vmatpush3.bf16.msk.msra.mxu1 %vm8039_vm15, %v8038_v60 }
0x4449   :  { %7608 = vmatmul.mubr.msk.f32.vlgmr.msra.gmra.mrb[62].mxu1 %vm6102_vm14, %v6097_v4 }
0x444c   :  { %v8341_v2 = vpop.eup %8340 }
0x444d   :  { %v6030_v36 = vsel %vm5990_vm1, %v8341_v2, 0.0 }
0x444e   :  { %6031 = vadd.xlane.f32.xlu0 %v6030_v36 }
0x4450   :  { %v8343_v34 = vpop.eup %8342 }
0x4451   :  { %v6033_v32 = vsel %vm5994_vm0, %v8343_v34, 0.0 }
0x4452   :  { %6034 = vadd.xlane.f32.xlu1 %v6033_v32 }
0x4463   :  { %6052 = vperm.xlu1 %8101, %v9692_v59  }
0x4464   :  { %6049 = vperm.xlu0 %8100, %v9695_v14  }
0x4467   :  { %6055 = vperm.xlu1 %8101, %v9700_v44  }
0x446b   :  { %6058 = vperm.xlu1 %8101, %v5999_v12  }
0x4471   :  { %v6029_v51 = vpop.xlane.xlu1 %6028 }
0x4472   :  { %v6026_v54 = vpop.xlane.xlu0 %6025  ;;  %8344 = vlog2.f32 %v6029_v51 }
0x4473   :  { %8346 = vlog2.f32 %v6026_v54 }
0x447c   :  { %v8345_v46 = vpop.eup %8344 }
0x447d   :  { %v8347_v56 = vpop.eup %8346  ;;  %v6039_v3 = vmul.f32 0.6931472, %v8345_v46 }
0x447e   :  { %v6037_v55 = vmul.f32 0.6931472, %v8347_v56 }
0x447f   :  { %v6045_v11 = vsub.f32 %v6013_v13, %v6039_v3 }
0x4480   :  { %v6044_v33 = vsub.f32 %v6012_v8, %v6037_v55 }
0x44db   :  { %v6032_v24 = vpop.xlane.xlu0 %6031 }
0x44dc   :  { %8348 = vlog2.f32 %v6032_v24 }
0x44df   :  { %v6035_v47 = vpop.xlane.xlu1 %6034 }
0x44e0   :  { %8350 = vlog2.f32 %v6035_v47 }
0x44e3   :  { %v6053_v50 = vpop.permute.xlu1 %6052  ;;  %v6050_v58 = vpop.permute.xlu0 %6049 }
0x44e4   :  { %vm6061_vm2 = vcmp.eq.s32.totalorder %v9704_v19, %v6053_v50  ;;  %vm6060_vm3 = vcmp.eq.s32.totalorder %v9704_v19, %v6050_v58 }
0x44e5   :  { %v6065_v37 = vsel %vm6061_vm2, %v6045_v11, 0.0  ;;  %v6064_v16 = vsel %vm6060_vm3, %v6044_v33, 0.0  ;;  %v6273_v33 = vld [vmem:[%s9861_s17 + $0x8] sm:$0x7f]  ;;  %vm6276_vm2 = vcmask 7168   ;;  %vm5862_vm3 = vcmask 5120  }
0x44e6   :  { %v8349_v28 = vpop.eup %8348  ;;  %v6071_v7 = vsel %vm5990_vm1, %v6065_v37, 0.0  ;;  %v6068_v40 = vsel %vm5990_vm1, %v6064_v16, 0.0  ;;  %v6272_v16 = vld [vmem:[%s9861_s17] sm:$0xff] }
0x44e7   :  { %v6041_v57 = vmul.f32 0.6931472, %v8349_v28  ;;  %6072 = vadd.xlane.f32.xlu0 %v6071_v7  ;;  %v6056_v25 = vpop.permute.xlu1 %6055  ;;  %6069 = vadd.xlane.f32.xlu1 %v6068_v40 }
0x44e8   :  { %vm6062_vm4 = vcmp.eq.s32.totalorder %v9704_v19, %v6056_v25 }
0x44e9   :  { %v6046_v39 = vsub.f32 %v6014_v41, %v6041_v57  ;;  %v6483_v41 = vsel %vm6086_vm11, 1.0, %v9842_v27 }
0x44ea   :  { %v8351_v43 = vpop.eup %8350 }
0x44eb   :  { %v6043_v20 = vmul.f32 0.6931472, %v8351_v43  ;;  %v6066_v49 = vsel %vm6062_vm4, %v6046_v39, 0.0  ;;  %v6059_v53 = vpop.permute.xlu1 %6058  ;;  %vm5876_vm4 = vcmask 0  }
0x44ec   :  { %v6074_v6 = vsel %vm5990_vm1, %v6066_v49, 0.0  ;;  %vm6063_vm5 = vcmp.eq.s32.totalorder %v9704_v19, %v6059_v53  ;;  %vm8029_vm1 = vmpackc.low %vm6109_vm12, %vm8467_vm8 }
0x44ed   :  { %v6047_v18 = vsub.f32 %v6015_v17, %v6043_v20  ;;  %6075 = vadd.xlane.f32.xlu1 %v6074_v6 }
0x44ef   :  { %v6067_v35 = vsel %vm6063_vm5, %v6047_v18, 0.0 }
0x44f0   :  { %v6077_v45 = vsel %vm5994_vm0, %v6067_v35, 0.0  ;;  %vm6278_vm0 = vcmask 6144  }
0x44f1   :  { %6078 = vadd.xlane.f32.xlu1 %v6077_v45 }
0x44f5   :  { %5840 = vmax.xlane.f32.xlu1 %v5839_v10 }
0x44fd   :  { %5854 = vperm.xlu0 %8100, %v5837_v15  }
0x451c   :  { %v7609_v27 = vpop.f32.mrb[62].mxu1 }
0x451d   :  { %v6257_v44 = vpop.f32.mrb[63].mxu1  ;;  %v6267_v3 = vmax.f32 %v7609_v27, 1.0 }
0x451e   :  { %v6266_v55 = vmax.f32 %v6257_v44, 1.0 }
0x4574   :  { %v6070_v13 = vpop.xlane.xlu1 %6069  ;;  %v6073_v8 = vpop.xlane.xlu0 %6072 }
0x4575   :  { %v6080_v1 = vsub.f32 0.0, %v6070_v13  ;;  %v6081_v22 = vsub.f32 0.0, %v6073_v8 }
0x4577   :  { %v6098_v23 = vmul.f32 %v6481_v63, %v6080_v1  ;;  %v6099_v48 = vmul.f32 %v6482_v38, %v6081_v22 }
0x4579   :  { %v8024_v26 = vpack.c.bf16 %v6099_v48, %v6098_v23 }
0x457a   :  { %v6076_v31 = vpop.xlane.xlu1 %6075 }
0x457b   :  { %8025 = vmatprep.subr.bf16.mxu0 %v8024_v26  ;;  %v6082_v61 = vsub.f32 0.0, %v6076_v31 }
0x457c   :  { %8027 = vmatpush3.bf16.msra.mxu0 %v8024_v26  ;;  %v5855_v54 = vpop.permute.xlu0 %5854 }
0x457d   :  { %v6100_v17 = vmul.f32 %v6483_v41, %v6082_v61  ;;  %vm5856_vm8 = vcmp.eq.s32.totalorder %v9704_v19, %v5855_v54 }
0x457e   :  { %v6079_v21 = vpop.xlane.xlu1 %6078 }
0x457f   :  { %v6083_v30 = vsub.f32 0.0, %v6079_v21 }
0x4581   :  { %v6101_v42 = vmul.f32 %v6484_v0, %v6083_v30 }
0x4582   :  { %v5841_v2 = vpop.xlane.xlu1 %5840 }
0x4583   :  { %v8028_v36 = vpack.c.bf16 %v6101_v42, %v6100_v17  ;;  %v5842_v34 = vsub.f32 %v5836_v29, %v5841_v2 }
0x4585   :  { %v5843_v32 = vmul.f32 1.442695, %v5842_v34  ;;  %8030 = vmatprep.subr.msk.bf16.mxu0 %vm8029_vm1, %v8028_v36 }
0x4586   :  { %8033 = vmatpush3.bf16.msk.msra.mxu0 %vm8029_vm1, %v8028_v36 }
0x4587   :  { %8352 = vpow2.f32 %v5843_v32 }
0x4589   :  { %7597 = vmatmul.mubr.msk.f32.vlgmr.msra.gmra.mrb[70].mxu0 %vm6102_vm14, %v6097_v4 }
0x4591   :  { %v8353_v59 = vpop.eup %8352 }
0x4592   :  { %v5845_v14 = vsel %vm5838_vm6, %v8353_v59, 0.0 }
0x4593   :  { %5846 = vadd.xlane.f32.xlu1 %v5845_v14 }
0x4620   :  { %v5847_v12 = vpop.xlane.xlu1 %5846 }
0x4621   :  { %8354 = vlog2.f32 %v5847_v12 }
0x4622   :  { %8356 = vrcp.f32 %v6267_v3 }
0x4623   :  { %8358 = vrcp.f32 %v6266_v55 }
0x462b   :  { %v8355_v51 = vpop.eup %8354 }
0x462c   :  { %v5849_v46 = vmul.f32 0.6931472, %v8355_v51  ;;  %v8357_v47 = vpop.eup %8356 }
0x462d   :  { %v8359_v11 = vpop.eup %8358 }
0x462e   :  { %v5850_v24 = vsub.f32 %v5842_v34, %v5849_v46 }
0x4630   :  { %v5857_v56 = vsel %vm5856_vm8, %v5850_v24, 0.0 }
0x4631   :  { %v5858_v52 = vsel %vm5838_vm6, %v5857_v56, 0.0 }
0x4632   :  { %5859 = vadd.xlane.f32.xlu1 %v5858_v52 }
0x465c   :  { %v7598_v50 = vpop.f32.mrb[70].mxu0 }
0x465d   :  { %v6271_v58 = vmul.f32 %v8357_v47, %v7598_v50  ;;  %v6179_v37 = vpop.f32.mrb[71].mxu0 }
0x465e   :  { %v6269_v28 = vmul.f32 %v8359_v11, %v6179_v37 }
0x465f   :  { %v6275_v7 = vmul.f32 %v6273_v33, %v6271_v58 }
0x4660   :  { %v6274_v19 = vmul.f32 %v6272_v16, %v6269_v28 }
0x4661   :  { %v6279_v40 = vsel %vm6278_vm0, %v6275_v7, 0.0 }
0x4662   :  { %v6277_v57 = vsel %vm6276_vm2, %v6274_v19, 0.0 }
0x4663   :  { %v6280_v25 = vadd.f32 %v6279_v40, %v6277_v57 }
0x46bf   :  { %v5860_v39 = vpop.xlane.xlu1 %5859 }
0x46c0   :  { %v5861_v43 = vsub.f32 0.0, %v5860_v39 }
0x46c2   :  { %v5863_v20 = vsel %vm5862_vm3, %v5861_v43, 0.0 }
0x46c3   :  { %5864 = vadd.xlane.f32.xlu1 %v5863_v20 }
0x46c7   :  { %6281 = vadd.xlane.f32.xlu1 %v6280_v25 }
0x4750   :  { %v5865_v49 = vpop.xlane.xlu1 %5864 }
0x4751   :  { %v5866_v53 = vrot.slane %v5865_v49, 4 }
0x4753   :  { %v5867_v6 = vadd.f32 %v5866_v53, %v5865_v49 }
0x4754   :  { %v6282_v18 = vpop.xlane.xlu1 %6281 }
0x4755   :  { %v5868_v35 = vrot.slane %v5867_v6, 2  ;;  %v6283_v45 = vrot.slane %v6282_v18, 4 }
0x4757   :  { %v6284_v29 = vadd.f32 %v6283_v45, %v6282_v18  ;;  %v5869_v10 = vadd.f32 %v5868_v35, %v5867_v6 }
0x4759   :  { %v6285_v15 = vrot.slane %v6284_v29, 2  ;;  %v5870_v0 = vrot.slane %v5869_v10, 1 }
0x475b   :  { %v6286_v9 = vadd.f32 %v6285_v15, %v6284_v29  ;;  %v5871_v60 = vadd.f32 %v5870_v0, %v5869_v10 }
0x475d   :  { %8044 = vpush %v5871_v60  ;;  %v6287_v5 = vrot.slane %v6286_v9, 1 }
0x475f   :  { %v6288_v62 = vadd.f32 %v6287_v5, %v6286_v9 }
0x4761   :  { %8046 = vpush %v6288_v62 }
0x478e   :  { %s8045_s26 = spop %8044 }
0x478f   :  { %v5873_v4 = vstv %s8045_s26 }
0x4790   :  { %v5875_v63 = vmul.f32 0.16666667, %v5873_v4 }
0x4792   :  { %s8047_s29 = spop %8046  ;;  %5877 = vst.msk [vmem:[#allocation3] sm:$0x1] %vm5876_vm4, %v5875_v63 }
0x4793   :  { %v6290_v13 = vstv %s8047_s29 }
0x4794   :  { %8387 = shalt.err (!%p8384_p4)
}
0x4795   :  { %s8388_s30 = scalar_lea.hbm %s8677_s3, 16 }
0x4796   :  { %p8389_p5 = scmp.ne.s32.totalorder %s8677_s3, %s8388_s30  ;;  %p8392_p6 = scmp.lt.u32.totalorder %s8388_s30, %s8677_s3 }
0x4798   :  { %p8394_p7 = pnand %p8392_p6, %p8389_p5 }
0x479a   :  { %8397 = shalt.err (!%p8394_p7)
}
0x479b   :  { %6307 = dma.vmem_to_hbm [thread:$0]  %s6305_s27, 16, %s8677_s3, [#allocation4]   ;;  %v6292_v38 = vmul.f32 0.055555556, %v6290_v13 }
0x479c   :  { %s8398_s12 = scalar_lea.vmem %s6315_s21, 16  ;;  %s8402_s20 = scalar_lea.vmem %s6315_s21, 32 }
0x479d   :  { %6293 = vst.msk [vmem:[#allocation5] sm:$0x1] %vm5876_vm4, %v6292_v38  ;;  %p8399_p8 = scmp.ne.s32.totalorder %s6315_s21, %s8398_s12  ;;  %p8403_p9 = scmp.lt.s32.totalorder %s6315_s21, %s6315_s21 }
0x479e   :  { %p8404_p10 = scmp.lt.s32.totalorder %s8402_s20, %s8398_s12 }
0x47a0   :  { %p8405_p11 = por %p8404_p10, %p8403_p9 }
0x47a2   :  { %p8406_p12 = pnand %p8405_p11, %p8399_p8 }
0x47a4   :  { %8409 = shalt.err (!%p8406_p12)
}
0x47a5   :  { %s8410_s4 = scalar_lea.hbm %s8682_s6, 16 }
0x47a6   :  { %p8411_p13 = scmp.ne.s32.totalorder %s8682_s6, %s8410_s4  ;;  %p8414_p0 = scmp.lt.u32.totalorder %s8410_s4, %s8682_s6 }
0x47a8   :  { %p8416_p1 = pnand %p8414_p0, %p8411_p13 }
0x47aa   :  { %8419 = shalt.err (!%p8416_p1)
}
0x47ab   :  { %6317 = dma.vmem_to_hbm [thread:$0]  %s6315_s21, 16, %s8682_s6, [#allocation6]  }
0x47ac   :  { %8420 = dma.done.wait [#allocation4], 16  }
0x47ad   :  { %8421 = vsyncadd [#allocation4], 4294967280 }
0x47ae   :  { %8422 = dma.done.wait [#allocation6], 16  }
0x47af   :  { %8423 = vsyncadd [#allocation6], 4294967280 }
0x47b0   :  { %6328 = vsyncpa [#allocation4], 1 }
0x47b1   :  { %6329 = vsyncpa [#allocation6], 1 }

</bundles_post_ra>
